<compile_context>
chip_gen: v5e
topology: v5e:2x2
jax: 0.10.0
libtpu: 0.0.40
codegen_flags: <defaults>
</compile_context>

<pallas_src>
import functools

import jax
import jax.numpy as jnp
from jax.experimental import pallas as pl
from jax.experimental.pallas import tpu as pltpu


def _round_up(x, m):
    return (x + m - 1) // m * m


# ----------------------------------------------------------------------------
# Pallas kernels
# ----------------------------------------------------------------------------
def _conv_block_kernel(mt, p_ref, w_ref, b_ref, o_ref):
    """Fused Conv3x3(pad1) + bias + ReLU + MaxPool2x2 for one M-tile.

    p_ref: (4*mt, K) bf16 im2col patches; the 4 pooling-window parities of the
           same `mt` pooled output rows are stacked along M so the whole tile
           is a single MXU matmul.
    w_ref: (K, Cout) bf16.   b_ref: (1, Cout) f32.   o_ref: (mt, Cout) bf16.
    """
    z = jnp.dot(p_ref[...], w_ref[...], preferred_element_type=jnp.float32)
    m = jnp.maximum(jnp.maximum(z[0 * mt:1 * mt], z[1 * mt:2 * mt]),
                    jnp.maximum(z[2 * mt:3 * mt], z[3 * mt:4 * mt]))
    # Bias once after the max; ReLU after max (both commute with the pool-max).
    o_ref[...] = jnp.maximum(m + b_ref[...], 0.0).astype(o_ref.dtype)


def _conv3_dense_kernel(bt, p_ref, w3_ref, b3_ref, wf1_ref, bf1_ref,
                        wf2_ref, bf2_ref, o_ref):
    """conv3(+ReLU+pool) fused with the dense head for a block of `bt` images.

    p_ref : (4*9*bt, 576) bf16 parity-stacked conv3 patches, rows ordered
            [parity][spatial pos p = h*3+w][image].
    w3    : (576, 64) bf16,  b3: (1, 64) f32.
    wf1   : (576, 128) bf16 with the NCHW-flatten permutation folded into rows.
    wf2   : (128, 128) bf16 (outputs zero-padded 10 -> 128: lane-dense store).
    o_ref : (bt, 128) f32 logits (first 10 lanes valid).
    """
    nt = 9 * bt
    z = jnp.dot(p_ref[...], w3_ref[...], preferred_element_type=jnp.float32)
    m = jnp.maximum(jnp.maximum(z[0 * nt:1 * nt], z[1 * nt:2 * nt]),
                    jnp.maximum(z[2 * nt:3 * nt], z[3 * nt:4 * nt]))
    a3 = jnp.maximum(m + b3_ref[...], 0.0)          # (9*bt, 64), rows [p][image]
    # Flatten to (bt, 576) with lane order (p, c); fc1 rows are pre-permuted.
    x = jnp.concatenate([a3[p * bt:(p + 1) * bt, :] for p in range(9)], axis=1)
    h = jnp.dot(x.astype(jnp.bfloat16), wf1_ref[...],
                preferred_element_type=jnp.float32) + bf1_ref[...]
    h = jnp.maximum(h, 0.0)
    o_ref[...] = (jnp.dot(h.astype(jnp.bfloat16), wf2_ref[...],
                          preferred_element_type=jnp.float32) + bf2_ref[...])


# ----------------------------------------------------------------------------
# JAX glue: pooling-parity im2col and the pallas_call wrappers
# ----------------------------------------------------------------------------
def _pool_parity_patches(x_nhwc):
    """(B, H, W, C) -> (4, B*(H/2)*(W/2), 9*C) im2col patches.

    Axis 0 is the position inside each 2x2 pooling window; rows are ordered
    [image][pooled position (row-major)]; lanes are (kh, kw, cin).
    """
    B, H, W, C = x_nhwc.shape
    Ho, Wo = H // 2, W // 2
    xp = jnp.pad(x_nhwc, ((0, 0), (1, 1), (1, 1), (0, 0)))
    groups = []
    for py in range(2):
        for px in range(2):
            taps = [xp[:, py + kh:py + kh + H:2, px + kw:px + kw + W:2, :]
                    for kh in range(3) for kw in range(3)]
            p = jnp.concatenate(taps, axis=-1)              # (B, Ho, Wo, 9C)
            groups.append(p.reshape(B, Ho * Wo, 9 * C))
    return jnp.stack(groups, axis=0).reshape(4, B * Ho * Wo, 9 * C)


def conv_relu_pool(x_nhwc, wmat, bias):
    """One Conv+ReLU+MaxPool block; parity-fused matmul tiled over M = B*P."""
    B, H, W, _ = x_nhwc.shape
    Ho, Wo = H // 2, W // 2
    K, Cout = wmat.shape
    patches = _pool_parity_patches(x_nhwc).astype(jnp.bfloat16)   # (4, M, K)
    M = B * Ho * Wo
    mt = min(256, _round_up(M, 8))
    m_pad = _round_up(M, mt)
    if m_pad != M:
        patches = jnp.pad(patches, ((0, 0), (0, m_pad - M), (0, 0)))
    nm = m_pad // mt
    # Interleave so each grid block holds the 4 parity copies of its mt rows.
    patches = (patches.reshape(4, nm, mt, K)
                      .transpose(1, 0, 2, 3)
                      .reshape(nm * 4 * mt, K))
    out = pl.pallas_call(
        functools.partial(_conv_block_kernel, mt),
        out_shape=jax.ShapeDtypeStruct((m_pad, Cout), jnp.bfloat16),
        grid=(nm,),
        in_specs=[pl.BlockSpec((4 * mt, K), lambda i: (i, 0)),
                  pl.BlockSpec((K, Cout), lambda i: (0, 0)),
                  pl.BlockSpec((1, Cout), lambda i: (0, 0))],
        out_specs=pl.BlockSpec((mt, Cout), lambda i: (i, 0)),
        compiler_params=pltpu.CompilerParams(dimension_semantics=("parallel",)),
    )(patches, wmat, bias)
    return out[:M].reshape(B, Ho, Wo, Cout)


def conv3_dense(x_nhwc, w3, b3, wf1, bf1, wf2, bf2):
    """Last conv block fused with the dense head."""
    B = x_nhwc.shape[0]
    bt = min(32, _round_up(B, 8))          # images per grid step
    b_pad = _round_up(B, bt)
    if b_pad != B:
        x_nhwc = jnp.pad(x_nhwc, ((0, b_pad - B), (0, 0), (0, 0), (0, 0)))
    patches = _pool_parity_patches(x_nhwc).astype(jnp.bfloat16)  # (4, b_pad*9, 576)
    K = patches.shape[-1]
    nb = b_pad // bt
    patches = (patches.reshape(4, nb, bt, 9, K)
                      .transpose(1, 0, 3, 2, 4)                  # (nb, 4, 9, bt, K)
                      .reshape(nb * 4 * 9 * bt, K))
    n_out = wf2.shape[1]
    out = pl.pallas_call(
        functools.partial(_conv3_dense_kernel, bt),
        out_shape=jax.ShapeDtypeStruct((b_pad, n_out), jnp.float32),
        grid=(nb,),
        in_specs=[pl.BlockSpec((4 * 9 * bt, K), lambda i: (i, 0)),
                  pl.BlockSpec(w3.shape, lambda i: (0, 0)),
                  pl.BlockSpec(b3.shape, lambda i: (0, 0)),
                  pl.BlockSpec(wf1.shape, lambda i: (0, 0)),
                  pl.BlockSpec(bf1.shape, lambda i: (0, 0)),
                  pl.BlockSpec(wf2.shape, lambda i: (0, 0)),
                  pl.BlockSpec(bf2.shape, lambda i: (0, 0))],
        out_specs=pl.BlockSpec((bt, n_out), lambda i: (i, 0)),
        compiler_params=pltpu.CompilerParams(dimension_semantics=("parallel",)),
    )(patches, w3, b3, wf1, bf1, wf2, bf2)
    return out[:B]


def net_forward(x_nchw, kp):
    x = jnp.transpose(x_nchw, (0, 2, 3, 1)).astype(jnp.bfloat16)  # NCHW -> NHWC
    x = conv_relu_pool(x, kp["w1"], kp["b1"])                     # (B, 12, 12, 32)
    x = conv_relu_pool(x, kp["w2"], kp["b2"])                     # (B, 6, 6, 64)
    out = conv3_dense(x, kp["w3"], kp["b3"],
                      kp["fc1_w"], kp["fc1_b"], kp["fc2_w"], kp["fc2_b"])
    return out[:, :10]


# ----------------------------------------------------------------------------
# One-time parameter preparation (transposes / permutations folded here)
# ----------------------------------------------------------------------------
def prepare_params(p):
    bf16 = jnp.bfloat16

    def conv_mat(w):                         # (Cout, Cin, 3, 3) -> (9*Cin, Cout)
        cout, cin = w.shape[0], w.shape[1]
        return jnp.transpose(w, (2, 3, 1, 0)).reshape(9 * cin, cout).astype(bf16)

    # Kernel feeds fc1 with lane order (p = h*3+w, c); torch flattens as (c, h, w).
    fc1 = (p["fc1_w"].reshape(128, 64, 9).transpose(2, 1, 0)
           .reshape(576, 128).astype(bf16))
    fc2 = jnp.zeros((128, 128), jnp.float32).at[:, :10].set(p["fc2_w"].T)
    fb2 = jnp.zeros((1, 128), jnp.float32).at[0, :10].set(p["fc2_b"])
    return dict(
        w1=conv_mat(p["w1"]), b1=p["b1"].reshape(1, -1),
        w2=conv_mat(p["w2"]), b2=p["b2"].reshape(1, -1),
        w3=conv_mat(p["w3"]), b3=p["b3"].reshape(1, -1),
        fc1_w=fc1, fc1_b=p["fc1_b"].reshape(1, -1),
        fc2_w=fc2.astype(bf16), fc2_b=fb2)


# ----------------------------------------------------------------------------
# Deterministic parameter initialization (PyTorch-shaped weights)
# ----------------------------------------------------------------------------
def init_params(key):
    ks = jax.random.split(key, 10)

    def conv_init(kw, kb, cout, cin):
        scale = 1.0 / jnp.sqrt(jnp.float32(cin * 9))
        return (jax.random.normal(kw, (cout, cin, 3, 3), jnp.float32) * scale,
                jax.random.normal(kb, (cout,), jnp.float32) * scale)

    def linear_init(kw, kb, out_f, in_f):
        scale = 1.0 / jnp.sqrt(jnp.float32(in_f))
        return (jax.random.normal(kw, (out_f, in_f), jnp.float32) * scale,
                jax.random.normal(kb, (out_f,), jnp.float32) * scale)

    w1, b1 = conv_init(ks[0], ks[1], 32, 3)
    w2, b2 = conv_init(ks[2], ks[3], 64, 32)
    w3, b3 = conv_init(ks[4], ks[5], 64, 64)
    fc1_w, fc1_b = linear_init(ks[6], ks[7], 128, 64 * 3 * 3)
    fc2_w, fc2_b = linear_init(ks[8], ks[9], 10, 128)
    return dict(w1=w1, b1=b1, w2=w2, b2=b2, w3=w3, b3=b3,
                fc1_w=fc1_w, fc1_b=fc1_b, fc2_w=fc2_w, fc2_b=fc2_b)


# ----------------------------------------------------------------------------
# Pure-JAX f32 reference (mirrors the PyTorch NCHW forward) for validation
# ----------------------------------------------------------------------------
def reference_forward(x, p):
    def conv(x, w, b):
        y = jax.lax.conv_general_dilated(
            x, w, window_strides=(1, 1), padding=((1, 1), (1, 1)),
            dimension_numbers=("NCHW", "OIHW", "NCHW"))
        return y + b[None, :, None, None]

    def block(x, w, b):
        y = jnp.maximum(conv(x, w, b), 0.0)
        return jax.lax.reduce_window(y, -jnp.inf, jax.lax.max,
                                     (1, 1, 2, 2), (1, 1, 2, 2), "VALID")

    y = block(x, p["w1"], p["b1"])
    y = block(y, p["w2"], p["b2"])
    y = block(y, p["w3"], p["b3"])
    y = y.reshape(y.shape[0], -1)
    h = jnp.maximum(y @ p["fc1_w"].T + p["fc1_b"], 0.0)
    return h @ p["fc2_w"].T + p["fc2_b"]


if __name__ == "__main__":
    key = jax.random.PRNGKey(0)
    kx, kp = jax.random.split(key)
    # 24x24 input so the flatten is exactly 64*3*3 = 576, as the module implies.
    B = 8
    x = jax.random.normal(kx, (B, 3, 24, 24), jnp.float32)
    params = init_params(kp)
    kparams = prepare_params(params)

    out = jax.jit(net_forward)(x, kparams)
    jax.block_until_ready(out)

    ref = reference_forward(x, params)
    assert out.shape == (B, 10), out.shape
    out_f32 = out.astype(jnp.float32)
    max_diff = float(jnp.max(jnp.abs(out_f32 - ref)))
    # bf16 MXU inputs (f32 accumulation) vs. a pure-f32 reference.
    tol = 5e-2 + 5e-2 * float(jnp.max(jnp.abs(ref)))
    assert max_diff <= tol, f"mismatch: max abs diff {max_diff} > tol {tol}"

    print("KERNEL_OK")
</pallas_src>

<mosaic_0001>
module attributes {stable_mosaic.version = 11 : i64} {
  func.func @_conv_block_kernel(%arg0: i32, %arg1: memref<1024x27xbf16, #tpu.memory_space<vmem>>, %arg2: memref<27x32xbf16, #tpu.memory_space<vmem>>, %arg3: memref<1x32xf32, #tpu.memory_space<vmem>>, %arg4: memref<256x32xbf16, #tpu.memory_space<vmem>>) attributes {dimension_semantics = [#tpu.dimension_semantics<parallel>], iteration_bounds = array<i64: 5>, scalar_prefetch = 0 : i64, scratch_operands = 0 : i64, tpu.core_type = #tpu.core_type<tc>, window_params = [{transform_indices = @transform_0, window_bounds = array<i64: 1024, 27>}, {pipeline_mode = #tpu.pipeline_mode<synchronous>, transform_indices = @transform_1, window_bounds = array<i64: 27, 32>}, {pipeline_mode = #tpu.pipeline_mode<synchronous>, transform_indices = @transform_2, window_bounds = array<i64: 1, 32>}, {transform_indices = @transform_3, window_bounds = array<i64: 256, 32>}]} {
    %c0 = arith.constant 0 : index
    %c0_0 = arith.constant 0 : index
    %0 = vector.load %arg1[%c0, %c0_0] : memref<1024x27xbf16, #tpu.memory_space<vmem>>, vector<1024x27xbf16>
    %c0_1 = arith.constant 0 : index
    %c0_2 = arith.constant 0 : index
    %1 = vector.load %arg2[%c0_1, %c0_2] : memref<27x32xbf16, #tpu.memory_space<vmem>>, vector<27x32xbf16>
    %cst = arith.constant dense<0.000000e+00> : vector<1024x32xf32>
    %2 = tpu.matmul %0, %1, %cst {dimension_numbers = #tpu.dot_dimension_numbers<[1], [0], [0], [1], [0, 0, 1, 1], [], []>} : vector<1024x27xbf16>, vector<27x32xbf16>, vector<1024x32xf32> -> vector<1024x32xf32>
    %3 = vector.extract_strided_slice %2 {offsets = [0, 0], sizes = [256, 32], strides = [1, 1]} : vector<1024x32xf32> to vector<256x32xf32>
    %4 = vector.extract_strided_slice %2 {offsets = [256, 0], sizes = [256, 32], strides = [1, 1]} : vector<1024x32xf32> to vector<256x32xf32>
    %5 = arith.maximumf %3, %4 : vector<256x32xf32>
    %6 = vector.extract_strided_slice %2 {offsets = [512, 0], sizes = [256, 32], strides = [1, 1]} : vector<1024x32xf32> to vector<256x32xf32>
    %7 = vector.extract_strided_slice %2 {offsets = [768, 0], sizes = [256, 32], strides = [1, 1]} : vector<1024x32xf32> to vector<256x32xf32>
    %8 = arith.maximumf %6, %7 : vector<256x32xf32>
    %9 = arith.maximumf %5, %8 : vector<256x32xf32>
    %c0_3 = arith.constant 0 : index
    %c0_4 = arith.constant 0 : index
    %10 = vector.load %arg3[%c0_3, %c0_4] : memref<1x32xf32, #tpu.memory_space<vmem>>, vector<1x32xf32>
    %11 = vector.broadcast %10 : vector<1x32xf32> to vector<256x32xf32>
    %12 = arith.addf %9, %11 : vector<256x32xf32>
    %cst_5 = arith.constant 0.000000e+00 : f32
    %13 = vector.broadcast %cst_5 : f32 to vector<256x32xf32>
    %14 = arith.maximumf %12, %13 : vector<256x32xf32>
    %15 = arith.truncf %14 : vector<256x32xf32> to vector<256x32xbf16>
    %c0_6 = arith.constant 0 : index
    %c0_7 = arith.constant 0 : index
    %16 = vector.load %arg4[%c0_6, %c0_7] : memref<256x32xbf16, #tpu.memory_space<vmem>>, vector<256x32xbf16>
    tpu.vector_store %arg4[%c0_6, %c0_7], %15 {strides = array<i32>} : memref<256x32xbf16, #tpu.memory_space<vmem>>, vector<256x32xbf16>,
    return
  }
  func.func @transform_0(%arg0: i32) -> (i32, i32) {
    %c0_i32 = arith.constant 0 : i32
    %c0_i32_0 = arith.constant 0 : i32
    return %arg0, %c0_i32 : i32, i32
  }
  func.func @transform_1(%arg0: i32) -> (i32, i32) {
    %c0_i32 = arith.constant 0 : i32
    %c0_i32_0 = arith.constant 0 : i32
    %c0_i32_1 = arith.constant 0 : i32
    return %c0_i32, %c0_i32_0 : i32, i32
  }
  func.func @transform_2(%arg0: i32) -> (i32, i32) {
    %c0_i32 = arith.constant 0 : i32
    %c0_i32_0 = arith.constant 0 : i32
    %c0_i32_1 = arith.constant 0 : i32
    return %c0_i32, %c0_i32_0 : i32, i32
  }
  func.func @transform_3(%arg0: i32) -> (i32, i32) {
    %c0_i32 = arith.constant 0 : i32
    %c0_i32_0 = arith.constant 0 : i32
    return %arg0, %c0_i32 : i32, i32
  }
}

module attributes {stable_mosaic.version = 11 : i64} {
  func.func @_conv_block_kernel(%arg0: i32, %arg1: memref<1024x288xbf16, #tpu.memory_space<vmem>>, %arg2: memref<288x64xbf16, #tpu.memory_space<vmem>>, %arg3: memref<1x64xf32, #tpu.memory_space<vmem>>, %arg4: memref<256x64xbf16, #tpu.memory_space<vmem>>) attributes {dimension_semantics = [#tpu.dimension_semantics<parallel>], iteration_bounds = array<i64: 2>, scalar_prefetch = 0 : i64, scratch_operands = 0 : i64, tpu.core_type = #tpu.core_type<tc>, window_params = [{transform_indices = @transform_0, window_bounds = array<i64: 1024, 288>}, {pipeline_mode = #tpu.pipeline_mode<synchronous>, transform_indices = @transform_1, window_bounds = array<i64: 288, 64>}, {pipeline_mode = #tpu.pipeline_mode<synchronous>, transform_indices = @transform_2, window_bounds = array<i64: 1, 64>}, {transform_indices = @transform_3, window_bounds = array<i64: 256, 64>}]} {
    %c0 = arith.constant 0 : index
    %c0_0 = arith.constant 0 : index
    %0 = vector.load %arg1[%c0, %c0_0] : memref<1024x288xbf16, #tpu.memory_space<vmem>>, vector<1024x288xbf16>
    %c0_1 = arith.constant 0 : index
    %c0_2 = arith.constant 0 : index
    %1 = vector.load %arg2[%c0_1, %c0_2] : memref<288x64xbf16, #tpu.memory_space<vmem>>, vector<288x64xbf16>
    %cst = arith.constant dense<0.000000e+00> : vector<1024x64xf32>
    %2 = tpu.matmul %0, %1, %cst {dimension_numbers = #tpu.dot_dimension_numbers<[1], [0], [0], [1], [0, 0, 1, 1], [], []>} : vector<1024x288xbf16>, vector<288x64xbf16>, vector<1024x64xf32> -> vector<1024x64xf32>
    %3 = vector.extract_strided_slice %2 {offsets = [0, 0], sizes = [256, 64], strides = [1, 1]} : vector<1024x64xf32> to vector<256x64xf32>
    %4 = vector.extract_strided_slice %2 {offsets = [256, 0], sizes = [256, 64], strides = [1, 1]} : vector<1024x64xf32> to vector<256x64xf32>
    %5 = arith.maximumf %3, %4 : vector<256x64xf32>
    %6 = vector.extract_strided_slice %2 {offsets = [512, 0], sizes = [256, 64], strides = [1, 1]} : vector<1024x64xf32> to vector<256x64xf32>
    %7 = vector.extract_strided_slice %2 {offsets = [768, 0], sizes = [256, 64], strides = [1, 1]} : vector<1024x64xf32> to vector<256x64xf32>
    %8 = arith.maximumf %6, %7 : vector<256x64xf32>
    %9 = arith.maximumf %5, %8 : vector<256x64xf32>
    %c0_3 = arith.constant 0 : index
    %c0_4 = arith.constant 0 : index
    %10 = vector.load %arg3[%c0_3, %c0_4] : memref<1x64xf32, #tpu.memory_space<vmem>>, vector<1x64xf32>
    %11 = vector.broadcast %10 : vector<1x64xf32> to vector<256x64xf32>
    %12 = arith.addf %9, %11 : vector<256x64xf32>
    %cst_5 = arith.constant 0.000000e+00 : f32
    %13 = vector.broadcast %cst_5 : f32 to vector<256x64xf32>
    %14 = arith.maximumf %12, %13 : vector<256x64xf32>
    %15 = arith.truncf %14 : vector<256x64xf32> to vector<256x64xbf16>
    %c0_6 = arith.constant 0 : index
    %c0_7 = arith.constant 0 : index
    %16 = vector.load %arg4[%c0_6, %c0_7] : memref<256x64xbf16, #tpu.memory_space<vmem>>, vector<256x64xbf16>
    tpu.vector_store %arg4[%c0_6, %c0_7], %15 {strides = array<i32>} : memref<256x64xbf16, #tpu.memory_space<vmem>>, vector<256x64xbf16>,
    return
  }
  func.func @transform_0(%arg0: i32) -> (i32, i32) {
    %c0_i32 = arith.constant 0 : i32
    %c0_i32_0 = arith.constant 0 : i32
    return %arg0, %c0_i32 : i32, i32
  }
  func.func @transform_1(%arg0: i32) -> (i32, i32) {
    %c0_i32 = arith.constant 0 : i32
    %c0_i32_0 = arith.constant 0 : i32
    %c0_i32_1 = arith.constant 0 : i32
    return %c0_i32, %c0_i32_0 : i32, i32
  }
  func.func @transform_2(%arg0: i32) -> (i32, i32) {
    %c0_i32 = arith.constant 0 : i32
    %c0_i32_0 = arith.constant 0 : i32
    %c0_i32_1 = arith.constant 0 : i32
    return %c0_i32, %c0_i32_0 : i32, i32
  }
  func.func @transform_3(%arg0: i32) -> (i32, i32) {
    %c0_i32 = arith.constant 0 : i32
    %c0_i32_0 = arith.constant 0 : i32
    return %arg0, %c0_i32 : i32, i32
  }
}

module attributes {stable_mosaic.version = 11 : i64} {
  func.func @_conv3_dense_kernel(%arg0: i32, %arg1: memref<288x576xbf16, #tpu.memory_space<vmem>>, %arg2: memref<576x64xbf16, #tpu.memory_space<vmem>>, %arg3: memref<1x64xf32, #tpu.memory_space<vmem>>, %arg4: memref<576x128xbf16, #tpu.memory_space<vmem>>, %arg5: memref<1x128xf32, #tpu.memory_space<vmem>>, %arg6: memref<128x128xbf16, #tpu.memory_space<vmem>>, %arg7: memref<1x128xf32, #tpu.memory_space<vmem>>, %arg8: memref<8x128xf32, #tpu.memory_space<vmem>>) attributes {dimension_semantics = [#tpu.dimension_semantics<parallel>], iteration_bounds = array<i64: 1>, scalar_prefetch = 0 : i64, scratch_operands = 0 : i64, tpu.core_type = #tpu.core_type<tc>, window_params = [{transform_indices = @transform_0, window_bounds = array<i64: 288, 576>}, {pipeline_mode = #tpu.pipeline_mode<synchronous>, transform_indices = @transform_1, window_bounds = array<i64: 576, 64>}, {pipeline_mode = #tpu.pipeline_mode<synchronous>, transform_indices = @transform_2, window_bounds = array<i64: 1, 64>}, {pipeline_mode = #tpu.pipeline_mode<synchronous>, transform_indices = @transform_3, window_bounds = array<i64: 576, 128>}, {pipeline_mode = #tpu.pipeline_mode<synchronous>, transform_indices = @transform_4, window_bounds = array<i64: 1, 128>}, {pipeline_mode = #tpu.pipeline_mode<synchronous>, transform_indices = @transform_5, window_bounds = array<i64: 128, 128>}, {pipeline_mode = #tpu.pipeline_mode<synchronous>, transform_indices = @transform_6, window_bounds = array<i64: 1, 128>}, {transform_indices = @transform_7, window_bounds = array<i64: 8, 128>}]} {
    %c0 = arith.constant 0 : index
    %c0_0 = arith.constant 0 : index
    %0 = vector.load %arg1[%c0, %c0_0] : memref<288x576xbf16, #tpu.memory_space<vmem>>, vector<288x576xbf16>
    %c0_1 = arith.constant 0 : index
    %c0_2 = arith.constant 0 : index
    %1 = vector.load %arg2[%c0_1, %c0_2] : memref<576x64xbf16, #tpu.memory_space<vmem>>, vector<576x64xbf16>
    %cst = arith.constant dense<0.000000e+00> : vector<288x64xf32>
    %2 = tpu.matmul %0, %1, %cst {dimension_numbers = #tpu.dot_dimension_numbers<[1], [0], [0], [1], [0, 0, 1, 1], [], []>} : vector<288x576xbf16>, vector<576x64xbf16>, vector<288x64xf32> -> vector<288x64xf32>
    %3 = vector.extract_strided_slice %2 {offsets = [0, 0], sizes = [72, 64], strides = [1, 1]} : vector<288x64xf32> to vector<72x64xf32>
    %4 = vector.extract_strided_slice %2 {offsets = [72, 0], sizes = [72, 64], strides = [1, 1]} : vector<288x64xf32> to vector<72x64xf32>
    %5 = arith.maximumf %3, %4 : vector<72x64xf32>
    %6 = vector.extract_strided_slice %2 {offsets = [144, 0], sizes = [72, 64], strides = [1, 1]} : vector<288x64xf32> to vector<72x64xf32>
    %7 = vector.extract_strided_slice %2 {offsets = [216, 0], sizes = [72, 64], strides = [1, 1]} : vector<288x64xf32> to vector<72x64xf32>
    %8 = arith.maximumf %6, %7 : vector<72x64xf32>
    %9 = arith.maximumf %5, %8 : vector<72x64xf32>
    %c0_3 = arith.constant 0 : index
    %c0_4 = arith.constant 0 : index
    %10 = vector.load %arg3[%c0_3, %c0_4] : memref<1x64xf32, #tpu.memory_space<vmem>>, vector<1x64xf32>
    %11 = vector.broadcast %10 : vector<1x64xf32> to vector<72x64xf32>
    %12 = arith.addf %9, %11 : vector<72x64xf32>
    %cst_5 = arith.constant 0.000000e+00 : f32
    %13 = vector.broadcast %cst_5 : f32 to vector<72x64xf32>
    %14 = arith.maximumf %12, %13 : vector<72x64xf32>
    %15 = vector.extract_strided_slice %14 {offsets = [0, 0], sizes = [8, 64], strides = [1, 1]} : vector<72x64xf32> to vector<8x64xf32>
    %16 = vector.extract_strided_slice %14 {offsets = [8, 0], sizes = [8, 64], strides = [1, 1]} : vector<72x64xf32> to vector<8x64xf32>
    %17 = vector.extract_strided_slice %14 {offsets = [16, 0], sizes = [8, 64], strides = [1, 1]} : vector<72x64xf32> to vector<8x64xf32>
    %18 = vector.extract_strided_slice %14 {offsets = [24, 0], sizes = [8, 64], strides = [1, 1]} : vector<72x64xf32> to vector<8x64xf32>
    %19 = vector.extract_strided_slice %14 {offsets = [32, 0], sizes = [8, 64], strides = [1, 1]} : vector<72x64xf32> to vector<8x64xf32>
    %20 = vector.extract_strided_slice %14 {offsets = [40, 0], sizes = [8, 64], strides = [1, 1]} : vector<72x64xf32> to vector<8x64xf32>
    %21 = vector.extract_strided_slice %14 {offsets = [48, 0], sizes = [8, 64], strides = [1, 1]} : vector<72x64xf32> to vector<8x64xf32>
    %22 = vector.extract_strided_slice %14 {offsets = [56, 0], sizes = [8, 64], strides = [1, 1]} : vector<72x64xf32> to vector<8x64xf32>
    %23 = vector.extract_strided_slice %14 {offsets = [64, 0], sizes = [8, 64], strides = [1, 1]} : vector<72x64xf32> to vector<8x64xf32>
    %24 = tpu.concatenate %15, %16, %17, %18, %19, %20, %21, %22, %23 in 1 : vector<8x64xf32>, vector<8x64xf32>, vector<8x64xf32>, vector<8x64xf32>, vector<8x64xf32>, vector<8x64xf32>, vector<8x64xf32>, vector<8x64xf32>, vector<8x64xf32> -> vector<8x576xf32>
    %25 = arith.truncf %24 : vector<8x576xf32> to vector<8x576xbf16>
    %c0_6 = arith.constant 0 : index
    %c0_7 = arith.constant 0 : index
    %26 = vector.load %arg4[%c0_6, %c0_7] : memref<576x128xbf16, #tpu.memory_space<vmem>>, vector<576x128xbf16>
    %cst_8 = arith.constant dense<0.000000e+00> : vector<8x128xf32>
    %27 = tpu.matmul %25, %26, %cst_8 {dimension_numbers = #tpu.dot_dimension_numbers<[1], [0], [0], [1], [0, 0, 1, 1], [], []>} : vector<8x576xbf16>, vector<576x128xbf16>, vector<8x128xf32> -> vector<8x128xf32>
    %c0_9 = arith.constant 0 : index
    %c0_10 = arith.constant 0 : index
    %28 = vector.load %arg5[%c0_9, %c0_10] : memref<1x128xf32, #tpu.memory_space<vmem>>, vector<1x128xf32>
    %29 = vector.broadcast %28 : vector<1x128xf32> to vector<8x128xf32>
    %30 = arith.addf %27, %29 : vector<8x128xf32>
    %cst_11 = arith.constant 0.000000e+00 : f32
    %31 = vector.broadcast %cst_11 : f32 to vector<8x128xf32>
    %32 = arith.maximumf %30, %31 : vector<8x128xf32>
    %33 = arith.truncf %32 : vector<8x128xf32> to vector<8x128xbf16>
    %c0_12 = arith.constant 0 : index
    %c0_13 = arith.constant 0 : index
    %34 = vector.load %arg6[%c0_12, %c0_13] : memref<128x128xbf16, #tpu.memory_space<vmem>>, vector<128x128xbf16>
    %cst_14 = arith.constant dense<0.000000e+00> : vector<8x128xf32>
    %35 = tpu.matmul %33, %34, %cst_14 {dimension_numbers = #tpu.dot_dimension_numbers<[1], [0], [0], [1], [0, 0, 1, 1], [], []>} : vector<8x128xbf16>, vector<128x128xbf16>, vector<8x128xf32> -> vector<8x128xf32>
    %c0_15 = arith.constant 0 : index
    %c0_16 = arith.constant 0 : index
    %36 = vector.load %arg7[%c0_15, %c0_16] : memref<1x128xf32, #tpu.memory_space<vmem>>, vector<1x128xf32>
    %37 = vector.broadcast %36 : vector<1x128xf32> to vector<8x128xf32>
    %38 = arith.addf %35, %37 : vector<8x128xf32>
    %c0_17 = arith.constant 0 : index
    %c0_18 = arith.constant 0 : index
    %39 = vector.load %arg8[%c0_17, %c0_18] : memref<8x128xf32, #tpu.memory_space<vmem>>, vector<8x128xf32>
    tpu.vector_store %arg8[%c0_17, %c0_18], %38 {strides = array<i32>} : memref<8x128xf32, #tpu.memory_space<vmem>>, vector<8x128xf32>,
    return
  }
  func.func @transform_0(%arg0: i32) -> (i32, i32) {
    %c0_i32 = arith.constant 0 : i32
    %c0_i32_0 = arith.constant 0 : i32
    return %arg0, %c0_i32 : i32, i32
  }
  func.func @transform_1(%arg0: i32) -> (i32, i32) {
    %c0_i32 = arith.constant 0 : i32
    %c0_i32_0 = arith.constant 0 : i32
    %c0_i32_1 = arith.constant 0 : i32
    return %c0_i32, %c0_i32_0 : i32, i32
  }
  func.func @transform_2(%arg0: i32) -> (i32, i32) {
    %c0_i32 = arith.constant 0 : i32
    %c0_i32_0 = arith.constant 0 : i32
    %c0_i32_1 = arith.constant 0 : i32
    return %c0_i32, %c0_i32_0 : i32, i32
  }
  func.func @transform_3(%arg0: i32) -> (i32, i32) {
    %c0_i32 = arith.constant 0 : i32
    %c0_i32_0 = arith.constant 0 : i32
    %c0_i32_1 = arith.constant 0 : i32
    return %c0_i32, %c0_i32_0 : i32, i32
  }
  func.func @transform_4(%arg0: i32) -> (i32, i32) {
    %c0_i32 = arith.constant 0 : i32
    %c0_i32_0 = arith.constant 0 : i32
    %c0_i32_1 = arith.constant 0 : i32
    return %c0_i32, %c0_i32_0 : i32, i32
  }
  func.func @transform_5(%arg0: i32) -> (i32, i32) {
    %c0_i32 = arith.constant 0 : i32
    %c0_i32_0 = arith.constant 0 : i32
    %c0_i32_1 = arith.constant 0 : i32
    return %c0_i32, %c0_i32_0 : i32, i32
  }
  func.func @transform_6(%arg0: i32) -> (i32, i32) {
    %c0_i32 = arith.constant 0 : i32
    %c0_i32_0 = arith.constant 0 : i32
    %c0_i32_1 = arith.constant 0 : i32
    return %c0_i32, %c0_i32_0 : i32, i32
  }
  func.func @transform_7(%arg0: i32) -> (i32, i32) {
    %c0_i32 = arith.constant 0 : i32
    %c0_i32_0 = arith.constant 0 : i32
    return %arg0, %c0_i32 : i32, i32
  }
}

</mosaic_0001>

<bundles_post_ra>
// kernel: net_forward.3
= control target key start
LH: loop header
LB: loop body
LE: loop exit
PB: predicated region body
PF: predicated region fallthrough
CT: control target
= control target key end

     0   :  { %s1902_s12 = smov 0   ;;  %s2165_s0 = inlined_call_operand.vmem [shape: bf16[5120,27], index: 0, kind: input, shape index: {}]   ;;  %s2166_s1 = inlined_call_operand.vmem [shape: bf16[27,32], index: 1, kind: input, shape index: {}]   ;;  %s2167_s2 = inlined_call_operand.vmem [shape: f32[1,32], index: 2, kind: input, shape index: {}]   ;;  %s2168_s3 = inlined_call_operand.vmem [shape: bf16[1280,32], index: 3, kind: output, shape index: {}]  }
   0x1 LB: > { %s1452_s13 = sadd.s32 4294967295, %s1879_s12   ;;  %p1456_p0 = scmp.ge.s32.totalorder %s1879_s12, 1  ;;  %s1879_s12 = sphi %s1902_s12, %s13_s12  }
   0x2   : > { %p138_p1 = scmp.lt.s32.totalorder %s1879_s12, 6 }
   0x4   : > { %p139_p2 = pnand %p1456_p0, %p138_p1 }
   0x5   : > { %s1457_s18 = sshll.u32 (!%p139_p2), %s1452_s13, 7  ;;  %s1459_s25 = sshll.u32 (!%p139_p2), %s1452_s13, 5 }
   0x6   : > { %142 = sbr.rel (%p139_p2) target bundleno = 416 (0x1a0), region = 32  ;;  %p163_p3 = scmp.lt.s32.totalorder (!%p139_p2), %s1457_s18, 639 }
   0x7   : > { %p169_p4 = scmp.lt.s32.totalorder (!%p139_p2), %s1459_s25, 159 }
   0xb   : > { %v1723_v0 = vld [vmem:[%s2166_s1 + $0x8] sm:$0xf]  ;;  %v1856_v1 = vld [vmem:[%s2166_s1 + $0x8] sm:$0x30]  ;;  %vm831_vm0 = vcmask 1044480   ;;  %vm832_vm1 = vcmask 1045504  }
   0xc   : > { %v1724_v2 = vor.u32 %v1856_v1, %v1723_v0  ;;  %v1881_v3 = vmov 65535   ;;  %s2170_s18 = smov (!%p163_p3, %s1457_s18), 639  ;;  %v1855_v7 = vld [vmem:[%s2166_s1] sm:$0xff]  ;;  %vm638_vm2 = vcmask 220160   ;;  %s2172_s25 = smov (!%p169_p4, %s1459_s25), 159  ;;  %vm1363_vm3 = vcmask 257024  }
   0xd   : > { %v833_v4 = vsel %vm831_vm0, 4294967295, %v1881_v3  ;;  %s1458_s21 = sshll.u32 %s2170_s18, 2  ;;  %v2003_v50 = vld [vmem:[%s2167_s2] ss:$0 sm:$0xff]  ;;  %s1460_s28 = sshll.u32 %s2172_s25, 2 }
   0xe   : > { %v834_v5 = vsel %vm832_vm1, %v833_v4, 0  ;;  %s1924_s24 = scalar_lea.vmem %s2165_s0, %s1458_s21  ;;  %s2009_s4 = scalar_lea.vmem %s2168_s3, %s1460_s28 }
   0xf   : > { %v836_v6 = vand.u32 %v1724_v2, %v834_v5  ;;  %v1791_v8 = vld [vmem:[%s1924_s24] sm:$0xff]  ;;  %v1792_v12 = vld [vmem:[%s1924_s24 + $0x8] sm:$0xff]  ;;  %v1793_v16 = vld [vmem:[%s1924_s24 + $0x10] sm:$0xff] }
  0x10   : > { %v1807_v9 = vld [vmem:[%s1924_s24 + $0x80] sm:$0xff]  ;;  %v1808_v13 = vld [vmem:[%s1924_s24 + $0x88] sm:$0xff]  ;;  %v1809_v17 = vld [vmem:[%s1924_s24 + $0x90] sm:$0xff] }
  0x11   : > { %844 = vmatpush.bf16.msra.mxu0 %v836_v6  ;;  %1857 = vmatpush.bf16.msra.mxu1 %v836_v6  ;;  %v1823_v10 = vld [vmem:[%s1924_s24 + $0x100] sm:$0xff]  ;;  %v1824_v14 = vld [vmem:[%s1924_s24 + $0x108] sm:$0xff]  ;;  %v1825_v18 = vld [vmem:[%s1924_s24 + $0x110] sm:$0xff] }
  0x12   : > { %1858 = vmatpush.bf16.msra.mxu2 %v836_v6  ;;  %1859 = vmatpush.bf16.msra.mxu3 %v836_v6  ;;  %v1839_v11 = vld [vmem:[%s1924_s24 + $0x180] sm:$0xff]  ;;  %v1840_v15 = vld [vmem:[%s1924_s24 + $0x188] sm:$0xff]  ;;  %v1841_v19 = vld [vmem:[%s1924_s24 + $0x190] sm:$0xff] }
  0x13   : > { %v1794_v20 = vld [vmem:[%s1924_s24 + $0x18] sm:$0xff]  ;;  %v1795_v24 = vld [vmem:[%s1924_s24 + $0x20] sm:$0xff]  ;;  %v1796_v28 = vld [vmem:[%s1924_s24 + $0x28] sm:$0xff] }
  0x14   : > { %v1810_v21 = vld [vmem:[%s1924_s24 + $0x98] sm:$0xff]  ;;  %v1811_v25 = vld [vmem:[%s1924_s24 + $0xa0] sm:$0xff]  ;;  %v1812_v29 = vld [vmem:[%s1924_s24 + $0xa8] sm:$0xff] }
  0x15   : > { %845 = vmatpush.bf16.msra.mxu0 %v1855_v7  ;;  %1860 = vmatpush.bf16.msra.mxu1 %v1855_v7  ;;  %v1826_v22 = vld [vmem:[%s1924_s24 + $0x118] sm:$0xff]  ;;  %v1827_v26 = vld [vmem:[%s1924_s24 + $0x120] sm:$0xff]  ;;  %v1828_v30 = vld [vmem:[%s1924_s24 + $0x128] sm:$0xff] }
  0x16   : > { %1861 = vmatpush.bf16.msra.mxu2 %v1855_v7  ;;  %1862 = vmatpush.bf16.msra.mxu3 %v1855_v7  ;;  %v1842_v23 = vld [vmem:[%s1924_s24 + $0x198] sm:$0xff]  ;;  %v1843_v27 = vld [vmem:[%s1924_s24 + $0x1a0] sm:$0xff]  ;;  %v1844_v31 = vld [vmem:[%s1924_s24 + $0x1a8] sm:$0xff] }
  0x17   : > { %v1797_v32 = vld [vmem:[%s1924_s24 + $0x30] sm:$0xff]  ;;  %v1798_v36 = vld [vmem:[%s1924_s24 + $0x38] sm:$0xff]  ;;  %v1799_v40 = vld [vmem:[%s1924_s24 + $0x40] sm:$0xff] }
  0x18   : > { %1725 = vmatmul.msk.bf16.vlgmr.msra.gmra.mxu0 %vm638_vm2, %v1791_v8  ;;  %1741 = vmatmul.msk.bf16.vlgmr.msra.gmra.mxu1 %vm638_vm2, %v1807_v9  ;;  %v1813_v33 = vld [vmem:[%s1924_s24 + $0xb0] sm:$0xff]  ;;  %v1814_v37 = vld [vmem:[%s1924_s24 + $0xb8] sm:$0xff]  ;;  %v1815_v41 = vld [vmem:[%s1924_s24 + $0xc0] sm:$0xff] }
  0x19   : > { %1757 = vmatmul.msk.bf16.vlgmr.msra.gmra.mxu2 %vm638_vm2, %v1823_v10  ;;  %1773 = vmatmul.msk.bf16.vlgmr.msra.gmra.mxu3 %vm638_vm2, %v1839_v11  ;;  %v1829_v34 = vld [vmem:[%s1924_s24 + $0x130] sm:$0xff]  ;;  %v1830_v38 = vld [vmem:[%s1924_s24 + $0x138] sm:$0xff]  ;;  %v1831_v44 = vld [vmem:[%s1924_s24 + $0x140] sm:$0xff] }
  0x1a   : > { %v1845_v35 = vld [vmem:[%s1924_s24 + $0x1b0] sm:$0xff]  ;;  %v1846_v39 = vld [vmem:[%s1924_s24 + $0x1b8] sm:$0xff]  ;;  %v1847_v45 = vld [vmem:[%s1924_s24 + $0x1c0] sm:$0xff] }
  0x1b   : > { %v1800_v58 = vld [vmem:[%s1924_s24 + $0x48] sm:$0xff] }
  0x1c   : > { %v1816_v59 = vld [vmem:[%s1924_s24 + $0xc8] sm:$0xff] }
  0x1d   : > { %v1832_v1 = vld [vmem:[%s1924_s24 + $0x148] sm:$0xff] }
  0x1e   : > { %v1848_v2 = vld [vmem:[%s1924_s24 + $0x1c8] sm:$0xff] }
  0x28   : > { %1726 = vmatmul.msk.bf16.gmra.mxu0 %vm638_vm2, %v1792_v12  ;;  %1742 = vmatmul.msk.bf16.gmra.mxu1 %vm638_vm2, %v1808_v13 }
  0x29   : > { %1758 = vmatmul.msk.bf16.gmra.mxu2 %vm638_vm2, %v1824_v14  ;;  %1774 = vmatmul.msk.bf16.gmra.mxu3 %vm638_vm2, %v1840_v15 }
  0x38   : > { %1727 = vmatmul.msk.bf16.gmra.mxu0 %vm638_vm2, %v1793_v16  ;;  %1743 = vmatmul.msk.bf16.gmra.mxu1 %vm638_vm2, %v1809_v17 }
  0x39   : > { %1759 = vmatmul.msk.bf16.gmra.mxu2 %vm638_vm2, %v1825_v18  ;;  %1775 = vmatmul.msk.bf16.gmra.mxu3 %vm638_vm2, %v1841_v19  ;;  %v1801_v18 = vld [vmem:[%s1924_s24 + $0x50] sm:$0xff] }
  0x3a   : > { %v1817_v19 = vld [vmem:[%s1924_s24 + $0xd0] sm:$0xff] }
  0x48   : > { %1728 = vmatmul.msk.bf16.gmra.mxu0 %vm638_vm2, %v1794_v20  ;;  %1744 = vmatmul.msk.bf16.gmra.mxu1 %vm638_vm2, %v1810_v21 }
  0x49   : > { %1760 = vmatmul.msk.bf16.gmra.mxu2 %vm638_vm2, %v1826_v22  ;;  %1776 = vmatmul.msk.bf16.gmra.mxu3 %vm638_vm2, %v1842_v23 }
  0x58   : > { %1729 = vmatmul.msk.bf16.gmra.mxu0 %vm638_vm2, %v1795_v24  ;;  %1745 = vmatmul.msk.bf16.gmra.mxu1 %vm638_vm2, %v1811_v25  ;;  %v1833_v25 = vld [vmem:[%s1924_s24 + $0x150] sm:$0xff] }
  0x59   : > { %1761 = vmatmul.msk.bf16.gmra.mxu2 %vm638_vm2, %v1827_v26  ;;  %1777 = vmatmul.msk.bf16.gmra.mxu3 %vm638_vm2, %v1843_v27  ;;  %v1849_v26 = vld [vmem:[%s1924_s24 + $0x1d0] sm:$0xff] }
  0x68   : > { %1730 = vmatmul.msk.bf16.gmra.mxu0 %vm638_vm2, %v1796_v28  ;;  %1746 = vmatmul.msk.bf16.gmra.mxu1 %vm638_vm2, %v1812_v29 }
  0x69   : > { %1762 = vmatmul.msk.bf16.gmra.mxu2 %vm638_vm2, %v1828_v30  ;;  %1778 = vmatmul.msk.bf16.gmra.mxu3 %vm638_vm2, %v1844_v31 }
  0x78   : > { %1731 = vmatmul.msk.bf16.gmra.mxu0 %vm638_vm2, %v1797_v32  ;;  %1747 = vmatmul.msk.bf16.gmra.mxu1 %vm638_vm2, %v1813_v33 }
  0x79   : > { %1763 = vmatmul.msk.bf16.gmra.mxu2 %vm638_vm2, %v1829_v34  ;;  %1779 = vmatmul.msk.bf16.gmra.mxu3 %vm638_vm2, %v1845_v35 }
  0x88   : > { %1732 = vmatmul.msk.bf16.gmra.mxu0 %vm638_vm2, %v1798_v36  ;;  %1748 = vmatmul.msk.bf16.gmra.mxu1 %vm638_vm2, %v1814_v37 }
  0x89   : > { %1764 = vmatmul.msk.bf16.gmra.mxu2 %vm638_vm2, %v1830_v38  ;;  %1780 = vmatmul.msk.bf16.gmra.mxu3 %vm638_vm2, %v1846_v39 }
  0x95   : > { %v847_v42 = vpop.f32.mrf.mxu0  ;;  %v927_v43 = vpop.f32.mrf.mxu1 }
  0x96   : > { %v1167_v46 = vmax.f32 %v847_v42, %v927_v43  ;;  %v1802_v42 = vld [vmem:[%s1924_s24 + $0x58] sm:$0xff] }
  0x97   : > { %v1818_v43 = vld [vmem:[%s1924_s24 + $0xd8] sm:$0xff] }
  0x98   : > { %1733 = vmatmul.msk.bf16.gmra.mxu0 %vm638_vm2, %v1799_v40  ;;  %1749 = vmatmul.msk.bf16.gmra.mxu1 %vm638_vm2, %v1815_v41 }
  0x99   : > { %1765 = vmatmul.msk.bf16.gmra.mxu2 %vm638_vm2, %v1831_v44  ;;  %1781 = vmatmul.msk.bf16.gmra.mxu3 %vm638_vm2, %v1847_v45 }
  0x9c   : > { %v1007_v47 = vpop.f32.mrf.mxu2  ;;  %v1087_v48 = vpop.f32.mrf.mxu3 }
  0x9d   : > { %v1199_v49 = vmax.f32 %v1007_v47, %v1087_v48  ;;  %v849_v51 = vpop.f32.mrf.mxu0  ;;  %v929_v52 = vpop.f32.mrf.mxu1 }
  0x9e   : > { %v1168_v61 = vmax.f32 %v849_v51, %v929_v52  ;;  %v1850_v51 = vld [vmem:[%s1924_s24 + $0x1d8] sm:$0xff] }
  0x9f   : > { %v1231_v53 = vmax.f32 %v1167_v46, %v1199_v49  ;;  %v1834_v49 = vld [vmem:[%s1924_s24 + $0x158] sm:$0xff] }
  0xa1   : > { %v1267_v54 = vadd.f32 %v2003_v50, %v1231_v53 }
  0xa3   : > { %v1299_v55 = vmax.f32 %v1267_v54, 0.0 }
  0xa4   : > { %v1009_v56 = vpop.f32.mrf.mxu2  ;;  %v1089_v57 = vpop.f32.mrf.mxu3 }
  0xa5   : > { %v1331_v60 = vpack.c.bf16 %v1299_v55, %v1299_v55  ;;  %v1200_v62 = vmax.f32 %v1009_v56, %v1089_v57  ;;  %v852_v63 = vpop.f32.mrf.mxu0  ;;  %v932_v0 = vpop.f32.mrf.mxu1 }
  0xa6   : > { %v1169_v6 = vmax.f32 %v852_v63, %v932_v0 }
  0xa7   : > { %1364 = vst.msk [vmem:[%s2009_s4] sm:$0xf] %vm1363_vm3, %v1331_v60  ;;  %v1232_v3 = vmax.f32 %v1168_v61, %v1200_v62 }
  0xa8   : > { %1734 = vmatmul.msk.bf16.gmra.mxu0 %vm638_vm2, %v1800_v58  ;;  %1750 = vmatmul.msk.bf16.gmra.mxu1 %vm638_vm2, %v1816_v59 }
  0xa9   : > { %v1268_v4 = vadd.f32 %v2003_v50, %v1232_v3  ;;  %1766 = vmatmul.msk.bf16.gmra.mxu2 %vm638_vm2, %v1832_v1  ;;  %1782 = vmatmul.msk.bf16.gmra.mxu3 %vm638_vm2, %v1848_v2  ;;  %v1803_v3 = vld [vmem:[%s1924_s24 + $0x60] sm:$0xff] }
  0xab   : > { %v1300_v5 = vmax.f32 %v1268_v4, 0.0  ;;  %v1819_v4 = vld [vmem:[%s1924_s24 + $0xe0] sm:$0xff] }
  0xac   : > { %v1012_v7 = vpop.f32.mrf.mxu2  ;;  %v1092_v8 = vpop.f32.mrf.mxu3 }
  0xad   : > { %v1332_v9 = vpack.c.bf16 %v1300_v5, %v1300_v5  ;;  %v1201_v10 = vmax.f32 %v1012_v7, %v1092_v8  ;;  %v854_v11 = vpop.f32.mrf.mxu0  ;;  %v934_v12 = vpop.f32.mrf.mxu1 }
  0xae   : > { %v1170_v21 = vmax.f32 %v854_v11, %v934_v12  ;;  %v1851_v11 = vld [vmem:[%s1924_s24 + $0x1e0] sm:$0xff] }
  0xaf   : > { %1365 = vst.msk [vmem:[%s2009_s4 + $0x4] sm:$0xf] %vm1363_vm3, %v1332_v9  ;;  %v1233_v13 = vmax.f32 %v1169_v6, %v1201_v10  ;;  %v1835_v10 = vld [vmem:[%s1924_s24 + $0x160] sm:$0xff] }
  0xb1   : > { %v1269_v14 = vadd.f32 %v2003_v50, %v1233_v13 }
  0xb3   : > { %v1301_v15 = vmax.f32 %v1269_v14, 0.0 }
  0xb4   : > { %v1014_v16 = vpop.f32.mrf.mxu2  ;;  %v1094_v17 = vpop.f32.mrf.mxu3 }
  0xb5   : > { %v1333_v20 = vpack.c.bf16 %v1301_v15, %v1301_v15  ;;  %v1202_v22 = vmax.f32 %v1014_v16, %v1094_v17  ;;  %v857_v23 = vpop.f32.mrf.mxu0  ;;  %v937_v24 = vpop.f32.mrf.mxu1 }
  0xb6   : > { %v1171_v30 = vmax.f32 %v857_v23, %v937_v24 }
  0xb7   : > { %1366 = vst.msk [vmem:[%s2009_s4 + $0x8] sm:$0xf] %vm1363_vm3, %v1333_v20  ;;  %v1234_v27 = vmax.f32 %v1170_v21, %v1202_v22 }
  0xb8   : > { %1735 = vmatmul.msk.bf16.gmra.mxu0 %vm638_vm2, %v1801_v18  ;;  %1751 = vmatmul.msk.bf16.gmra.mxu1 %vm638_vm2, %v1817_v19 }
  0xb9   : > { %v1270_v28 = vadd.f32 %v2003_v50, %v1234_v27  ;;  %1767 = vmatmul.msk.bf16.gmra.mxu2 %vm638_vm2, %v1833_v25  ;;  %1783 = vmatmul.msk.bf16.gmra.mxu3 %vm638_vm2, %v1849_v26  ;;  %v1804_v27 = vld [vmem:[%s1924_s24 + $0x68] sm:$0xff] }
  0xbb   : > { %v1302_v29 = vmax.f32 %v1270_v28, 0.0  ;;  %v1820_v28 = vld [vmem:[%s1924_s24 + $0xe8] sm:$0xff] }
  0xbc   : > { %v1017_v31 = vpop.f32.mrf.mxu2  ;;  %v1097_v32 = vpop.f32.mrf.mxu3 }
  0xbd   : > { %v1334_v33 = vpack.c.bf16 %v1302_v29, %v1302_v29  ;;  %v1203_v34 = vmax.f32 %v1017_v31, %v1097_v32  ;;  %v859_v35 = vpop.f32.mrf.mxu0  ;;  %v939_v36 = vpop.f32.mrf.mxu1 }
  0xbe   : > { %v1172_v45 = vmax.f32 %v859_v35, %v939_v36  ;;  %v1852_v35 = vld [vmem:[%s1924_s24 + $0x1e8] sm:$0xff] }
  0xbf   : > { %1367 = vst.msk [vmem:[%s2009_s4 + $0xc] sm:$0xf] %vm1363_vm3, %v1334_v33  ;;  %v1235_v37 = vmax.f32 %v1171_v30, %v1203_v34  ;;  %v1836_v34 = vld [vmem:[%s1924_s24 + $0x168] sm:$0xff] }
  0xc1   : > { %v1271_v38 = vadd.f32 %v2003_v50, %v1235_v37 }
  0xc3   : > { %v1303_v39 = vmax.f32 %v1271_v38, 0.0 }
  0xc4   : > { %v1019_v40 = vpop.f32.mrf.mxu2  ;;  %v1099_v41 = vpop.f32.mrf.mxu3 }
  0xc5   : > { %v1335_v44 = vpack.c.bf16 %v1303_v39, %v1303_v39  ;;  %v1204_v46 = vmax.f32 %v1019_v40, %v1099_v41  ;;  %v862_v47 = vpop.f32.mrf.mxu0  ;;  %v942_v48 = vpop.f32.mrf.mxu1 }
  0xc6   : > { %v1173_v55 = vmax.f32 %v862_v47, %v942_v48 }
  0xc7   : > { %1368 = vst.msk [vmem:[%s2009_s4 + $0x10] sm:$0xf] %vm1363_vm3, %v1335_v44  ;;  %v1236_v52 = vmax.f32 %v1172_v45, %v1204_v46 }
  0xc8   : > { %1736 = vmatmul.msk.bf16.gmra.mxu0 %vm638_vm2, %v1802_v42  ;;  %1752 = vmatmul.msk.bf16.gmra.mxu1 %vm638_vm2, %v1818_v43 }
  0xc9   : > { %v1272_v53 = vadd.f32 %v2003_v50, %v1236_v52  ;;  %1768 = vmatmul.msk.bf16.gmra.mxu2 %vm638_vm2, %v1834_v49  ;;  %1784 = vmatmul.msk.bf16.gmra.mxu3 %vm638_vm2, %v1850_v51  ;;  %v1805_v52 = vld [vmem:[%s1924_s24 + $0x70] sm:$0xff] }
  0xcb   : > { %v1304_v54 = vmax.f32 %v1272_v53, 0.0  ;;  %v1821_v53 = vld [vmem:[%s1924_s24 + $0xf0] sm:$0xff] }
  0xcc   : > { %v1022_v56 = vpop.f32.mrf.mxu2  ;;  %v1102_v57 = vpop.f32.mrf.mxu3 }
  0xcd   : > { %v1336_v58 = vpack.c.bf16 %v1304_v54, %v1304_v54  ;;  %v1205_v59 = vmax.f32 %v1022_v56, %v1102_v57  ;;  %v864_v60 = vpop.f32.mrf.mxu0  ;;  %v944_v61 = vpop.f32.mrf.mxu1 }
  0xce   : > { %v1174_v6 = vmax.f32 %v864_v60, %v944_v61  ;;  %v1853_v60 = vld [vmem:[%s1924_s24 + $0x1f0] sm:$0xff] }
  0xcf   : > { %1369 = vst.msk [vmem:[%s2009_s4 + $0x14] sm:$0xf] %vm1363_vm3, %v1336_v58  ;;  %v1237_v62 = vmax.f32 %v1173_v55, %v1205_v59  ;;  %v1837_v59 = vld [vmem:[%s1924_s24 + $0x170] sm:$0xff] }
  0xd1   : > { %v1273_v63 = vadd.f32 %v2003_v50, %v1237_v62 }
  0xd3   : > { %v1305_v0 = vmax.f32 %v1273_v63, 0.0 }
  0xd4   : > { %v1024_v1 = vpop.f32.mrf.mxu2  ;;  %v1104_v2 = vpop.f32.mrf.mxu3 }
  0xd5   : > { %v1337_v5 = vpack.c.bf16 %v1305_v0, %v1305_v0  ;;  %v1206_v7 = vmax.f32 %v1024_v1, %v1104_v2  ;;  %v867_v8 = vpop.f32.mrf.mxu0  ;;  %v947_v9 = vpop.f32.mrf.mxu1 }
  0xd6   : > { %v1175_v15 = vmax.f32 %v867_v8, %v947_v9 }
  0xd7   : > { %1370 = vst.msk [vmem:[%s2009_s4 + $0x18] sm:$0xf] %vm1363_vm3, %v1337_v5  ;;  %v1238_v12 = vmax.f32 %v1174_v6, %v1206_v7 }
  0xd8   : > { %1737 = vmatmul.msk.bf16.gmra.mxu0 %vm638_vm2, %v1803_v3  ;;  %1753 = vmatmul.msk.bf16.gmra.mxu1 %vm638_vm2, %v1819_v4 }
  0xd9   : > { %v1274_v13 = vadd.f32 %v2003_v50, %v1238_v12  ;;  %1769 = vmatmul.msk.bf16.gmra.mxu2 %vm638_vm2, %v1835_v10  ;;  %1785 = vmatmul.msk.bf16.gmra.mxu3 %vm638_vm2, %v1851_v11  ;;  %v1806_v12 = vld [vmem:[%s1924_s24 + $0x78] sm:$0xff] }
  0xdb   : > { %v1306_v14 = vmax.f32 %v1274_v13, 0.0  ;;  %v1822_v13 = vld [vmem:[%s1924_s24 + $0xf8] sm:$0xff] }
  0xdc   : > { %v1027_v16 = vpop.f32.mrf.mxu2  ;;  %v1107_v17 = vpop.f32.mrf.mxu3 }
  0xdd   : > { %v1338_v18 = vpack.c.bf16 %v1306_v14, %v1306_v14  ;;  %v1207_v19 = vmax.f32 %v1027_v16, %v1107_v17  ;;  %v869_v20 = vpop.f32.mrf.mxu0  ;;  %v949_v21 = vpop.f32.mrf.mxu1 }
  0xde   : > { %v1176_v30 = vmax.f32 %v869_v20, %v949_v21  ;;  %v1854_v20 = vld [vmem:[%s1924_s24 + $0x1f8] sm:$0xff] }
  0xdf   : > { %1371 = vst.msk [vmem:[%s2009_s4 + $0x1c] sm:$0xf] %vm1363_vm3, %v1338_v18  ;;  %v1239_v22 = vmax.f32 %v1175_v15, %v1207_v19  ;;  %v1838_v19 = vld [vmem:[%s1924_s24 + $0x178] sm:$0xff] }
  0xe1   : > { %v1275_v23 = vadd.f32 %v2003_v50, %v1239_v22 }
  0xe3   : > { %v1307_v24 = vmax.f32 %v1275_v23, 0.0 }
  0xe4   : > { %v1029_v25 = vpop.f32.mrf.mxu2  ;;  %v1109_v26 = vpop.f32.mrf.mxu3 }
  0xe5   : > { %v1339_v29 = vpack.c.bf16 %v1307_v24, %v1307_v24  ;;  %v1208_v31 = vmax.f32 %v1029_v25, %v1109_v26  ;;  %v872_v32 = vpop.f32.mrf.mxu0  ;;  %v952_v33 = vpop.f32.mrf.mxu1 }
  0xe6   : > { %v1177_v39 = vmax.f32 %v872_v32, %v952_v33 }
  0xe7   : > { %1372 = vst.msk [vmem:[%s2009_s4 + $0x20] sm:$0xf] %vm1363_vm3, %v1339_v29  ;;  %v1240_v36 = vmax.f32 %v1176_v30, %v1208_v31 }
  0xe8   : > { %1738 = vmatmul.msk.bf16.gmra.mxu0 %vm638_vm2, %v1804_v27  ;;  %1754 = vmatmul.msk.bf16.gmra.mxu1 %vm638_vm2, %v1820_v28 }
  0xe9   : > { %v1276_v37 = vadd.f32 %v2003_v50, %v1240_v36  ;;  %1770 = vmatmul.msk.bf16.gmra.mxu2 %vm638_vm2, %v1836_v34  ;;  %1786 = vmatmul.msk.bf16.gmra.mxu3 %vm638_vm2, %v1852_v35 }
  0xeb   : > { %v1308_v38 = vmax.f32 %v1276_v37, 0.0 }
  0xec   : > { %v1032_v40 = vpop.f32.mrf.mxu2  ;;  %v1112_v41 = vpop.f32.mrf.mxu3 }
  0xed   : > { %v1340_v42 = vpack.c.bf16 %v1308_v38, %v1308_v38  ;;  %v1209_v43 = vmax.f32 %v1032_v40, %v1112_v41  ;;  %v874_v44 = vpop.f32.mrf.mxu0  ;;  %v954_v45 = vpop.f32.mrf.mxu1 }
  0xee   : > { %v1178_v55 = vmax.f32 %v874_v44, %v954_v45 }
  0xef   : > { %1373 = vst.msk [vmem:[%s2009_s4 + $0x24] sm:$0xf] %vm1363_vm3, %v1340_v42  ;;  %v1241_v46 = vmax.f32 %v1177_v39, %v1209_v43 }
  0xf1   : > { %v1277_v47 = vadd.f32 %v2003_v50, %v1241_v46 }
  0xf3   : > { %v1309_v48 = vmax.f32 %v1277_v47, 0.0 }
  0xf4   : > { %v1034_v49 = vpop.f32.mrf.mxu2  ;;  %v1114_v51 = vpop.f32.mrf.mxu3 }
  0xf5   : > { %v1341_v54 = vpack.c.bf16 %v1309_v48, %v1309_v48  ;;  %v1210_v56 = vmax.f32 %v1034_v49, %v1114_v51  ;;  %v877_v57 = vpop.f32.mrf.mxu0  ;;  %v957_v58 = vpop.f32.mrf.mxu1 }
  0xf6   : > { %v1179_v0 = vmax.f32 %v877_v57, %v957_v58 }
  0xf7   : > { %1374 = vst.msk [vmem:[%s2009_s4 + $0x28] sm:$0xf] %vm1363_vm3, %v1341_v54  ;;  %v1242_v61 = vmax.f32 %v1178_v55, %v1210_v56 }
  0xf8   : > { %1739 = vmatmul.msk.bf16.gmra.mxu0 %vm638_vm2, %v1805_v52  ;;  %1755 = vmatmul.msk.bf16.gmra.mxu1 %vm638_vm2, %v1821_v53 }
  0xf9   : > { %v1278_v62 = vadd.f32 %v2003_v50, %v1242_v61  ;;  %1771 = vmatmul.msk.bf16.gmra.mxu2 %vm638_vm2, %v1837_v59  ;;  %1787 = vmatmul.msk.bf16.gmra.mxu3 %vm638_vm2, %v1853_v60 }
  0xfb   : > { %v1310_v63 = vmax.f32 %v1278_v62, 0.0 }
  0xfc   : > { %v1037_v1 = vpop.f32.mrf.mxu2  ;;  %v1117_v2 = vpop.f32.mrf.mxu3 }
  0xfd   : > { %v1342_v3 = vpack.c.bf16 %v1310_v63, %v1310_v63  ;;  %v1211_v4 = vmax.f32 %v1037_v1, %v1117_v2  ;;  %v879_v5 = vpop.f32.mrf.mxu0  ;;  %v959_v6 = vpop.f32.mrf.mxu1 }
  0xfe   : > { %v1180_v15 = vmax.f32 %v879_v5, %v959_v6 }
  0xff   : > { %1375 = vst.msk [vmem:[%s2009_s4 + $0x2c] sm:$0xf] %vm1363_vm3, %v1342_v3  ;;  %v1243_v7 = vmax.f32 %v1179_v0, %v1211_v4 }
 0x101   : > { %v1279_v8 = vadd.f32 %v2003_v50, %v1243_v7 }
 0x103   : > { %v1311_v9 = vmax.f32 %v1279_v8, 0.0 }
 0x104   : > { %v1039_v10 = vpop.f32.mrf.mxu2  ;;  %v1119_v11 = vpop.f32.mrf.mxu3 }
 0x105   : > { %v1343_v14 = vpack.c.bf16 %v1311_v9, %v1311_v9  ;;  %v1212_v16 = vmax.f32 %v1039_v10, %v1119_v11  ;;  %v882_v17 = vpop.f32.mrf.mxu0  ;;  %v962_v18 = vpop.f32.mrf.mxu1 }
 0x106   : > { %v1181_v24 = vmax.f32 %v882_v17, %v962_v18 }
 0x107   : > { %1376 = vst.msk [vmem:[%s2009_s4 + $0x30] sm:$0xf] %vm1363_vm3, %v1343_v14  ;;  %v1244_v21 = vmax.f32 %v1180_v15, %v1212_v16 }
 0x108   : > { %1740 = vmatmul.msk.bf16.gmra.mxu0 %vm638_vm2, %v1806_v12  ;;  %1756 = vmatmul.msk.bf16.gmra.mxu1 %vm638_vm2, %v1822_v13 }
 0x109   : > { %v1280_v22 = vadd.f32 %v2003_v50, %v1244_v21  ;;  %1772 = vmatmul.msk.bf16.gmra.mxu2 %vm638_vm2, %v1838_v19  ;;  %1788 = vmatmul.msk.bf16.gmra.mxu3 %vm638_vm2, %v1854_v20 }
 0x10b   : > { %v1312_v23 = vmax.f32 %v1280_v22, 0.0 }
 0x10c   : > { %v1042_v25 = vpop.f32.mrf.mxu2  ;;  %v1122_v26 = vpop.f32.mrf.mxu3 }
 0x10d   : > { %v1344_v27 = vpack.c.bf16 %v1312_v23, %v1312_v23  ;;  %v1213_v28 = vmax.f32 %v1042_v25, %v1122_v26  ;;  %v884_v29 = vpop.f32.mrf.mxu0  ;;  %v964_v30 = vpop.f32.mrf.mxu1 }
 0x10e   : > { %v1182_v37 = vmax.f32 %v884_v29, %v964_v30 }
 0x10f   : > { %1377 = vst.msk [vmem:[%s2009_s4 + $0x34] sm:$0xf] %vm1363_vm3, %v1344_v27  ;;  %v1245_v31 = vmax.f32 %v1181_v24, %v1213_v28 }
 0x111   : > { %v1281_v32 = vadd.f32 %v2003_v50, %v1245_v31 }
 0x113   : > { %v1313_v33 = vmax.f32 %v1281_v32, 0.0 }
 0x114   : > { %v1044_v34 = vpop.f32.mrf.mxu2  ;;  %v1124_v35 = vpop.f32.mrf.mxu3 }
 0x115   : > { %v1345_v36 = vpack.c.bf16 %v1313_v33, %v1313_v33  ;;  %v1214_v38 = vmax.f32 %v1044_v34, %v1124_v35  ;;  %v887_v39 = vpop.f32.mrf.mxu0  ;;  %v967_v40 = vpop.f32.mrf.mxu1 }
 0x116   : > { %v1183_v44 = vmax.f32 %v887_v39, %v967_v40 }
 0x117   : > { %1378 = vst.msk [vmem:[%s2009_s4 + $0x38] sm:$0xf] %vm1363_vm3, %v1345_v36  ;;  %v1246_v41 = vmax.f32 %v1182_v37, %v1214_v38 }
 0x119   : > { %v1282_v42 = vadd.f32 %v2003_v50, %v1246_v41 }
 0x11b   : > { %v1314_v43 = vmax.f32 %v1282_v42, 0.0 }
 0x11c   : > { %v1047_v45 = vpop.f32.mrf.mxu2  ;;  %v1127_v46 = vpop.f32.mrf.mxu3 }
 0x11d   : > { %v1346_v47 = vpack.c.bf16 %v1314_v43, %v1314_v43  ;;  %v1215_v48 = vmax.f32 %v1047_v45, %v1127_v46  ;;  %v889_v49 = vpop.f32.mrf.mxu0  ;;  %v969_v51 = vpop.f32.mrf.mxu1 }
 0x11e   : > { %v1184_v58 = vmax.f32 %v889_v49, %v969_v51 }
 0x11f   : > { %1379 = vst.msk [vmem:[%s2009_s4 + $0x3c] sm:$0xf] %vm1363_vm3, %v1346_v47  ;;  %v1247_v52 = vmax.f32 %v1183_v44, %v1215_v48 }
 0x121   : > { %v1283_v53 = vadd.f32 %v2003_v50, %v1247_v52 }
 0x123   : > { %v1315_v54 = vmax.f32 %v1283_v53, 0.0 }
 0x124   : > { %v1049_v55 = vpop.f32.mrf.mxu2  ;;  %v1129_v56 = vpop.f32.mrf.mxu3 }
 0x125   : > { %v1347_v57 = vpack.c.bf16 %v1315_v54, %v1315_v54  ;;  %v1216_v59 = vmax.f32 %v1049_v55, %v1129_v56  ;;  %v892_v60 = vpop.f32.mrf.mxu0  ;;  %v972_v61 = vpop.f32.mrf.mxu1 }
 0x126   : > { %v1185_v1 = vmax.f32 %v892_v60, %v972_v61 }
 0x127   : > { %1380 = vst.msk [vmem:[%s2009_s4 + $0x40] sm:$0xf] %vm1363_vm3, %v1347_v57  ;;  %v1248_v62 = vmax.f32 %v1184_v58, %v1216_v59 }
 0x129   : > { %v1284_v63 = vadd.f32 %v2003_v50, %v1248_v62 }
 0x12b   : > { %v1316_v0 = vmax.f32 %v1284_v63, 0.0 }
 0x12c   : > { %v1052_v2 = vpop.f32.mrf.mxu2  ;;  %v1132_v3 = vpop.f32.mrf.mxu3 }
 0x12d   : > { %v1348_v4 = vpack.c.bf16 %v1316_v0, %v1316_v0  ;;  %v1217_v5 = vmax.f32 %v1052_v2, %v1132_v3  ;;  %v894_v6 = vpop.f32.mrf.mxu0  ;;  %v974_v7 = vpop.f32.mrf.mxu1 }
 0x12e   : > { %v1186_v14 = vmax.f32 %v894_v6, %v974_v7 }
 0x12f   : > { %1381 = vst.msk [vmem:[%s2009_s4 + $0x44] sm:$0xf] %vm1363_vm3, %v1348_v4  ;;  %v1249_v8 = vmax.f32 %v1185_v1, %v1217_v5 }
 0x131   : > { %v1285_v9 = vadd.f32 %v2003_v50, %v1249_v8 }
 0x133   : > { %v1317_v10 = vmax.f32 %v1285_v9, 0.0 }
 0x134   : > { %v1054_v11 = vpop.f32.mrf.mxu2  ;;  %v1134_v12 = vpop.f32.mrf.mxu3 }
 0x135   : > { %v1349_v13 = vpack.c.bf16 %v1317_v10, %v1317_v10  ;;  %v1218_v15 = vmax.f32 %v1054_v11, %v1134_v12  ;;  %v897_v16 = vpop.f32.mrf.mxu0  ;;  %v977_v17 = vpop.f32.mrf.mxu1 }
 0x136   : > { %v1187_v21 = vmax.f32 %v897_v16, %v977_v17 }
 0x137   : > { %1382 = vst.msk [vmem:[%s2009_s4 + $0x48] sm:$0xf] %vm1363_vm3, %v1349_v13  ;;  %v1250_v18 = vmax.f32 %v1186_v14, %v1218_v15 }
 0x139   : > { %v1286_v19 = vadd.f32 %v2003_v50, %v1250_v18 }
 0x13b   : > { %v1318_v20 = vmax.f32 %v1286_v19, 0.0 }
 0x13c   : > { %v1057_v22 = vpop.f32.mrf.mxu2  ;;  %v1137_v23 = vpop.f32.mrf.mxu3 }
 0x13d   : > { %v1350_v24 = vpack.c.bf16 %v1318_v20, %v1318_v20  ;;  %v1219_v25 = vmax.f32 %v1057_v22, %v1137_v23  ;;  %v899_v26 = vpop.f32.mrf.mxu0  ;;  %v979_v27 = vpop.f32.mrf.mxu1 }
 0x13e   : > { %v1188_v34 = vmax.f32 %v899_v26, %v979_v27 }
 0x13f   : > { %1383 = vst.msk [vmem:[%s2009_s4 + $0x4c] sm:$0xf] %vm1363_vm3, %v1350_v24  ;;  %v1251_v28 = vmax.f32 %v1187_v21, %v1219_v25 }
 0x141   : > { %v1287_v29 = vadd.f32 %v2003_v50, %v1251_v28 }
 0x143   : > { %v1319_v30 = vmax.f32 %v1287_v29, 0.0 }
 0x144   : > { %v1059_v31 = vpop.f32.mrf.mxu2  ;;  %v1139_v32 = vpop.f32.mrf.mxu3 }
 0x145   : > { %v1351_v33 = vpack.c.bf16 %v1319_v30, %v1319_v30  ;;  %v1220_v35 = vmax.f32 %v1059_v31, %v1139_v32  ;;  %v902_v36 = vpop.f32.mrf.mxu0  ;;  %v982_v37 = vpop.f32.mrf.mxu1 }
 0x146   : > { %v1189_v41 = vmax.f32 %v902_v36, %v982_v37 }
 0x147   : > { %1384 = vst.msk [vmem:[%s2009_s4 + $0x50] sm:$0xf] %vm1363_vm3, %v1351_v33  ;;  %v1252_v38 = vmax.f32 %v1188_v34, %v1220_v35 }
 0x149   : > { %v1288_v39 = vadd.f32 %v2003_v50, %v1252_v38 }
 0x14b   : > { %v1320_v40 = vmax.f32 %v1288_v39, 0.0 }
 0x14c   : > { %v1062_v42 = vpop.f32.mrf.mxu2  ;;  %v1142_v43 = vpop.f32.mrf.mxu3 }
 0x14d   : > { %v1352_v44 = vpack.c.bf16 %v1320_v40, %v1320_v40  ;;  %v1221_v45 = vmax.f32 %v1062_v42, %v1142_v43  ;;  %v904_v46 = vpop.f32.mrf.mxu0  ;;  %v984_v47 = vpop.f32.mrf.mxu1 }
 0x14e   : > { %v1190_v55 = vmax.f32 %v904_v46, %v984_v47 }
 0x14f   : > { %1385 = vst.msk [vmem:[%s2009_s4 + $0x54] sm:$0xf] %vm1363_vm3, %v1352_v44  ;;  %v1253_v48 = vmax.f32 %v1189_v41, %v1221_v45 }
 0x151   : > { %v1289_v49 = vadd.f32 %v2003_v50, %v1253_v48 }
 0x153   : > { %v1321_v51 = vmax.f32 %v1289_v49, 0.0 }
 0x154   : > { %v1064_v52 = vpop.f32.mrf.mxu2  ;;  %v1144_v53 = vpop.f32.mrf.mxu3 }
 0x155   : > { %v1353_v54 = vpack.c.bf16 %v1321_v51, %v1321_v51  ;;  %v1222_v56 = vmax.f32 %v1064_v52, %v1144_v53  ;;  %v907_v57 = vpop.f32.mrf.mxu0  ;;  %v987_v58 = vpop.f32.mrf.mxu1 }
 0x156   : > { %v1191_v62 = vmax.f32 %v907_v57, %v987_v58 }
 0x157   : > { %1386 = vst.msk [vmem:[%s2009_s4 + $0x58] sm:$0xf] %vm1363_vm3, %v1353_v54  ;;  %v1254_v59 = vmax.f32 %v1190_v55, %v1222_v56 }
 0x159   : > { %v1290_v60 = vadd.f32 %v2003_v50, %v1254_v59 }
 0x15b   : > { %v1322_v61 = vmax.f32 %v1290_v60, 0.0 }
 0x15c   : > { %v1067_v63 = vpop.f32.mrf.mxu2  ;;  %v1147_v0 = vpop.f32.mrf.mxu3 }
 0x15d   : > { %v1354_v1 = vpack.c.bf16 %v1322_v61, %v1322_v61  ;;  %v1223_v2 = vmax.f32 %v1067_v63, %v1147_v0  ;;  %v909_v3 = vpop.f32.mrf.mxu0  ;;  %v989_v4 = vpop.f32.mrf.mxu1 }
 0x15e   : > { %v1192_v11 = vmax.f32 %v909_v3, %v989_v4 }
 0x15f   : > { %1387 = vst.msk [vmem:[%s2009_s4 + $0x5c] sm:$0xf] %vm1363_vm3, %v1354_v1  ;;  %v1255_v5 = vmax.f32 %v1191_v62, %v1223_v2 }
 0x161   : > { %v1291_v6 = vadd.f32 %v2003_v50, %v1255_v5 }
 0x163   : > { %v1323_v7 = vmax.f32 %v1291_v6, 0.0 }
 0x164   : > { %v1069_v8 = vpop.f32.mrf.mxu2  ;;  %v1149_v9 = vpop.f32.mrf.mxu3 }
 0x165   : > { %v1355_v10 = vpack.c.bf16 %v1323_v7, %v1323_v7  ;;  %v1224_v12 = vmax.f32 %v1069_v8, %v1149_v9  ;;  %v912_v13 = vpop.f32.mrf.mxu0  ;;  %v992_v14 = vpop.f32.mrf.mxu1 }
 0x166   : > { %v1193_v18 = vmax.f32 %v912_v13, %v992_v14 }
 0x167   : > { %1388 = vst.msk [vmem:[%s2009_s4 + $0x60] sm:$0xf] %vm1363_vm3, %v1355_v10  ;;  %v1256_v15 = vmax.f32 %v1192_v11, %v1224_v12 }
 0x169   : > { %v1292_v16 = vadd.f32 %v2003_v50, %v1256_v15 }
 0x16b   : > { %v1324_v17 = vmax.f32 %v1292_v16, 0.0 }
 0x16c   : > { %v1072_v19 = vpop.f32.mrf.mxu2  ;;  %v1152_v20 = vpop.f32.mrf.mxu3 }
 0x16d   : > { %v1356_v21 = vpack.c.bf16 %v1324_v17, %v1324_v17  ;;  %v1225_v22 = vmax.f32 %v1072_v19, %v1152_v20  ;;  %v914_v23 = vpop.f32.mrf.mxu0  ;;  %v994_v24 = vpop.f32.mrf.mxu1 }
 0x16e   : > { %v1194_v31 = vmax.f32 %v914_v23, %v994_v24 }
 0x16f   : > { %1389 = vst.msk [vmem:[%s2009_s4 + $0x64] sm:$0xf] %vm1363_vm3, %v1356_v21  ;;  %v1257_v25 = vmax.f32 %v1193_v18, %v1225_v22 }
 0x171   : > { %v1293_v26 = vadd.f32 %v2003_v50, %v1257_v25 }
 0x173   : > { %v1325_v27 = vmax.f32 %v1293_v26, 0.0 }
 0x174   : > { %v1074_v28 = vpop.f32.mrf.mxu2  ;;  %v1154_v29 = vpop.f32.mrf.mxu3 }
 0x175   : > { %v1357_v30 = vpack.c.bf16 %v1325_v27, %v1325_v27  ;;  %v1226_v32 = vmax.f32 %v1074_v28, %v1154_v29  ;;  %v917_v33 = vpop.f32.mrf.mxu0  ;;  %v997_v34 = vpop.f32.mrf.mxu1 }
 0x176   : > { %v1195_v38 = vmax.f32 %v917_v33, %v997_v34 }
 0x177   : > { %1390 = vst.msk [vmem:[%s2009_s4 + $0x68] sm:$0xf] %vm1363_vm3, %v1357_v30  ;;  %v1258_v35 = vmax.f32 %v1194_v31, %v1226_v32 }
 0x179   : > { %v1294_v36 = vadd.f32 %v2003_v50, %v1258_v35 }
 0x17b   : > { %v1326_v37 = vmax.f32 %v1294_v36, 0.0 }
 0x17c   : > { %v1077_v39 = vpop.f32.mrf.mxu2  ;;  %v1157_v40 = vpop.f32.mrf.mxu3 }
 0x17d   : > { %v1358_v41 = vpack.c.bf16 %v1326_v37, %v1326_v37  ;;  %v1227_v42 = vmax.f32 %v1077_v39, %v1157_v40  ;;  %v919_v43 = vpop.f32.mrf.mxu0  ;;  %v999_v44 = vpop.f32.mrf.mxu1 }
 0x17e   : > { %v1196_v52 = vmax.f32 %v919_v43, %v999_v44 }
 0x17f   : > { %1391 = vst.msk [vmem:[%s2009_s4 + $0x6c] sm:$0xf] %vm1363_vm3, %v1358_v41  ;;  %v1259_v45 = vmax.f32 %v1195_v38, %v1227_v42 }
 0x181   : > { %v1295_v46 = vadd.f32 %v2003_v50, %v1259_v45 }
 0x183   : > { %v1327_v47 = vmax.f32 %v1295_v46, 0.0 }
 0x184   : > { %v1079_v48 = vpop.f32.mrf.mxu2  ;;  %v1159_v49 = vpop.f32.mrf.mxu3 }
 0x185   : > { %v1359_v51 = vpack.c.bf16 %v1327_v47, %v1327_v47  ;;  %v1228_v53 = vmax.f32 %v1079_v48, %v1159_v49  ;;  %v922_v55 = vpop.f32.mrf.mxu0  ;;  %v1002_v56 = vpop.f32.mrf.mxu1 }
 0x186   : > { %v1197_v59 = vmax.f32 %v922_v55, %v1002_v56 }
 0x187   : > { %1392 = vst.msk [vmem:[%s2009_s4 + $0x70] sm:$0xf] %vm1363_vm3, %v1359_v51  ;;  %v1260_v54 = vmax.f32 %v1196_v52, %v1228_v53 }
 0x189   : > { %v1296_v57 = vadd.f32 %v2003_v50, %v1260_v54 }
 0x18b   : > { %v1328_v58 = vmax.f32 %v1296_v57, 0.0 }
 0x18c   : > { %v1082_v60 = vpop.f32.mrf.mxu2  ;;  %v1162_v61 = vpop.f32.mrf.mxu3 }
 0x18d   : > { %v1360_v62 = vpack.c.bf16 %v1328_v58, %v1328_v58  ;;  %v1229_v63 = vmax.f32 %v1082_v60, %v1162_v61  ;;  %v924_v2 = vpop.f32.mrf.mxu0  ;;  %v1004_v3 = vpop.f32.mrf.mxu1 }
 0x18e   : > { %v1198_v8 = vmax.f32 %v924_v2, %v1004_v3 }
 0x18f   : > { %1393 = vst.msk [vmem:[%s2009_s4 + $0x74] sm:$0xf] %vm1363_vm3, %v1360_v62  ;;  %v1261_v0 = vmax.f32 %v1197_v59, %v1229_v63 }
 0x191   : > { %v1297_v1 = vadd.f32 %v2003_v50, %v1261_v0 }
 0x193   : > { %v1329_v4 = vmax.f32 %v1297_v1, 0.0 }
 0x194   : > { %v1084_v5 = vpop.f32.mrf.mxu2  ;;  %v1164_v6 = vpop.f32.mrf.mxu3 }
 0x195   : > { %v1361_v7 = vpack.c.bf16 %v1329_v4, %v1329_v4  ;;  %v1230_v9 = vmax.f32 %v1084_v5, %v1164_v6 }
 0x197   : > { %1394 = vst.msk [vmem:[%s2009_s4 + $0x78] sm:$0xf] %vm1363_vm3, %v1361_v7  ;;  %v1262_v10 = vmax.f32 %v1198_v8, %v1230_v9 }
 0x199   : > { %v1298_v11 = vadd.f32 %v2003_v50, %v1262_v10 }
 0x19b   : > { %v1330_v12 = vmax.f32 %v1298_v11, 0.0 }
 0x19d   : > { %v1362_v13 = vpack.c.bf16 %v1330_v12, %v1330_v12 }
 0x19f   : > { %1395 = vst.msk [vmem:[%s2009_s4 + $0x7c] sm:$0xf] %vm1363_vm3, %v1362_v13 }
 0x1a0 PF: > { %s13_s12 = sadd.s32 1, %s1879_s12  }
 0x1a1   : > { %p10_p5 = scmp.ge.s32.totalorder %s13_s12, 7  }
 0x1a3   :  { %12 = sbr.rel (!%p10_p5) target bundleno = 1 (0x1), region = 62 }

// kernel: net_forward.4
= control target key start
LH: loop header
LB: loop body
LE: loop exit
PB: predicated region body
PF: predicated region fallthrough
CT: control target
= control target key end

     0   :  { %s4184_s12 = smov 0   ;;  %s5349_s0 = inlined_call_operand.vmem [shape: bf16[2048,288], index: 0, kind: input, shape index: {}]   ;;  %s5350_s1 = inlined_call_operand.vmem [shape: bf16[288,64], index: 1, kind: input, shape index: {}]   ;;  %s5351_s2 = inlined_call_operand.vmem [shape: f32[1,64], index: 2, kind: input, shape index: {}]   ;;  %s5352_s3 = inlined_call_operand.vmem [shape: bf16[512,64], index: 3, kind: output, shape index: {}]  }
   0x1 LB: > { %s3003_s13 = sadd.s32 4294967295, %s4162_s12   ;;  %p3007_p0 = scmp.ge.s32.totalorder %s4162_s12, 1  ;;  %s4162_s12 = sphi %s4184_s12, %s13_s12  }
   0x2   : > { %p139_p1 = scmp.lt.s32.totalorder %s4162_s12, 3 }
   0x4   : > { %p140_p2 = pnand %p3007_p0, %p139_p1 }
   0x6   : > { %143 = sbr.rel (%p140_p2) target bundleno = 958 (0x3be), region = 32 }
   0xb   : > { %v4117_v0 = vld [vmem:[%s5350_s1 + $0x38] sm:$0xff]  ;;  %v4203_v2 = vld [vmem:[%s5350_s1 + $0x88] sm:$0xff]  ;;  %s3008_s20 = sshll.u32 %s3003_s13, 7  ;;  %v4116_v3 = vld [vmem:[%s5350_s1 + $0x30] sm:$0xff]  ;;  %vm1538_vm0 = vcmask 261120   ;;  %s3010_s30 = sshll.u32 %s3003_s13, 5 }
   0xc   : > { %v4198_v1 = vld [vmem:[%s5350_s1 + $0x78] sm:$0xff]  ;;  %p165_p3 = scmp.lt.s32.totalorder %s3008_s20, 255  ;;  %1731 = vmatpush.bf16.msra.mxu0 %v4117_v0  ;;  %4128 = vmatpush.bf16.msra.mxu3 %v4117_v0  ;;  %v4124_v4 = vld [vmem:[%s5350_s1 + $0x70] sm:$0xff]  ;;  %v4218_v5 = vld [vmem:[%s5350_s1 + $0x80] sm:$0xff]  ;;  %p172_p4 = scmp.lt.s32.totalorder %s3010_s30, 63  ;;  %vm2914_vm1 = vcmask 519168  }
   0xd   : > { %2060 = vmatpush.bf16.msra.mxu1 %v4198_v1  ;;  %2395 = vmatpush.bf16.msra.mxu2 %v4203_v2  ;;  %v4115_v6 = vld [vmem:[%s5350_s1 + $0x28] sm:$0xff]  ;;  %v4114_v11 = vld [vmem:[%s5350_s1 + $0x20] sm:$0xff]  ;;  %v4113_v13 = vld [vmem:[%s5350_s1 + $0x18] sm:$0xff] }
   0xe   : > { %s5610_s20 = smov (!%p165_p3, %s3008_s20), 255  ;;  %v4123_v7 = vld [vmem:[%s5350_s1 + $0x68] sm:$0xff]  ;;  %v4122_v12 = vld [vmem:[%s5350_s1 + $0x60] sm:$0xff]  ;;  %v4121_v14 = vld [vmem:[%s5350_s1 + $0x58] sm:$0xff]  ;;  %s5612_s30 = smov (!%p172_p4, %s3010_s30), 63 }
   0xf   : > { %s4146_s27 = smul.u32 12, %s5610_s20  ;;  %v4112_v15 = vld [vmem:[%s5350_s1 + $0x10] sm:$0xff]  ;;  %v4111_v19 = vld [vmem:[%s5350_s1 + $0x8] sm:$0xff]  ;;  %v4110_v22 = vld [vmem:[%s5350_s1] sm:$0xff]  ;;  %s3011_s5 = sshll.u32 %s5612_s30, 2 }
  0x10   : > { %1732 = vmatpush.bf16.msra.mxu0 %v4116_v3  ;;  %4129 = vmatpush.bf16.msra.mxu3 %v4116_v3  ;;  %v4120_v16 = vld [vmem:[%s5350_s1 + $0x50] sm:$0xff]  ;;  %v4119_v20 = vld [vmem:[%s5350_s1 + $0x48] sm:$0xff]  ;;  %v4118_v27 = vld [vmem:[%s5350_s1 + $0x40] sm:$0xff]  ;;  %s5024_s9 = scalar_lea.vmem %s5352_s3, %s3011_s5 }
  0x11   : > { %2061 = vmatpush.bf16.msra.mxu1 %v4124_v4  ;;  %2396 = vmatpush.bf16.msra.mxu2 %v4218_v5  ;;  %s4230_s7 = scalar_lea.vmem %s5349_s0, %s4146_s27 }
  0x12   : > { %v3022_v8 = vld [vmem:[%s4230_s7 + $0x8] sm:$0xf]  ;;  %v3920_v9 = vld [vmem:[%s4230_s7 + $0x10] sm:$0xf0]  ;;  %v3034_v17 = vld [vmem:[%s4230_s7 + $0x20] sm:$0xf] }
  0x13   : > { %v3023_v10 = vor.u32 %v3920_v9, %v3022_v8  ;;  %v3923_v18 = vld [vmem:[%s4230_s7 + $0x28] sm:$0xf0]  ;;  %v3014_v23 = vld [vmem:[%s4230_s7] sm:$0xf]  ;;  %v3918_v28 = vld [vmem:[%s4230_s7 + $0x4] sm:$0xf] }
  0x14   : > { %1733 = vmatpush.bf16.msra.mxu0 %v4115_v6  ;;  %4130 = vmatpush.bf16.msra.mxu3 %v4115_v6  ;;  %v3035_v21 = vor.u32 %v3923_v18, %v3034_v17  ;;  %v3919_v24 = vld [vmem:[%s4230_s7 + $0x8] sm:$0xf0]  ;;  %v3590_v25 = vld [vmem:[%s4230_s7 + $0x480] sm:$0xf]  ;;  %v3016_v29 = vld [vmem:[%s4230_s7 + $0xc] sm:$0xf0] }
  0x15   : > { %2062 = vmatpush.bf16.msra.mxu1 %v4123_v7  ;;  %3852 = vmatmul.msk.bf16.vlgmr.msra.gmra.mxu2 %vm1538_vm0, %v3023_v10  ;;  %v4063_v26 = vld [vmem:[%s4230_s7 + $0x488] sm:$0xf0]  ;;  %v3015_v30 = vor.u32 %v3919_v24, %v3014_v23  ;;  %v3019_v32 = vor.u32 %v3918_v28, %v3016_v29  ;;  %v3046_v33 = vld [vmem:[%s4230_s7 + $0x38] sm:$0xf]  ;;  %v3926_v34 = vld [vmem:[%s4230_s7 + $0x40] sm:$0xf0] }
  0x16   : > { %v3591_v31 = vor.u32 %v4063_v26, %v3590_v25  ;;  %v3047_v35 = vor.u32 %v3926_v34, %v3046_v33  ;;  %v3026_v36 = vld [vmem:[%s4230_s7 + $0x18] sm:$0xf]  ;;  %v3922_v37 = vld [vmem:[%s4230_s7 + $0x20] sm:$0xf0]  ;;  %v3921_v40 = vld [vmem:[%s4230_s7 + $0x1c] sm:$0xf] }
  0x17   : > { %v3602_v38 = vld [vmem:[%s4230_s7 + $0x498] sm:$0xf]  ;;  %v4066_v39 = vld [vmem:[%s4230_s7 + $0x4a0] sm:$0xf0]  ;;  %v3028_v41 = vld [vmem:[%s4230_s7 + $0x24] sm:$0xf0]  ;;  %v3027_v42 = vor.u32 %v3922_v37, %v3026_v36 }
  0x18   : > { %1734 = vmatpush.bf16.msra.mxu0 %v4114_v11  ;;  %4131 = vmatpush.bf16.msra.mxu3 %v4114_v11  ;;  %v3603_v43 = vor.u32 %v4066_v39, %v3602_v38  ;;  %v3031_v44 = vor.u32 %v3921_v40, %v3028_v41  ;;  %v3058_v45 = vld [vmem:[%s4230_s7 + $0x50] sm:$0xf]  ;;  %v3929_v46 = vld [vmem:[%s4230_s7 + $0x58] sm:$0xf0]  ;;  %v3924_v52 = vld [vmem:[%s4230_s7 + $0x34] sm:$0xf] }
  0x19   : > { %2063 = vmatpush.bf16.msra.mxu1 %v4122_v12  ;;  %v3059_v47 = vor.u32 %v3929_v46, %v3058_v45  ;;  %v3038_v48 = vld [vmem:[%s4230_s7 + $0x30] sm:$0xf]  ;;  %v3925_v49 = vld [vmem:[%s4230_s7 + $0x38] sm:$0xf0]  ;;  %v3040_v53 = vld [vmem:[%s4230_s7 + $0x3c] sm:$0xf0] }
  0x1a   : > { %v3614_v50 = vld [vmem:[%s4230_s7 + $0x4b0] sm:$0xf]  ;;  %v4069_v51 = vld [vmem:[%s4230_s7 + $0x4b8] sm:$0xf0]  ;;  %v3039_v54 = vor.u32 %v3925_v49, %v3038_v48  ;;  %v3043_v56 = vor.u32 %v3924_v52, %v3040_v53  ;;  %v3070_v57 = vld [vmem:[%s4230_s7 + $0x68] sm:$0xf] }
  0x1b   : > { %v3615_v55 = vor.u32 %v4069_v51, %v3614_v50  ;;  %v3932_v58 = vld [vmem:[%s4230_s7 + $0x70] sm:$0xf0]  ;;  %v3050_v60 = vld [vmem:[%s4230_s7 + $0x48] sm:$0xf]  ;;  %v3927_v0 = vld [vmem:[%s4230_s7 + $0x4c] sm:$0xf] }
  0x1c   : > { %1735 = vmatpush.bf16.msra.mxu0 %v4113_v13  ;;  %4132 = vmatpush.bf16.msra.mxu3 %v4113_v13  ;;  %v3071_v59 = vor.u32 %v3932_v58, %v3070_v57  ;;  %v3928_v61 = vld [vmem:[%s4230_s7 + $0x50] sm:$0xf0]  ;;  %v3626_v62 = vld [vmem:[%s4230_s7 + $0x4c8] sm:$0xf]  ;;  %v3935_v6 = vld [vmem:[%s4230_s7 + $0x88] sm:$0xf0] }
  0x1d   : > { %2064 = vmatpush.bf16.msra.mxu1 %v4121_v14  ;;  %v4072_v63 = vld [vmem:[%s4230_s7 + $0x4d0] sm:$0xf0]  ;;  %v3062_v8 = vld [vmem:[%s4230_s7 + $0x60] sm:$0xf]  ;;  %v3931_v9 = vld [vmem:[%s4230_s7 + $0x68] sm:$0xf0] }
  0x1e   : > { %v3627_v3 = vor.u32 %v4072_v63, %v3626_v62  ;;  %v3638_v10 = vld [vmem:[%s4230_s7 + $0x4e0] sm:$0xf]  ;;  %v4075_v11 = vld [vmem:[%s4230_s7 + $0x4e8] sm:$0xf0]  ;;  %v3064_v13 = vld [vmem:[%s4230_s7 + $0x6c] sm:$0xf0] }
  0x1f   : > { %v3094_v17 = vld [vmem:[%s4230_s7 + $0x98] sm:$0xf]  ;;  %v3938_v18 = vld [vmem:[%s4230_s7 + $0xa0] sm:$0xf0]  ;;  %v3933_v24 = vld [vmem:[%s4230_s7 + $0x7c] sm:$0xf] }
  0x20   : > { %1736 = vmatpush.bf16.msra.mxu0 %v4112_v15  ;;  %4133 = vmatpush.bf16.msra.mxu3 %v4112_v15  ;;  %v3639_v15 = vor.u32 %v4075_v11, %v3638_v10  ;;  %v4078_v23 = vld [vmem:[%s4230_s7 + $0x500] sm:$0xf0]  ;;  %v3076_v25 = vld [vmem:[%s4230_s7 + $0x84] sm:$0xf0]  ;;  %v3106_v29 = vld [vmem:[%s4230_s7 + $0xb0] sm:$0xf] }
  0x21   : > { %2065 = vmatpush.bf16.msra.mxu1 %v4120_v16  ;;  %v3079_v28 = vor.u32 %v3933_v24, %v3076_v25  ;;  %v3937_v33 = vld [vmem:[%s4230_s7 + $0x98] sm:$0xf0]  ;;  %v3662_v34 = vld [vmem:[%s4230_s7 + $0x510] sm:$0xf]  ;;  %v3936_v36 = vld [vmem:[%s4230_s7 + $0x94] sm:$0xf] }
  0x22   : > { %v3088_v37 = vld [vmem:[%s4230_s7 + $0x9c] sm:$0xf0]  ;;  %v3118_v41 = vld [vmem:[%s4230_s7 + $0xc8] sm:$0xf]  ;;  %v3940_v45 = vld [vmem:[%s4230_s7 + $0xb0] sm:$0xf0] }
  0x23   : > { %v3091_v40 = vor.u32 %v3936_v36, %v3088_v37  ;;  %v3674_v46 = vld [vmem:[%s4230_s7 + $0x528] sm:$0xf]  ;;  %v3939_v48 = vld [vmem:[%s4230_s7 + $0xac] sm:$0xf]  ;;  %v3100_v49 = vld [vmem:[%s4230_s7 + $0xb4] sm:$0xf0] }
  0x24   : > { %1737 = vmatpush.bf16.msra.mxu0 %v4111_v19  ;;  %4134 = vmatpush.bf16.msra.mxu3 %v4111_v19  ;;  %v3095_v19 = vor.u32 %v3938_v18, %v3094_v17  ;;  %v3103_v53 = vor.u32 %v3939_v48, %v3100_v49  ;;  %v3110_v58 = vld [vmem:[%s4230_s7 + $0xc0] sm:$0xf]  ;;  %v3942_v62 = vld [vmem:[%s4230_s7 + $0xc4] sm:$0xf]  ;;  %v3112_v63 = vld [vmem:[%s4230_s7 + $0xcc] sm:$0xf0] }
  0x25   : > { %2066 = vmatpush.bf16.msra.mxu1 %v4119_v20  ;;  %3853 = vmatmul.msk.bf16.gmra.mxu2 %vm1538_vm0, %v3035_v21  ;;  %v3934_v21 = vld [vmem:[%s4230_s7 + $0x80] sm:$0xf0] }
  0x26   : > { %v3950_v10 = vld [vmem:[%s4230_s7 + $0x100] sm:$0xf0] }
  0x27   : > { %v3946_v18 = vld [vmem:[%s4230_s7 + $0xe0] sm:$0xf0] }
  0x28   : > { %1738 = vmatpush.bf16.msra.mxu0 %v4110_v22  ;;  %4135 = vmatpush.bf16.msra.mxu3 %v4110_v22  ;;  %v3650_v22 = vld [vmem:[%s4230_s7 + $0x4f8] sm:$0xf] }
  0x29   : > { %2067 = vmatpush.bf16.msra.mxu1 %v4118_v27 }
  0x2b   : > { %1739 = vmatmul.bf16.vlgmr.msra.gmra.mxu0 %v3015_v30  ;;  %1979 = vmatmul.bf16.vlgmr.msra.gmra.mxu3 %v3591_v31  ;;  %v3941_v30 = vld [vmem:[%s4230_s7 + $0xb8] sm:$0xf0] }
  0x2c   : > { %4136 = vmatpush.bf16.msrb.mxu3 %v4198_v1  ;;  %2068 = vmatmul.bf16.vlgmr.msra.gmra.mxu1 %v3019_v32  ;;  %v3052_v1 = vld [vmem:[%s4230_s7 + $0x54] sm:$0xf0]  ;;  %v3107_v31 = vor.u32 %v3941_v30, %v3106_v29  ;;  %v3086_v32 = vld [vmem:[%s4230_s7 + $0x90] sm:$0xf] }
  0x2d   : > { %v3087_v38 = vor.u32 %v3937_v33, %v3086_v32  ;;  %v3154_v33 = vld [vmem:[%s4230_s7 + $0x110] sm:$0xf] }
  0x30   : > { %4137 = vmatpush.bf16.msrb.mxu3 %v4124_v4  ;;  %v3055_v4 = vor.u32 %v3927_v0, %v3052_v1 }
  0x34   : > { %4138 = vmatpush.bf16.msrb.mxu3 %v4123_v7 }
  0x35   : > { %3854 = vmatmul.msk.bf16.gmra.mxu2 %vm1538_vm0, %v3047_v35  ;;  %v4081_v35 = vld [vmem:[%s4230_s7 + $0x518] sm:$0xf0] }
  0x36   : > { %v3663_v39 = vor.u32 %v4081_v35, %v3662_v34  ;;  %v3953_v34 = vld [vmem:[%s4230_s7 + $0x118] sm:$0xf0] }
  0x38   : > { %4139 = vmatpush.bf16.msrb.mxu3 %v4122_v12  ;;  %v3930_v12 = vld [vmem:[%s4230_s7 + $0x64] sm:$0xf] }
  0x3b   : > { %1744 = vmatmul.bf16.gmra.mxu0 %v3027_v42  ;;  %1984 = vmatmul.bf16.gmra.mxu3 %v3603_v43  ;;  %v3944_v42 = vld [vmem:[%s4230_s7 + $0xd0] sm:$0xf0] }
  0x3c   : > { %4140 = vmatpush.bf16.msrb.mxu3 %v4121_v14  ;;  %2073 = vmatmul.bf16.gmra.mxu1 %v3031_v44  ;;  %v3063_v14 = vor.u32 %v3931_v9, %v3062_v8  ;;  %v3119_v43 = vor.u32 %v3944_v42, %v3118_v41  ;;  %v3098_v44 = vld [vmem:[%s4230_s7 + $0xa8] sm:$0xf]  ;;  %v3142_v9 = vld [vmem:[%s4230_s7 + $0xf8] sm:$0xf]  ;;  %v3949_v42 = vld [vmem:[%s4230_s7 + $0xf8] sm:$0xf0] }
  0x3d   : > { %v3099_v50 = vor.u32 %v3940_v45, %v3098_v44  ;;  %v4093_v44 = vld [vmem:[%s4230_s7 + $0x578] sm:$0xf0]  ;;  %v3948_v45 = vld [vmem:[%s4230_s7 + $0xf4] sm:$0xf] }
  0x40   : > { %4141 = vmatpush.bf16.msrb.mxu3 %v4120_v16  ;;  %v3067_v16 = vor.u32 %v3930_v12, %v3064_v13 }
  0x44   : > { %4142 = vmatpush.bf16.msrb.mxu3 %v4119_v20  ;;  %v3074_v20 = vld [vmem:[%s4230_s7 + $0x78] sm:$0xf] }
  0x45   : > { %3855 = vmatmul.msk.bf16.gmra.mxu2 %vm1538_vm0, %v3059_v47  ;;  %v3075_v26 = vor.u32 %v3934_v21, %v3074_v20  ;;  %v4084_v47 = vld [vmem:[%s4230_s7 + $0x530] sm:$0xf0]  ;;  %v4090_v20 = vld [vmem:[%s4230_s7 + $0x560] sm:$0xf0]  ;;  %v3945_v21 = vld [vmem:[%s4230_s7 + $0xdc] sm:$0xf] }
  0x46   : > { %v3675_v51 = vor.u32 %v4084_v47, %v3674_v46  ;;  %v3136_v46 = vld [vmem:[%s4230_s7 + $0xfc] sm:$0xf0] }
  0x48   : > { %4143 = vmatpush.bf16.msrb.mxu3 %v4118_v27  ;;  %v3651_v27 = vor.u32 %v4078_v23, %v3650_v22  ;;  %v3124_v22 = vld [vmem:[%s4230_s7 + $0xe4] sm:$0xf0] }
  0x4b   : > { %1749 = vmatmul.bf16.gmra.mxu0 %v3039_v54  ;;  %1989 = vmatmul.bf16.gmra.mxu3 %v3615_v55  ;;  %v3130_v54 = vld [vmem:[%s4230_s7 + $0xe0] sm:$0xf]  ;;  %v3947_v55 = vld [vmem:[%s4230_s7 + $0xe8] sm:$0xf0] }
  0x4c   : > { %4144 = vmatpush.bf16.msra.mxu3 %v4203_v2  ;;  %2078 = vmatmul.bf16.gmra.mxu1 %v3043_v56  ;;  %v3051_v2 = vor.u32 %v3928_v61, %v3050_v60  ;;  %v3131_v57 = vor.u32 %v3947_v55, %v3130_v54  ;;  %v3686_v60 = vld [vmem:[%s4230_s7 + $0x540] sm:$0xf]  ;;  %v4087_v61 = vld [vmem:[%s4230_s7 + $0x548] sm:$0xf0] }
  0x4d   : > { %v3687_v1 = vor.u32 %v4087_v61, %v3686_v60 }
  0x50   : > { %4145 = vmatpush.bf16.msra.mxu3 %v4218_v5  ;;  %v3082_v5 = vld [vmem:[%s4230_s7 + $0x80] sm:$0xf] }
  0x51   : > { %v3083_v7 = vor.u32 %v3935_v6, %v3082_v5 }
  0x55   : > { %3856 = vmatmul.msk.bf16.gmra.mxu2 %vm1538_vm0, %v3071_v59  ;;  %v3943_v59 = vld [vmem:[%s4230_s7 + $0xc8] sm:$0xf0] }
  0x56   : > { %v3111_v0 = vor.u32 %v3943_v59, %v3110_v58  ;;  %v3956_v58 = vld [vmem:[%s4230_s7 + $0x130] sm:$0xf0] }
  0x5b   : > { %1754 = vmatmul.bf16.gmra.mxu0 %v3051_v2  ;;  %1994 = vmatmul.bf16.gmra.mxu3 %v3627_v3 }
  0x5c   : > { %2083 = vmatmul.bf16.gmra.mxu1 %v3055_v4  ;;  %v3115_v4 = vor.u32 %v3942_v62, %v3112_v63 }
  0x65   : > { %3857 = vmatmul.msk.bf16.gmra.mxu2 %vm1538_vm0, %v3083_v7 }
  0x6b   : > { %1759 = vmatmul.bf16.gmra.mxu0 %v3063_v14  ;;  %1999 = vmatmul.bf16.gmra.mxu3 %v3639_v15  ;;  %v3143_v14 = vor.u32 %v3950_v10, %v3142_v9 }
  0x6c   : > { %2088 = vmatmul.bf16.gmra.mxu1 %v3067_v16  ;;  %v3122_v16 = vld [vmem:[%s4230_s7 + $0xd8] sm:$0xf] }
  0x6d   : > { %v3123_v24 = vor.u32 %v3946_v18, %v3122_v16 }
  0x75   : > { %3858 = vmatmul.msk.bf16.gmra.mxu2 %vm1538_vm0, %v3095_v19  ;;  %v3698_v19 = vld [vmem:[%s4230_s7 + $0x558] sm:$0xf] }
  0x76   : > { %v3699_v25 = vor.u32 %v4090_v20, %v3698_v19  ;;  %v3178_v20 = vld [vmem:[%s4230_s7 + $0x140] sm:$0xf] }
  0x7b   : > { %1764 = vmatmul.bf16.gmra.mxu0 %v3075_v26  ;;  %2004 = vmatmul.bf16.gmra.mxu3 %v3651_v27 }
  0x7c   : > { %2093 = vmatmul.bf16.gmra.mxu1 %v3079_v28  ;;  %v3127_v28 = vor.u32 %v3945_v21, %v3124_v22  ;;  %v3959_v21 = vld [vmem:[%s4230_s7 + $0x148] sm:$0xf0] }
  0x85   : > { %3859 = vmatmul.msk.bf16.gmra.mxu2 %vm1538_vm0, %v3107_v31 }
  0x8b   : > { %1769 = vmatmul.bf16.gmra.mxu0 %v3087_v38  ;;  %2009 = vmatmul.bf16.gmra.mxu3 %v3663_v39  ;;  %v3155_v38 = vor.u32 %v3953_v34, %v3154_v33  ;;  %v3734_v33 = vld [vmem:[%s4230_s7 + $0x5a0] sm:$0xf]  ;;  %v4099_v34 = vld [vmem:[%s4230_s7 + $0x5a8] sm:$0xf0] }
  0x8c   : > { %2098 = vmatmul.bf16.gmra.mxu1 %v3091_v40  ;;  %v3134_v40 = vld [vmem:[%s4230_s7 + $0xf0] sm:$0xf] }
  0x8d   : > { %v3135_v48 = vor.u32 %v3949_v42, %v3134_v40 }
  0x95   : > { %3860 = vmatmul.msk.bf16.gmra.mxu2 %vm1538_vm0, %v3119_v43  ;;  %v3710_v43 = vld [vmem:[%s4230_s7 + $0x570] sm:$0xf] }
  0x96   : > { %v3711_v49 = vor.u32 %v4093_v44, %v3710_v43 }
  0x98   : > { %v2398_v52 = vpop.f32.mrf.mxu2 }
  0x9b   : > { %1774 = vmatmul.bf16.gmra.mxu0 %v3099_v50  ;;  %2014 = vmatmul.bf16.gmra.mxu3 %v3675_v51 }
  0x9c   : > { %2103 = vmatmul.bf16.gmra.mxu1 %v3103_v53 }
  0xa0   : > { %v2400_v56 = vpop.f32.mrf.mxu2 }
  0xa5   : > { %3861 = vmatmul.msk.bf16.gmra.mxu2 %vm1538_vm0, %v3131_v57  ;;  %v3166_v57 = vld [vmem:[%s4230_s7 + $0x128] sm:$0xf] }
  0xa6   : > { %v3167_v62 = vor.u32 %v3956_v58, %v3166_v57  ;;  %v3170_v58 = vld [vmem:[%s4230_s7 + $0x138] sm:$0xf] }
  0xa8   : > { %v2403_v2 = vpop.f32.mrf.mxu2  ;;  %v1740_v3 = vpop.f32.mrf.mxu0 }
  0xa9   : > { %v2069_v5 = vpop.f32.mrf.mxu1 }
  0xaa   : > { %v2070_v6 = vadd.f32 %v2069_v5, %v1740_v3  ;;  %v3722_v3 = vld [vmem:[%s4230_s7 + $0x588] sm:$0xf]  ;;  %v3951_v5 = vld [vmem:[%s4230_s7 + $0x10c] sm:$0xf] }
  0xab   : > { %1779 = vmatmul.bf16.gmra.mxu0 %v3111_v0  ;;  %2019 = vmatmul.bf16.gmra.mxu3 %v3687_v1  ;;  %v3146_v0 = vld [vmem:[%s4230_s7 + $0x108] sm:$0xf] }
  0xac   : > { %v4349_v7 = vadd.f32 %v2398_v52, %v2070_v6  ;;  %2108 = vmatmul.bf16.gmra.mxu1 %v3115_v4  ;;  %v3139_v52 = vor.u32 %v3948_v45, %v3136_v46  ;;  %v4096_v4 = vld [vmem:[%s4230_s7 + $0x590] sm:$0xf0]  ;;  %v3148_v6 = vld [vmem:[%s4230_s7 + $0x114] sm:$0xf0] }
  0xae   : > { %5397 = vst [vmem:[#allocation2_spill] sm:$0xff] %v4349_v7  ;;  %v4351_v8 = vpop.f32.mrf.mxu3  ;;  %v3364_v7 = vld [vmem:[%s4230_s7 + $0x2c4] sm:$0xf0] }
  0xaf   : > { %5398 = vst [vmem:[#allocation3_spill] sm:$0xff] %v4351_v8 }
  0xb0   : > { %v2405_v11 = vpop.f32.mrf.mxu2  ;;  %v1742_v12 = vpop.f32.mrf.mxu0 }
  0xb1   : > { %v2071_v13 = vpop.f32.mrf.mxu1 }
  0xb2   : > { %v2072_v15 = vadd.f32 %v2071_v13, %v1742_v12 }
  0xb4   : > { %v4356_v17 = vadd.f32 %v2400_v56, %v2072_v15 }
  0xb5   : > { %3862 = vmatmul.msk.bf16.gmra.mxu2 %vm1538_vm0, %v3143_v14  ;;  %v3151_v14 = vor.u32 %v3951_v5, %v3148_v6 }
  0xb6   : > { %5399 = vst [vmem:[#allocation4_spill] sm:$0xff] %v4356_v17  ;;  %v4364_v23 = vpop.f32.mrf.mxu3 }
  0xb7   : > { %5400 = vst [vmem:[#allocation5_spill] sm:$0xff] %v4364_v23 }
  0xb8   : > { %v2408_v26 = vpop.f32.mrf.mxu2  ;;  %v1745_v27 = vpop.f32.mrf.mxu0 }
  0xb9   : > { %v2074_v29 = vpop.f32.mrf.mxu1 }
  0xba   : > { %v2075_v30 = vadd.f32 %v2074_v29, %v1745_v27 }
  0xbb   : > { %1784 = vmatmul.bf16.gmra.mxu0 %v3123_v24  ;;  %2024 = vmatmul.bf16.gmra.mxu3 %v3699_v25 }
  0xbc   : > { %v4366_v31 = vadd.f32 %v2403_v2, %v2075_v30  ;;  %2113 = vmatmul.bf16.gmra.mxu1 %v3127_v28  ;;  %v3952_v2 = vld [vmem:[%s4230_s7 + $0x110] sm:$0xf0]  ;;  %v3158_v28 = vld [vmem:[%s4230_s7 + $0x120] sm:$0xf]  ;;  %v3955_v30 = vld [vmem:[%s4230_s7 + $0x128] sm:$0xf0] }
  0xbd   : > { %v3147_v10 = vor.u32 %v3952_v2, %v3146_v0  ;;  %v3172_v0 = vld [vmem:[%s4230_s7 + $0x144] sm:$0xf0] }
  0xbe   : > { %5401 = vst [vmem:[#allocation6_spill] sm:$0xff] %v4366_v31  ;;  %v4368_v32 = vpop.f32.mrf.mxu3 }
  0xbf   : > { %5402 = vst [vmem:[#allocation7_spill] sm:$0xff] %v4368_v32 }
  0xc0   : > { %v2410_v35 = vpop.f32.mrf.mxu2  ;;  %v1747_v36 = vpop.f32.mrf.mxu0 }
  0xc1   : > { %v2076_v37 = vpop.f32.mrf.mxu1 }
  0xc2   : > { %v2077_v39 = vadd.f32 %v2076_v37, %v1747_v36  ;;  %v3160_v36 = vld [vmem:[%s4230_s7 + $0x12c] sm:$0xf0] }
  0xc4   : > { %v4373_v41 = vadd.f32 %v2405_v11, %v2077_v39  ;;  %v3723_v11 = vor.u32 %v4096_v4, %v3722_v3  ;;  %v3735_v39 = vor.u32 %v4099_v34, %v3734_v33  ;;  %v4105_v33 = vld [vmem:[%s4230_s7 + $0x5d8] sm:$0xf0]  ;;  %v3960_v34 = vld [vmem:[%s4230_s7 + $0x154] sm:$0xf] }
  0xc5   : > { %3863 = vmatmul.msk.bf16.gmra.mxu2 %vm1538_vm0, %v3155_v38  ;;  %v3159_v38 = vor.u32 %v3955_v30, %v3158_v28  ;;  %v3961_v28 = vld [vmem:[%s4230_s7 + $0x158] sm:$0xf0]  ;;  %v3758_v30 = vld [vmem:[%s4230_s7 + $0x5d0] sm:$0xf] }
  0xc6   : > { %5403 = vst [vmem:[#allocation8_spill] sm:$0xff] %v4373_v41  ;;  %v4381_v47 = vpop.f32.mrf.mxu3  ;;  %v3352_v41 = vld [vmem:[%s4230_s7 + $0x2ac] sm:$0xf0] }
  0xc7   : > { %5404 = vst [vmem:[#allocation9_spill] sm:$0xff] %v4381_v47 }
  0xc8   : > { %v2413_v50 = vpop.f32.mrf.mxu2  ;;  %v1750_v51 = vpop.f32.mrf.mxu0 }
  0xc9   : > { %v2079_v53 = vpop.f32.mrf.mxu1 }
  0xca   : > { %v2080_v54 = vadd.f32 %v2079_v53, %v1750_v51 }
  0xcb   : > { %1789 = vmatmul.bf16.gmra.mxu0 %v3135_v48  ;;  %2029 = vmatmul.bf16.gmra.mxu3 %v3711_v49  ;;  %v3190_v49 = vld [vmem:[%s4230_s7 + $0x158] sm:$0xf] }
  0xcc   : > { %v4383_v55 = vadd.f32 %v2408_v26, %v2080_v54  ;;  %2118 = vmatmul.bf16.gmra.mxu1 %v3139_v52  ;;  %v3179_v26 = vor.u32 %v3959_v21, %v3178_v20 }
  0xce   : > { %v4385_v56 = vpop.f32.mrf.mxu3 }
  0xd0   : > { %v2415_v59 = vpop.f32.mrf.mxu2  ;;  %v1752_v60 = vpop.f32.mrf.mxu0 }
  0xd1   : > { %v2081_v61 = vpop.f32.mrf.mxu1 }
  0xd2   : > { %v2082_v63 = vadd.f32 %v2081_v61, %v1752_v60  ;;  %v3958_v60 = vld [vmem:[%s4230_s7 + $0x140] sm:$0xf0]  ;;  %v3746_v61 = vld [vmem:[%s4230_s7 + $0x5b8] sm:$0xf] }
  0xd3   : > { %v3171_v3 = vor.u32 %v3958_v60, %v3170_v58 }
  0xd4   : > { %v4390_v1 = vadd.f32 %v2410_v35, %v2082_v63  ;;  %v3954_v35 = vld [vmem:[%s4230_s7 + $0x124] sm:$0xf]  ;;  %v3957_v63 = vld [vmem:[%s4230_s7 + $0x13c] sm:$0xf] }
  0xd5   : > { %3864 = vmatmul.msk.bf16.gmra.mxu2 %vm1538_vm0, %v3167_v62  ;;  %v3163_v43 = vor.u32 %v3954_v35, %v3160_v36  ;;  %v4102_v62 = vld [vmem:[%s4230_s7 + $0x5c0] sm:$0xf0]  ;;  %v3184_v35 = vld [vmem:[%s4230_s7 + $0x15c] sm:$0xf0] }
  0xd6   : > { %v4398_v9 = vpop.f32.mrf.mxu3  ;;  %v3747_v4 = vor.u32 %v4102_v62, %v3746_v61  ;;  %v3194_v61 = vld [vmem:[%s4230_s7 + $0x168] sm:$0xf] }
  0xd8   : > { %v2418_v12 = vpop.f32.mrf.mxu2  ;;  %v1755_v13 = vpop.f32.mrf.mxu0 }
  0xd9   : > { %v2084_v15 = vpop.f32.mrf.mxu1 }
  0xda   : > { %v2085_v16 = vadd.f32 %v2084_v15, %v1755_v13  ;;  %v3202_v15 = vld [vmem:[%s4230_s7 + $0x170] sm:$0xf] }
  0xdb   : > { %1794 = vmatmul.bf16.gmra.mxu0 %v3147_v10  ;;  %2034 = vmatmul.bf16.gmra.mxu3 %v3723_v11  ;;  %v3175_v10 = vor.u32 %v3957_v63, %v3172_v0  ;;  %v3964_v63 = vld [vmem:[%s4230_s7 + $0x170] sm:$0xf0]  ;;  %v3770_v0 = vld [vmem:[%s4230_s7 + $0x5e8] sm:$0xf] }
  0xdc   : > { %v4400_v18 = vadd.f32 %v2413_v50, %v2085_v16  ;;  %2123 = vmatmul.bf16.gmra.mxu1 %v3151_v14  ;;  %v3962_v50 = vld [vmem:[%s4230_s7 + $0x160] sm:$0xf0]  ;;  %v3965_v16 = vld [vmem:[%s4230_s7 + $0x178] sm:$0xf0] }
  0xdd   : > { %v3191_v54 = vor.u32 %v3962_v50, %v3190_v49 }
  0xde   : > { %v4402_v19 = vpop.f32.mrf.mxu3 }
  0xe0   : > { %v2420_v22 = vpop.f32.mrf.mxu2  ;;  %v1757_v24 = vpop.f32.mrf.mxu0 }
  0xe1   : > { %v2086_v25 = vpop.f32.mrf.mxu1 }
  0xe2   : > { %v2087_v27 = vadd.f32 %v2086_v25, %v1757_v24  ;;  %v3203_v24 = vor.u32 %v3965_v16, %v3202_v15 }
  0xe4   : > { %v4407_v29 = vadd.f32 %v2415_v59, %v2087_v27 }
  0xe5   : > { %3865 = vmatmul.msk.bf16.gmra.mxu2 %vm1538_vm0, %v3179_v26  ;;  %v3182_v26 = vld [vmem:[%s4230_s7 + $0x150] sm:$0xf] }
  0xe6   : > { %v4415_v37 = vpop.f32.mrf.mxu3 }
  0xe8   : > { %v2423_v40 = vpop.f32.mrf.mxu2  ;;  %v1760_v42 = vpop.f32.mrf.mxu0 }
  0xe9   : > { %v2089_v44 = vpop.f32.mrf.mxu1 }
  0xea   : > { %v2090_v45 = vadd.f32 %v2089_v44, %v1760_v42 }
  0xeb   : > { %1799 = vmatmul.bf16.gmra.mxu0 %v3159_v38  ;;  %2039 = vmatmul.bf16.gmra.mxu3 %v3735_v39  ;;  %v3183_v38 = vor.u32 %v3961_v28, %v3182_v26  ;;  %v3759_v39 = vor.u32 %v4105_v33, %v3758_v30  ;;  %v3971_v26 = vld [vmem:[%s4230_s7 + $0x1a8] sm:$0xf0] }
  0xec   : > { %v4417_v46 = vadd.f32 %v2418_v12, %v2090_v45  ;;  %2128 = vmatmul.bf16.gmra.mxu1 %v3163_v43  ;;  %v3187_v43 = vor.u32 %v3960_v34, %v3184_v35 }
  0xee   : > { %v4419_v48 = vpop.f32.mrf.mxu3 }
  0xf0   : > { %v2425_v51 = vpop.f32.mrf.mxu2  ;;  %v1762_v52 = vpop.f32.mrf.mxu0 }
  0xf1   : > { %v2091_v53 = vpop.f32.mrf.mxu1 }
  0xf2   : > { %v2092_v57 = vadd.f32 %v2091_v53, %v1762_v52  ;;  %v3968_v52 = vld [vmem:[%s4230_s7 + $0x190] sm:$0xf0] }
  0xf4   : > { %v4424_v59 = vadd.f32 %v2420_v22, %v2092_v57 }
  0xf5   : > { %3866 = vmatmul.msk.bf16.gmra.mxu2 %vm1538_vm0, %v3191_v54 }
  0xf6   : > { %v4432_v2 = vpop.f32.mrf.mxu3 }
  0xf8   : > { %v2428_v5 = vpop.f32.mrf.mxu2  ;;  %v1765_v6 = vpop.f32.mrf.mxu0 }
  0xf9   : > { %v2094_v11 = vpop.f32.mrf.mxu1 }
  0xfa   : > { %v2095_v12 = vadd.f32 %v2094_v11, %v1765_v6 }
  0xfb   : > { %1804 = vmatmul.bf16.gmra.mxu0 %v3171_v3  ;;  %2044 = vmatmul.bf16.gmra.mxu3 %v3747_v4  ;;  %v4108_v3 = vld [vmem:[%s4230_s7 + $0x5f0] sm:$0xf0]  ;;  %v3963_v4 = vld [vmem:[%s4230_s7 + $0x16c] sm:$0xf] }
  0xfc   : > { %v4434_v13 = vadd.f32 %v2423_v40, %v2095_v12  ;;  %2133 = vmatmul.bf16.gmra.mxu1 %v3175_v10  ;;  %v3195_v10 = vor.u32 %v3964_v63, %v3194_v61  ;;  %v3771_v11 = vor.u32 %v4108_v3, %v3770_v0  ;;  %v3238_v3 = vld [vmem:[%s4230_s7 + $0x1b8] sm:$0xf] }
  0xfe   : > { %5405 = vst [vmem:[#allocation10_spill] sm:$0xff] %v4434_v13  ;;  %v4436_v14 = vpop.f32.mrf.mxu3 }
  0xff   : > { %5406 = vst [vmem:[#allocation11_spill] sm:$0xff] %v4436_v14  ;;  %v4008_v14 = vld [vmem:[%s4230_s7 + $0x2d4] sm:$0xf] }
 0x100   : > { %v2430_v20 = vpop.f32.mrf.mxu2  ;;  %v1767_v21 = vpop.f32.mrf.mxu0 }
 0x101   : > { %v2096_v22 = vpop.f32.mrf.mxu1 }
 0x102   : > { %v2097_v25 = vadd.f32 %v2096_v22, %v1767_v21 }
 0x104   : > { %v4441_v27 = vadd.f32 %v2425_v51, %v2097_v25  ;;  %v3214_v51 = vld [vmem:[%s4230_s7 + $0x188] sm:$0xf]  ;;  %v3226_v25 = vld [vmem:[%s4230_s7 + $0x1a0] sm:$0xf] }
 0x105   : > { %3867 = vmatmul.msk.bf16.gmra.mxu2 %vm1538_vm0, %v3203_v24  ;;  %v3215_v58 = vor.u32 %v3968_v52, %v3214_v51  ;;  %v3227_v34 = vor.u32 %v3971_v26, %v3226_v25  ;;  %v3970_v25 = vld [vmem:[%s4230_s7 + $0x1a0] sm:$0xf0]  ;;  %v4065_v26 = vld [vmem:[%s4230_s7 + $0x49c] sm:$0xf] }
 0x106   : > { %v4449_v36 = vpop.f32.mrf.mxu3 }
 0x107   : > { %5407 = vst [vmem:[#allocation12_spill] sm:$0xff] %v4449_v36 }
 0x108   : > { %v2433_v40 = vpop.f32.mrf.mxu2  ;;  %v1770_v42 = vpop.f32.mrf.mxu0 }
 0x109   : > { %v2099_v44 = vpop.f32.mrf.mxu1 }
 0x10a   : > { %v2100_v45 = vadd.f32 %v2099_v44, %v1770_v42  ;;  %v3967_v42 = vld [vmem:[%s4230_s7 + $0x188] sm:$0xf0]  ;;  %v3592_v44 = vld [vmem:[%s4230_s7 + $0x48c] sm:$0xf0] }
 0x10b   : > { %1809 = vmatmul.bf16.gmra.mxu0 %v3183_v38  ;;  %2049 = vmatmul.bf16.gmra.mxu3 %v3759_v39  ;;  %v3206_v38 = vld [vmem:[%s4230_s7 + $0x180] sm:$0xf] }
 0x10c   : > { %v4451_v49 = vadd.f32 %v2428_v5, %v2100_v45  ;;  %2138 = vmatmul.bf16.gmra.mxu1 %v3187_v43  ;;  %v3196_v5 = vld [vmem:[%s4230_s7 + $0x174] sm:$0xf0]  ;;  %v4062_v43 = vld [vmem:[%s4230_s7 + $0x484] sm:$0xf]  ;;  %v3208_v45 = vld [vmem:[%s4230_s7 + $0x18c] sm:$0xf0]  ;;  %v3207_v52 = vor.u32 %v3967_v42, %v3206_v38 }
 0x10d   : > { %v3199_v16 = vor.u32 %v3963_v4, %v3196_v5  ;;  %v3974_v4 = vld [vmem:[%s4230_s7 + $0x1c0] sm:$0xf0] }
 0x10e   : > { %5408 = vst [vmem:[#allocation13_spill] sm:$0xff] %v4451_v49  ;;  %v4453_v50 = vpop.f32.mrf.mxu3 }
 0x10f   : > { %5409 = vst [vmem:[#allocation14_spill] sm:$0xff] %v4453_v50 }
 0x110   : > { %v2435_v53 = vpop.f32.mrf.mxu2  ;;  %v1772_v54 = vpop.f32.mrf.mxu0 }
 0x111   : > { %v2101_v57 = vpop.f32.mrf.mxu1 }
 0x112   : > { %v2102_v60 = vadd.f32 %v2101_v57, %v1772_v54  ;;  %v3595_v54 = vor.u32 %v4062_v43, %v3592_v44 }
 0x114   : > { %v4458_v62 = vadd.f32 %v2430_v20, %v2102_v60 }
 0x115   : > { %3868 = vmatmul.msk.bf16.gmra.mxu2 %vm1538_vm0, %v3215_v58 }
 0x116   : > { %v4466_v6 = vpop.f32.mrf.mxu3 }
 0x117   : > { %5410 = vst [vmem:[#allocation15_spill] sm:$0xff] %v4466_v6  ;;  %v3376_v6 = vld [vmem:[%s4230_s7 + $0x2dc] sm:$0xf0] }
 0x118   : > { %v2438_v12 = vpop.f32.mrf.mxu2  ;;  %v1775_v15 = vpop.f32.mrf.mxu0 }
 0x119   : > { %v2104_v21 = vpop.f32.mrf.mxu1 }
 0x11a   : > { %v2105_v20 = vadd.f32 %v2104_v21, %v1775_v15  ;;  %v3239_v15 = vor.u32 %v3974_v4, %v3238_v3  ;;  %v3218_v21 = vld [vmem:[%s4230_s7 + $0x198] sm:$0xf] }
 0x11b   : > { %1814 = vmatmul.bf16.gmra.mxu0 %v3195_v10  ;;  %2054 = vmatmul.bf16.gmra.mxu3 %v3771_v11 }
 0x11c   : > { %v4468_v22 = vadd.f32 %v2433_v40, %v2105_v20  ;;  %2143 = vmatmul.bf16.gmra.mxu1 %v3199_v16  ;;  %v3966_v40 = vld [vmem:[%s4230_s7 + $0x184] sm:$0xf] }
 0x11d   : > { %v3211_v60 = vor.u32 %v3966_v40, %v3208_v45 }
 0x11e   : > { %5411 = vst [vmem:[#allocation16_spill] sm:$0xff] %v4468_v22  ;;  %v4470_v24 = vpop.f32.mrf.mxu3 }
 0x11f   : > { %5412 = vst [vmem:[#allocation17_spill] sm:$0xff] %v4470_v24  ;;  %v4005_v24 = vld [vmem:[%s4230_s7 + $0x2bc] sm:$0xf] }
 0x120   : > { %v2440_v28 = vpop.f32.mrf.mxu2  ;;  %v1777_v30 = vpop.f32.mrf.mxu0 }
 0x121   : > { %v2106_v33 = vpop.f32.mrf.mxu1 }
 0x122   : > { %v2107_v35 = vadd.f32 %v2106_v33, %v1777_v30  ;;  %v3604_v30 = vld [vmem:[%s4230_s7 + $0x4a4] sm:$0xf0] }
 0x123   : > { %v3220_v33 = vld [vmem:[%s4230_s7 + $0x1a4] sm:$0xf0]  ;;  %v3607_v38 = vor.u32 %v4065_v26, %v3604_v30 }
 0x124   : > { %v4475_v39 = vadd.f32 %v2435_v53, %v2107_v35  ;;  %v3219_v35 = vor.u32 %v3970_v25, %v3218_v21  ;;  %v3616_v21 = vld [vmem:[%s4230_s7 + $0x4bc] sm:$0xf0] }
 0x125   : > { %3869 = vmatmul.msk.bf16.gmra.mxu2 %vm1538_vm0, %v3227_v34  ;;  %v3232_v25 = vld [vmem:[%s4230_s7 + $0x1bc] sm:$0xf0] }
 0x126   : > { %v4483_v51 = vpop.f32.mrf.mxu3 }
 0x127   : > { %5413 = vst [vmem:[#allocation18_spill] sm:$0xff] %v4483_v51 }
 0x128   : > { %v2443_v57 = vpop.f32.mrf.mxu2  ;;  %v1780_v58 = vpop.f32.mrf.mxu0 }
 0x129   : > { %v2109_v61 = vpop.f32.mrf.mxu1 }
 0x12a   : > { %v2110_v53 = vadd.f32 %v2109_v61, %v1780_v58  ;;  %v3977_v58 = vld [vmem:[%s4230_s7 + $0x1d8] sm:$0xf0] }
 0x12b   : > { %1819 = vmatmul.bf16.gmra.mxu0 %v3207_v52  ;;  %2308 = vmatmul.bf16.vlgmr.msrb.gmra.mxu3 %v3595_v54  ;;  %v3250_v54 = vld [vmem:[%s4230_s7 + $0x1d0] sm:$0xf] }
 0x12c   : > { %v4485_v63 = vadd.f32 %v2438_v12, %v2110_v53  ;;  %2148 = vmatmul.bf16.gmra.mxu1 %v3211_v60  ;;  %v3969_v12 = vld [vmem:[%s4230_s7 + $0x19c] sm:$0xf]  ;;  %v3251_v3 = vor.u32 %v3977_v58, %v3250_v54  ;;  %v3980_v54 = vld [vmem:[%s4230_s7 + $0x1f0] sm:$0xf0] }
 0x12d   : > { %v3223_v44 = vor.u32 %v3969_v12, %v3220_v33 }
 0x12e   : > { %5414 = vst [vmem:[#allocation19_spill] sm:$0xff] %v4485_v63  ;;  %v4487_v0 = vpop.f32.mrf.mxu3 }
 0x12f   : > { %5415 = vst [vmem:[#allocation20_spill] sm:$0xff] %v4487_v0 }
 0x130   : > { %v2445_v5 = vpop.f32.mrf.mxu2  ;;  %v1782_v10 = vpop.f32.mrf.mxu0 }
 0x131   : > { %v2111_v11 = vpop.f32.mrf.mxu1 }
 0x132   : > { %v2112_v16 = vadd.f32 %v2111_v11, %v1782_v10  ;;  %v3230_v10 = vld [vmem:[%s4230_s7 + $0x1b0] sm:$0xf] }
 0x134   : > { %v4492_v20 = vadd.f32 %v2440_v28, %v2112_v16  ;;  %v4068_v16 = vld [vmem:[%s4230_s7 + $0x4b4] sm:$0xf] }
 0x135   : > { %3870 = vmatmul.msk.bf16.gmra.mxu2 %vm1538_vm0, %v3239_v15  ;;  %v3973_v15 = vld [vmem:[%s4230_s7 + $0x1b8] sm:$0xf0]  ;;  %v3619_v12 = vor.u32 %v4068_v16, %v3616_v21  ;;  %v3976_v16 = vld [vmem:[%s4230_s7 + $0x1d0] sm:$0xf0]  ;;  %v4071_v21 = vld [vmem:[%s4230_s7 + $0x4cc] sm:$0xf] }
 0x136   : > { %v4500_v34 = vpop.f32.mrf.mxu3  ;;  %v3231_v30 = vor.u32 %v3973_v15, %v3230_v10  ;;  %v3242_v10 = vld [vmem:[%s4230_s7 + $0x1c8] sm:$0xf] }
 0x137   : > { %5416 = vst [vmem:[#allocation21_spill] sm:$0xff] %v4500_v34 }
 0x138   : > { %v2448_v42 = vpop.f32.mrf.mxu2  ;;  %v1785_v43 = vpop.f32.mrf.mxu0 }
 0x139   : > { %v2114_v40 = vpop.f32.mrf.mxu1 }
 0x13a   : > { %v2115_v28 = vadd.f32 %v2114_v40, %v1785_v43 }
 0x13b   : > { %1824 = vmatmul.bf16.gmra.mxu0 %v3219_v35  ;;  %2313 = vmatmul.bf16.gmra.mxu3 %v3607_v38 }
 0x13c   : > { %v4502_v45 = vadd.f32 %v2443_v57, %v2115_v28  ;;  %2153 = vmatmul.bf16.gmra.mxu1 %v3223_v44  ;;  %v3972_v57 = vld [vmem:[%s4230_s7 + $0x1b4] sm:$0xf]  ;;  %v3262_v28 = vld [vmem:[%s4230_s7 + $0x1e8] sm:$0xf] }
 0x13d   : > { %v3235_v38 = vor.u32 %v3972_v57, %v3232_v25  ;;  %v3628_v57 = vld [vmem:[%s4230_s7 + $0x4d4] sm:$0xf0] }
 0x13e   : > { %5417 = vst [vmem:[#allocation22_spill] sm:$0xff] %v4502_v45  ;;  %v4504_v52 = vpop.f32.mrf.mxu3  ;;  %v3244_v25 = vld [vmem:[%s4230_s7 + $0x1d4] sm:$0xf0] }
 0x13f   : > { %5418 = vst [vmem:[#allocation23_spill] sm:$0xff] %v4504_v52 }
 0x140   : > { %v2450_v60 = vpop.f32.mrf.mxu2  ;;  %v1787_v61 = vpop.f32.mrf.mxu0 }
 0x141   : > { %v2116_v53 = vpop.f32.mrf.mxu1 }
 0x142   : > { %v2117_v4 = vadd.f32 %v2116_v53, %v1787_v61 }
 0x144   : > { %v4509_v11 = vadd.f32 %v2445_v5, %v2117_v4 }
 0x145   : > { %3871 = vmatmul.msk.bf16.gmra.mxu2 %vm1538_vm0, %v3251_v3  ;;  %v3263_v3 = vor.u32 %v3980_v54, %v3262_v28 }
 0x146   : > { %v4517_v26 = vpop.f32.mrf.mxu3 }
 0x147   : > { %5419 = vst [vmem:[#allocation24_spill] sm:$0xff] %v4517_v26 }
 0x148   : > { %v2453_v33 = vpop.f32.mrf.mxu2  ;;  %v1790_v35 = vpop.f32.mrf.mxu0 }
 0x149   : > { %v2119_v43 = vpop.f32.mrf.mxu1 }
 0x14a   : > { %v2120_v5 = vadd.f32 %v2119_v43, %v1790_v35  ;;  %v3631_v35 = vor.u32 %v4071_v21, %v3628_v57 }
 0x14b   : > { %1829 = vmatmul.bf16.gmra.mxu0 %v3231_v30  ;;  %2318 = vmatmul.bf16.gmra.mxu3 %v3619_v12  ;;  %v3243_v12 = vor.u32 %v3976_v16, %v3242_v10 }
 0x14c   : > { %v4519_v44 = vadd.f32 %v2448_v42, %v2120_v5  ;;  %2158 = vmatmul.bf16.gmra.mxu1 %v3235_v38  ;;  %v3975_v42 = vld [vmem:[%s4230_s7 + $0x1cc] sm:$0xf] }
 0x14d   : > { %v3247_v5 = vor.u32 %v3975_v42, %v3244_v25  ;;  %v3254_v42 = vld [vmem:[%s4230_s7 + $0x1e0] sm:$0xf] }
 0x14e   : > { %5420 = vst [vmem:[#allocation25_spill] sm:$0xff] %v4519_v44  ;;  %v4521_v40 = vpop.f32.mrf.mxu3 }
 0x14f   : > { %5421 = vst [vmem:[#allocation26_spill] sm:$0xff] %v4521_v40 }
 0x150   : > { %v2455_v58 = vpop.f32.mrf.mxu2  ;;  %v1792_v61 = vpop.f32.mrf.mxu0 }
 0x151   : > { %v2121_v53 = vpop.f32.mrf.mxu1 }
 0x152   : > { %v2122_v4 = vadd.f32 %v2121_v53, %v1792_v61  ;;  %v3274_v53 = vld [vmem:[%s4230_s7 + $0x200] sm:$0xf] }
 0x154   : > { %v4526_v15 = vadd.f32 %v2450_v60, %v2122_v4 }
 0x155   : > { %3872 = vmatmul.msk.bf16.gmra.mxu2 %vm1538_vm0, %v3263_v3  ;;  %v3983_v3 = vld [vmem:[%s4230_s7 + $0x208] sm:$0xf0] }
 0x156   : > { %v4534_v30 = vpop.f32.mrf.mxu3  ;;  %v3275_v21 = vor.u32 %v3983_v3, %v3274_v53 }
 0x157   : > { %5422 = vst [vmem:[#allocation27_spill] sm:$0xff] %v4534_v30 }
 0x158   : > { %v2458_v38 = vpop.f32.mrf.mxu2  ;;  %v1795_v43 = vpop.f32.mrf.mxu0 }
 0x159   : > { %v2124_v28 = vpop.f32.mrf.mxu1 }
 0x15a   : > { %v2125_v60 = vadd.f32 %v2124_v28, %v1795_v43  ;;  %v4074_v43 = vld [vmem:[%s4230_s7 + $0x4e4] sm:$0xf] }
 0x15b   : > { %1834 = vmatmul.bf16.gmra.mxu0 %v3243_v12  ;;  %2323 = vmatmul.bf16.gmra.mxu3 %v3631_v35  ;;  %v3979_v12 = vld [vmem:[%s4230_s7 + $0x1e8] sm:$0xf0]  ;;  %v3640_v35 = vld [vmem:[%s4230_s7 + $0x4ec] sm:$0xf0] }
 0x15c   : > { %v4536_v54 = vadd.f32 %v2453_v33, %v2125_v60  ;;  %2163 = vmatmul.bf16.gmra.mxu1 %v3247_v5  ;;  %v3978_v33 = vld [vmem:[%s4230_s7 + $0x1e4] sm:$0xf]  ;;  %v3256_v5 = vld [vmem:[%s4230_s7 + $0x1ec] sm:$0xf0]  ;;  %v3255_v60 = vor.u32 %v3979_v12, %v3254_v42  ;;  %v3643_v47 = vor.u32 %v4074_v43, %v3640_v35 }
 0x15d   : > { %v3259_v53 = vor.u32 %v3978_v33, %v3256_v5  ;;  %v3266_v5 = vld [vmem:[%s4230_s7 + $0x1f8] sm:$0xf] }
 0x15e   : > { %5423 = vst [vmem:[#allocation28_spill] sm:$0xff] %v4536_v54  ;;  %v4538_v61 = vpop.f32.mrf.mxu3 }
 0x15f   : > { %5424 = vst [vmem:[#allocation29_spill] sm:$0xff] %v4538_v61 }
 0x160   : > { %v2460_v4 = vpop.f32.mrf.mxu2  ;;  %v1797_v10 = vpop.f32.mrf.mxu0 }
 0x161   : > { %v2126_v16 = vpop.f32.mrf.mxu1 }
 0x162   : > { %v2127_v57 = vadd.f32 %v2126_v16, %v1797_v10 }
 0x164   : > { %v4543_v25 = vadd.f32 %v2455_v58, %v2127_v57  ;;  %v3986_v57 = vld [vmem:[%s4230_s7 + $0x220] sm:$0xf0] }
 0x165   : > { %3873 = vmatmul.msk.bf16.gmra.mxu2 %vm1538_vm0, %v3275_v21  ;;  %v3286_v21 = vld [vmem:[%s4230_s7 + $0x218] sm:$0xf] }
 0x166   : > { %v4551_v28 = vpop.f32.mrf.mxu3  ;;  %v3287_v35 = vor.u32 %v3986_v57, %v3286_v21 }
 0x167   : > { %5425 = vst [vmem:[#allocation30_spill] sm:$0xff] %v4551_v28 }
 0x168   : > { %v2463_v32 = vpop.f32.mrf.mxu2  ;;  %v1800_v23 = vpop.f32.mrf.mxu0 }
 0x169   : > { %v2129_v3 = vpop.f32.mrf.mxu1 }
 0x16a   : > { %v2130_v58 = vadd.f32 %v2129_v3, %v1800_v23  ;;  %v4077_v3 = vld [vmem:[%s4230_s7 + $0x4fc] sm:$0xf] }
 0x16b   : > { %1839 = vmatmul.bf16.gmra.mxu0 %v3255_v60  ;;  %2328 = vmatmul.bf16.gmra.mxu3 %v3643_v47  ;;  %v3982_v60 = vld [vmem:[%s4230_s7 + $0x200] sm:$0xf0]  ;;  %v3652_v47 = vld [vmem:[%s4230_s7 + $0x504] sm:$0xf0] }
 0x16c   : > { %v4553_v10 = vadd.f32 %v2458_v38, %v2130_v58  ;;  %2168 = vmatmul.bf16.gmra.mxu1 %v3259_v53  ;;  %v3981_v38 = vld [vmem:[%s4230_s7 + $0x1fc] sm:$0xf]  ;;  %v3268_v53 = vld [vmem:[%s4230_s7 + $0x204] sm:$0xf0]  ;;  %v3267_v8 = vor.u32 %v3982_v60, %v3266_v5 }
 0x16d   : > { %v3271_v21 = vor.u32 %v3981_v38, %v3268_v53  ;;  %v3278_v53 = vld [vmem:[%s4230_s7 + $0x210] sm:$0xf] }
 0x16e   : > { %5426 = vst [vmem:[#allocation31_spill] sm:$0xff] %v4553_v10  ;;  %v4555_v16 = vpop.f32.mrf.mxu3 }
 0x16f   : > { %5427 = vst [vmem:[#allocation32_spill] sm:$0xff] %v4555_v16  ;;  %v3655_v16 = vor.u32 %v4077_v3, %v3652_v47 }
 0x170   : > { %v2465_v42 = vpop.f32.mrf.mxu2  ;;  %v1802_v12 = vpop.f32.mrf.mxu0 }
 0x171   : > { %v2131_v43 = vpop.f32.mrf.mxu1 }
 0x172   : > { %v2132_v33 = vadd.f32 %v2131_v43, %v1802_v12 }
 0x174   : > { %v4560_v23 = vadd.f32 %v2460_v4, %v2132_v33  ;;  %v3989_v33 = vld [vmem:[%s4230_s7 + $0x238] sm:$0xf0] }
 0x175   : > { %3874 = vmatmul.msk.bf16.gmra.mxu2 %vm1538_vm0, %v3287_v35  ;;  %v3298_v35 = vld [vmem:[%s4230_s7 + $0x230] sm:$0xf] }
 0x176   : > { %v4568_v58 = vpop.f32.mrf.mxu3  ;;  %v3299_v47 = vor.u32 %v3989_v33, %v3298_v35 }
 0x177   : > { %5428 = vst [vmem:[#allocation33_spill] sm:$0xff] %v4568_v58 }
 0x178   : > { %v2468_v28 = vpop.f32.mrf.mxu2  ;;  %v1805_v61 = vpop.f32.mrf.mxu0 }
 0x179   : > { %v2134_v57 = vpop.f32.mrf.mxu1 }
 0x17a   : > { %v2135_v4 = vadd.f32 %v2134_v57, %v1805_v61  ;;  %v4080_v57 = vld [vmem:[%s4230_s7 + $0x514] sm:$0xf] }
 0x17b   : > { %1844 = vmatmul.bf16.gmra.mxu0 %v3267_v8  ;;  %2333 = vmatmul.bf16.gmra.mxu3 %v3655_v16  ;;  %v3985_v8 = vld [vmem:[%s4230_s7 + $0x218] sm:$0xf0]  ;;  %v3664_v16 = vld [vmem:[%s4230_s7 + $0x51c] sm:$0xf0] }
 0x17c   : > { %v4570_v12 = vadd.f32 %v2463_v32, %v2135_v4  ;;  %2173 = vmatmul.bf16.gmra.mxu1 %v3271_v21  ;;  %v3984_v32 = vld [vmem:[%s4230_s7 + $0x214] sm:$0xf]  ;;  %v3280_v21 = vld [vmem:[%s4230_s7 + $0x21c] sm:$0xf0]  ;;  %v3667_v58 = vor.u32 %v4080_v57, %v3664_v16 }
 0x17d   : > { %v3283_v35 = vor.u32 %v3984_v32, %v3280_v21  ;;  %v3290_v21 = vld [vmem:[%s4230_s7 + $0x228] sm:$0xf] }
 0x17e   : > { %5429 = vst [vmem:[#allocation34_spill] sm:$0xff] %v4570_v12  ;;  %v4572_v43 = vpop.f32.mrf.mxu3 }
 0x17f   : > { %5430 = vst [vmem:[#allocation35_spill] sm:$0xff] %v4572_v43  ;;  %v3279_v43 = vor.u32 %v3985_v8, %v3278_v53 }
 0x180   : > { %v2470_v5 = vpop.f32.mrf.mxu2  ;;  %v1807_v60 = vpop.f32.mrf.mxu0 }
 0x181   : > { %v2136_v3 = vpop.f32.mrf.mxu1 }
 0x182   : > { %v2137_v38 = vadd.f32 %v2136_v3, %v1807_v60 }
 0x184   : > { %v4577_v61 = vadd.f32 %v2465_v42, %v2137_v38  ;;  %v3992_v38 = vld [vmem:[%s4230_s7 + $0x250] sm:$0xf0] }
 0x185   : > { %3875 = vmatmul.msk.bf16.gmra.mxu2 %vm1538_vm0, %v3299_v47  ;;  %v3310_v47 = vld [vmem:[%s4230_s7 + $0x248] sm:$0xf] }
 0x186   : > { %5431 = vst [vmem:[#allocation36_spill] sm:$0xff] %v4577_v61  ;;  %v4585_v4 = vpop.f32.mrf.mxu3  ;;  %v3311_v16 = vor.u32 %v3992_v38, %v3310_v47 }
 0x187   : > { %5432 = vst [vmem:[#allocation37_spill] sm:$0xff] %v4585_v4 }
 0x188   : > { %v2473_v30 = vpop.f32.mrf.mxu2  ;;  %v1810_v40 = vpop.f32.mrf.mxu0 }
 0x189   : > { %v2139_v33 = vpop.f32.mrf.mxu1 }
 0x18a   : > { %v2140_v42 = vadd.f32 %v2139_v33, %v1810_v40  ;;  %v4083_v33 = vld [vmem:[%s4230_s7 + $0x52c] sm:$0xf] }
 0x18b   : > { %1849 = vmatmul.bf16.gmra.mxu0 %v3279_v43  ;;  %2338 = vmatmul.bf16.gmra.mxu3 %v3667_v58  ;;  %v3988_v43 = vld [vmem:[%s4230_s7 + $0x230] sm:$0xf0]  ;;  %v3676_v58 = vld [vmem:[%s4230_s7 + $0x534] sm:$0xf0] }
 0x18c   : > { %v4587_v60 = vadd.f32 %v2468_v28, %v2140_v42  ;;  %2178 = vmatmul.bf16.gmra.mxu1 %v3283_v35  ;;  %v3987_v28 = vld [vmem:[%s4230_s7 + $0x22c] sm:$0xf]  ;;  %v3292_v35 = vld [vmem:[%s4230_s7 + $0x234] sm:$0xf0]  ;;  %v3679_v4 = vor.u32 %v4083_v33, %v3676_v58 }
 0x18d   : > { %v3295_v47 = vor.u32 %v3987_v28, %v3292_v35  ;;  %v3302_v35 = vld [vmem:[%s4230_s7 + $0x240] sm:$0xf] }
 0x18e   : > { %5433 = vst [vmem:[#allocation38_spill] sm:$0xff] %v4587_v60  ;;  %v4589_v3 = vpop.f32.mrf.mxu3 }
 0x18f   : > { %5434 = vst [vmem:[#allocation39_spill] sm:$0xff] %v4589_v3  ;;  %v3291_v3 = vor.u32 %v3988_v43, %v3290_v21 }
 0x190   : > { %v2475_v53 = vpop.f32.mrf.mxu2  ;;  %v1812_v8 = vpop.f32.mrf.mxu0 }
 0x191   : > { %v2141_v57 = vpop.f32.mrf.mxu1 }
 0x192   : > { %v2142_v32 = vadd.f32 %v2141_v57, %v1812_v8 }
 0x194   : > { %v4594_v40 = vadd.f32 %v2470_v5, %v2142_v32  ;;  %v3995_v32 = vld [vmem:[%s4230_s7 + $0x268] sm:$0xf0] }
 0x195   : > { %3876 = vmatmul.msk.bf16.gmra.mxu2 %vm1538_vm0, %v3311_v16  ;;  %v3322_v16 = vld [vmem:[%s4230_s7 + $0x260] sm:$0xf] }
 0x196   : > { %5435 = vst [vmem:[#allocation40_spill] sm:$0xff] %v4594_v40  ;;  %v4602_v42 = vpop.f32.mrf.mxu3  ;;  %v3323_v58 = vor.u32 %v3995_v32, %v3322_v16 }
 0x197   : > { %5436 = vst [vmem:[#allocation41_spill] sm:$0xff] %v4602_v42 }
 0x198   : > { %v2478_v26 = vpop.f32.mrf.mxu2  ;;  %v1815_v52 = vpop.f32.mrf.mxu0 }
 0x199   : > { %v2144_v38 = vpop.f32.mrf.mxu1 }
 0x19a   : > { %v2145_v5 = vadd.f32 %v2144_v38, %v1815_v52  ;;  %v4086_v38 = vld [vmem:[%s4230_s7 + $0x544] sm:$0xf] }
 0x19b   : > { %1854 = vmatmul.bf16.gmra.mxu0 %v3291_v3  ;;  %2343 = vmatmul.bf16.gmra.mxu3 %v3679_v4  ;;  %v3991_v3 = vld [vmem:[%s4230_s7 + $0x248] sm:$0xf0]  ;;  %v3688_v4 = vld [vmem:[%s4230_s7 + $0x54c] sm:$0xf0] }
 0x19c   : > { %v4604_v8 = vadd.f32 %v2473_v30, %v2145_v5  ;;  %2183 = vmatmul.bf16.gmra.mxu1 %v3295_v47  ;;  %v3990_v30 = vld [vmem:[%s4230_s7 + $0x244] sm:$0xf]  ;;  %v3304_v47 = vld [vmem:[%s4230_s7 + $0x24c] sm:$0xf0]  ;;  %v3691_v42 = vor.u32 %v4086_v38, %v3688_v4 }
 0x19d   : > { %v3307_v16 = vor.u32 %v3990_v30, %v3304_v47  ;;  %v3314_v30 = vld [vmem:[%s4230_s7 + $0x258] sm:$0xf]  ;;  %v4089_v47 = vld [vmem:[%s4230_s7 + $0x55c] sm:$0xf] }
 0x19e   : > { %5437 = vst [vmem:[#allocation42_spill] sm:$0xff] %v4604_v8  ;;  %v4606_v57 = vpop.f32.mrf.mxu3 }
 0x19f   : > { %5438 = vst [vmem:[#allocation43_spill] sm:$0xff] %v4606_v57  ;;  %v3303_v57 = vor.u32 %v3991_v3, %v3302_v35  ;;  %v3998_v35 = vld [vmem:[%s4230_s7 + $0x280] sm:$0xf0] }
 0x1a0   : > { %v2480_v21 = vpop.f32.mrf.mxu2  ;;  %v1817_v43 = vpop.f32.mrf.mxu0 }
 0x1a1   : > { %v2146_v33 = vpop.f32.mrf.mxu1 }
 0x1a2   : > { %v2147_v28 = vadd.f32 %v2146_v33, %v1817_v43  ;;  %v3328_v33 = vld [vmem:[%s4230_s7 + $0x27c] sm:$0xf0] }
 0x1a4   : > { %v4611_v52 = vadd.f32 %v2475_v53, %v2147_v28  ;;  %v3334_v28 = vld [vmem:[%s4230_s7 + $0x278] sm:$0xf] }
 0x1a5   : > { %3877 = vmatmul.msk.bf16.gmra.mxu2 %vm1538_vm0, %v3323_v58  ;;  %v3335_v4 = vor.u32 %v3998_v35, %v3334_v28 }
 0x1a6   : > { %5439 = vst [vmem:[#allocation44_spill] sm:$0xff] %v4611_v52  ;;  %v4619_v5 = vpop.f32.mrf.mxu3  ;;  %v3506_v52 = vld [vmem:[%s4230_s7 + $0x3d8] sm:$0xf] }
 0x1a7   : > { %5440 = vst [vmem:[#allocation45_spill] sm:$0xff] %v4619_v5 }
 0x1a8   : > { %v2483_v34 = vpop.f32.mrf.mxu2  ;;  %v1820_v0 = vpop.f32.mrf.mxu0 }
 0x1a9   : > { %v2149_v32 = vpop.f32.mrf.mxu1 }
 0x1aa   : > { %v2150_v53 = vadd.f32 %v2149_v32, %v1820_v0  ;;  %v3993_v32 = vld [vmem:[%s4230_s7 + $0x25c] sm:$0xf] }
 0x1ab   : > { %1859 = vmatmul.bf16.gmra.mxu0 %v3303_v57  ;;  %2348 = vmatmul.bf16.gmra.mxu3 %v3691_v42 }
 0x1ac   : > { %v4621_v43 = vadd.f32 %v2478_v26, %v2150_v53  ;;  %2188 = vmatmul.bf16.gmra.mxu1 %v3307_v16  ;;  %v3994_v26 = vld [vmem:[%s4230_s7 + $0x260] sm:$0xf0]  ;;  %v3700_v16 = vld [vmem:[%s4230_s7 + $0x564] sm:$0xf0] }
 0x1ad   : > { %v3316_v53 = vld [vmem:[%s4230_s7 + $0x264] sm:$0xf0]  ;;  %v3703_v28 = vor.u32 %v4089_v47, %v3700_v16  ;;  %v4001_v47 = vld [vmem:[%s4230_s7 + $0x298] sm:$0xf0] }
 0x1ae   : > { %5441 = vst [vmem:[#allocation46_spill] sm:$0xff] %v4621_v43  ;;  %v4625_v58 = vpop.f32.mrf.mxu3  ;;  %v3315_v43 = vor.u32 %v3994_v26, %v3314_v30  ;;  %v3346_v26 = vld [vmem:[%s4230_s7 + $0x290] sm:$0xf] }
 0x1af   : > { %5442 = vst [vmem:[#allocation47_spill] sm:$0xff] %v4625_v58 }
 0x1b0   : > { %v2485_v3 = vpop.f32.mrf.mxu2  ;;  %v1822_v38 = vpop.f32.mrf.mxu0 }
 0x1b1   : > { %v2151_v0 = vpop.f32.mrf.mxu1 }
 0x1b2   : > { %v2152_v57 = vadd.f32 %v2151_v0, %v1822_v38 }
 0x1b4   : > { %v4630_v42 = vadd.f32 %v2480_v21, %v2152_v57  ;;  %v3319_v21 = vor.u32 %v3993_v32, %v3316_v53 }
 0x1b5   : > { %3878 = vmatmul.msk.bf16.gmra.mxu2 %vm1538_vm0, %v3335_v4 }
 0x1b6   : > { %5443 = vst [vmem:[#allocation48_spill] sm:$0xff] %v4630_v42  ;;  %v4640_v5 = vpop.f32.mrf.mxu3  ;;  %v3996_v42 = vld [vmem:[%s4230_s7 + $0x274] sm:$0xf] }
 0x1b7   : > { %5444 = vst [vmem:[#allocation49_spill] sm:$0xff] %v4640_v5  ;;  %v4002_v5 = vld [vmem:[%s4230_s7 + $0x2a4] sm:$0xf] }
 0x1b8   : > { %v2488_v35 = vpop.f32.mrf.mxu2  ;;  %v1825_v38 = vpop.f32.mrf.mxu0 }
 0x1b9   : > { %v2154_v0 = vpop.f32.mrf.mxu1 }
 0x1ba   : > { %v2155_v57 = vadd.f32 %v2154_v0, %v1825_v38  ;;  %v3347_v38 = vor.u32 %v4001_v47, %v3346_v26  ;;  %v3326_v0 = vld [vmem:[%s4230_s7 + $0x270] sm:$0xf] }
 0x1bb   : > { %1864 = vmatmul.bf16.gmra.mxu0 %v3315_v43  ;;  %2353 = vmatmul.bf16.gmra.mxu3 %v3703_v28 }
 0x1bc   : > { %v4642_v4 = vadd.f32 %v2483_v34, %v2155_v57  ;;  %2193 = vmatmul.bf16.gmra.mxu1 %v3319_v21  ;;  %v3997_v34 = vld [vmem:[%s4230_s7 + $0x278] sm:$0xf0]  ;;  %v4092_v57 = vld [vmem:[%s4230_s7 + $0x574] sm:$0xf]  ;;  %v3712_v21 = vld [vmem:[%s4230_s7 + $0x57c] sm:$0xf0] }
 0x1bd   : > { %v3715_v26 = vor.u32 %v4092_v57, %v3712_v21 }
 0x1be   : > { %5445 = vst [vmem:[#allocation50_spill] sm:$0xff] %v4642_v4  ;;  %v4646_v30 = vpop.f32.mrf.mxu3  ;;  %v3340_v4 = vld [vmem:[%s4230_s7 + $0x294] sm:$0xf0] }
 0x1bf   : > { %5446 = vst [vmem:[#allocation51_spill] sm:$0xff] %v4646_v30  ;;  %v3327_v30 = vor.u32 %v3997_v34, %v3326_v0  ;;  %v3358_v34 = vld [vmem:[%s4230_s7 + $0x2a8] sm:$0xf] }
 0x1c0   : > { %v2490_v16 = vpop.f32.mrf.mxu2  ;;  %v1827_v32 = vpop.f32.mrf.mxu0 }
 0x1c1   : > { %v2156_v53 = vpop.f32.mrf.mxu1 }
 0x1c2   : > { %v2157_v43 = vadd.f32 %v2156_v53, %v1827_v32 }
 0x1c4   : > { %v4651_v28 = vadd.f32 %v2485_v3, %v2157_v43  ;;  %v3331_v3 = vor.u32 %v3996_v42, %v3328_v33  ;;  %v4004_v33 = vld [vmem:[%s4230_s7 + $0x2b0] sm:$0xf0] }
 0x1c5   : > { %3879 = vmatmul.msk.bf16.gmra.mxu2 %vm1538_vm0, %v3347_v38 }
 0x1c6   : > { %5447 = vst [vmem:[#allocation52_spill] sm:$0xff] %v4651_v28  ;;  %v4661_v31 = vpop.f32.mrf.mxu3  ;;  %v3999_v28 = vld [vmem:[%s4230_s7 + $0x28c] sm:$0xf] }
 0x1c7   : > { %5448 = vst [vmem:[#allocation53_spill] sm:$0xff] %v4661_v31 }
 0x1c8   : > { %v2493_v47 = vpop.f32.mrf.mxu2  ;;  %v1830_v32 = vpop.f32.mrf.mxu0 }
 0x1c9   : > { %v2159_v53 = vpop.f32.mrf.mxu1 }
 0x1ca   : > { %v2160_v43 = vadd.f32 %v2159_v53, %v1830_v32  ;;  %v3359_v32 = vor.u32 %v4004_v33, %v3358_v34  ;;  %v3338_v53 = vld [vmem:[%s4230_s7 + $0x288] sm:$0xf] }
 0x1cb   : > { %1869 = vmatmul.bf16.gmra.mxu0 %v3327_v30  ;;  %2358 = vmatmul.bf16.gmra.mxu3 %v3715_v26 }
 0x1cc   : > { %v4663_v38 = vadd.f32 %v2488_v35, %v2160_v43  ;;  %2198 = vmatmul.bf16.gmra.mxu1 %v3331_v3  ;;  %v4000_v35 = vld [vmem:[%s4230_s7 + $0x290] sm:$0xf0]  ;;  %v4095_v43 = vld [vmem:[%s4230_s7 + $0x58c] sm:$0xf]  ;;  %v3724_v3 = vld [vmem:[%s4230_s7 + $0x594] sm:$0xf0] }
 0x1cd   : > { %v3339_v17 = vor.u32 %v4000_v35, %v3338_v53  ;;  %v3727_v34 = vor.u32 %v4095_v43, %v3724_v3  ;;  %v3370_v35 = vld [vmem:[%s4230_s7 + $0x2c0] sm:$0xf] }
 0x1ce   : > { %v4667_v0 = vpop.f32.mrf.mxu3 }
 0x1d0   : > { %v2495_v42 = vpop.f32.mrf.mxu2  ;;  %v1832_v57 = vpop.f32.mrf.mxu0 }
 0x1d1   : > { %v2161_v21 = vpop.f32.mrf.mxu1 }
 0x1d2   : > { %v2162_v30 = vadd.f32 %v2161_v21, %v1832_v57 }
 0x1d4   : > { %v4672_v26 = vadd.f32 %v2490_v16, %v2162_v30  ;;  %v3343_v16 = vor.u32 %v3999_v28, %v3340_v4  ;;  %v4007_v4 = vld [vmem:[%s4230_s7 + $0x2c8] sm:$0xf0] }
 0x1d5   : > { %3880 = vmatmul.msk.bf16.gmra.mxu2 %vm1538_vm0, %v3359_v32 }
 0x1d6   : > { %v4682_v31 = vpop.f32.mrf.mxu3 }
 0x1d8   : > { %v2498_v33 = vpop.f32.mrf.mxu2  ;;  %v1835_v57 = vpop.f32.mrf.mxu0 }
 0x1d9   : > { %v2164_v21 = vpop.f32.mrf.mxu1 }
 0x1da   : > { %v2165_v30 = vadd.f32 %v2164_v21, %v1835_v57  ;;  %v3371_v57 = vor.u32 %v4007_v4, %v3370_v35  ;;  %v3350_v21 = vld [vmem:[%s4230_s7 + $0x2a0] sm:$0xf] }
 0x1db   : > { %1874 = vmatmul.bf16.gmra.mxu0 %v3339_v17  ;;  %2363 = vmatmul.bf16.gmra.mxu3 %v3727_v34 }
 0x1dc   : > { %v4684_v32 = vadd.f32 %v2493_v47, %v2165_v30  ;;  %2203 = vmatmul.bf16.gmra.mxu1 %v3343_v16  ;;  %v4003_v47 = vld [vmem:[%s4230_s7 + $0x2a8] sm:$0xf0]  ;;  %v4098_v30 = vld [vmem:[%s4230_s7 + $0x5a4] sm:$0xf]  ;;  %v3736_v16 = vld [vmem:[%s4230_s7 + $0x5ac] sm:$0xf0] }
 0x1dd   : > { %v3351_v51 = vor.u32 %v4003_v47, %v3350_v21  ;;  %v3739_v35 = vor.u32 %v4098_v30, %v3736_v16  ;;  %v3382_v47 = vld [vmem:[%s4230_s7 + $0x2d8] sm:$0xf] }
 0x1de   : > { %v4688_v53 = vpop.f32.mrf.mxu3 }
 0x1e0   : > { %v2500_v28 = vpop.f32.mrf.mxu2  ;;  %v1837_v43 = vpop.f32.mrf.mxu0 }
 0x1e1   : > { %v2166_v3 = vpop.f32.mrf.mxu1 }
 0x1e2   : > { %v2167_v17 = vadd.f32 %v2166_v3, %v1837_v43 }
 0x1e4   : > { %v4693_v34 = vadd.f32 %v2495_v42, %v2167_v17  ;;  %v3355_v42 = vor.u32 %v4002_v5, %v3352_v41  ;;  %v4010_v41 = vld [vmem:[%s4230_s7 + $0x2e0] sm:$0xf0] }
 0x1e5   : > { %3881 = vmatmul.msk.bf16.gmra.mxu2 %vm1538_vm0, %v3371_v57 }
 0x1e6   : > { %v4703_v58 = vpop.f32.mrf.mxu3 }
 0x1e8   : > { %v2503_v4 = vpop.f32.mrf.mxu2  ;;  %v1840_v43 = vpop.f32.mrf.mxu0 }
 0x1e9   : > { %v2169_v3 = vpop.f32.mrf.mxu1 }
 0x1ea   : > { %v2170_v17 = vadd.f32 %v2169_v3, %v1840_v43  ;;  %v3383_v43 = vor.u32 %v4010_v41, %v3382_v47  ;;  %v3362_v3 = vld [vmem:[%s4230_s7 + $0x2b8] sm:$0xf] }
 0x1eb   : > { %1879 = vmatmul.bf16.gmra.mxu0 %v3351_v51  ;;  %2368 = vmatmul.bf16.gmra.mxu3 %v3739_v35 }
 0x1ec   : > { %v4705_v57 = vadd.f32 %v2498_v33, %v2170_v17  ;;  %2208 = vmatmul.bf16.gmra.mxu1 %v3355_v42  ;;  %v4006_v33 = vld [vmem:[%s4230_s7 + $0x2c0] sm:$0xf0]  ;;  %v4101_v17 = vld [vmem:[%s4230_s7 + $0x5bc] sm:$0xf]  ;;  %v3748_v42 = vld [vmem:[%s4230_s7 + $0x5c4] sm:$0xf0] }
 0x1ed   : > { %v3363_v36 = vor.u32 %v4006_v33, %v3362_v3  ;;  %v3751_v47 = vor.u32 %v4101_v17, %v3748_v42  ;;  %v3394_v33 = vld [vmem:[%s4230_s7 + $0x2f0] sm:$0xf] }
 0x1ee   : > { %v4709_v21 = vpop.f32.mrf.mxu3 }
 0x1f0   : > { %v2505_v5 = vpop.f32.mrf.mxu2  ;;  %v1842_v30 = vpop.f32.mrf.mxu0 }
 0x1f1   : > { %v2171_v16 = vpop.f32.mrf.mxu1 }
 0x1f2   : > { %v2172_v51 = vadd.f32 %v2171_v16, %v1842_v30 }
 0x1f4   : > { %v4714_v35 = vadd.f32 %v2500_v28, %v2172_v51  ;;  %v3367_v28 = vor.u32 %v4005_v24, %v3364_v7  ;;  %v4013_v7 = vld [vmem:[%s4230_s7 + $0x2f8] sm:$0xf0] }
 0x1f5   : > { %3882 = vmatmul.msk.bf16.gmra.mxu2 %vm1538_vm0, %v3383_v43 }
 0x1f6   : > { %v4724_v50 = vpop.f32.mrf.mxu3 }
 0x1f8   : > { %v2508_v41 = vpop.f32.mrf.mxu2  ;;  %v1845_v30 = vpop.f32.mrf.mxu0 }
 0x1f9   : > { %v2174_v16 = vpop.f32.mrf.mxu1 }
 0x1fa   : > { %v2175_v51 = vadd.f32 %v2174_v16, %v1845_v30  ;;  %v3395_v30 = vor.u32 %v4013_v7, %v3394_v33  ;;  %v3374_v16 = vld [vmem:[%s4230_s7 + $0x2d0] sm:$0xf] }
 0x1fb   : > { %1884 = vmatmul.bf16.gmra.mxu0 %v3363_v36  ;;  %2373 = vmatmul.bf16.gmra.mxu3 %v3751_v47 }
 0x1fc   : > { %v4726_v43 = vadd.f32 %v2503_v4, %v2175_v51  ;;  %2213 = vmatmul.bf16.gmra.mxu1 %v3367_v28  ;;  %v4009_v4 = vld [vmem:[%s4230_s7 + $0x2d8] sm:$0xf0]  ;;  %v4104_v51 = vld [vmem:[%s4230_s7 + $0x5d4] sm:$0xf]  ;;  %v3760_v28 = vld [vmem:[%s4230_s7 + $0x5dc] sm:$0xf0] }
 0x1fd   : > { %v3763_v33 = vor.u32 %v4104_v51, %v3760_v28 }
 0x1fe   : > { %5449 = vst [vmem:[#allocation54_spill] sm:$0xff] %v4726_v43  ;;  %v4730_v3 = vpop.f32.mrf.mxu3  ;;  %v3388_v43 = vld [vmem:[%s4230_s7 + $0x2f4] sm:$0xf0] }
 0x1ff   : > { %5450 = vst [vmem:[#allocation55_spill] sm:$0xff] %v4730_v3  ;;  %v3375_v3 = vor.u32 %v4009_v4, %v3374_v16  ;;  %v3406_v4 = vld [vmem:[%s4230_s7 + $0x308] sm:$0xf] }
 0x200   : > { %v2510_v24 = vpop.f32.mrf.mxu2  ;;  %v1847_v17 = vpop.f32.mrf.mxu0 }
 0x201   : > { %v2176_v42 = vpop.f32.mrf.mxu1 }
 0x202   : > { %v2177_v36 = vadd.f32 %v2176_v42, %v1847_v17 }
 0x204   : > { %v4735_v47 = vadd.f32 %v2505_v5, %v2177_v36  ;;  %v3379_v5 = vor.u32 %v4008_v14, %v3376_v6  ;;  %v4016_v14 = vld [vmem:[%s4230_s7 + $0x310] sm:$0xf0] }
 0x205   : > { %3883 = vmatmul.msk.bf16.gmra.mxu2 %vm1538_vm0, %v3395_v30 }
 0x206   : > { %5451 = vst [vmem:[#allocation56_spill] sm:$0xff] %v4735_v47  ;;  %v4745_v13 = vpop.f32.mrf.mxu3  ;;  %v4011_v47 = vld [vmem:[%s4230_s7 + $0x2ec] sm:$0xf] }
 0x208   : > { %v2513_v7 = vpop.f32.mrf.mxu2  ;;  %v1850_v17 = vpop.f32.mrf.mxu0 }
 0x209   : > { %v2179_v42 = vpop.f32.mrf.mxu1 }
 0x20a   : > { %v2180_v36 = vadd.f32 %v2179_v42, %v1850_v17  ;;  %v3407_v17 = vor.u32 %v4016_v14, %v3406_v4  ;;  %v3386_v42 = vld [vmem:[%s4230_s7 + $0x2e8] sm:$0xf] }
 0x20b   : > { %1889 = vmatmul.bf16.gmra.mxu0 %v3375_v3  ;;  %2378 = vmatmul.bf16.gmra.mxu3 %v3763_v33 }
 0x20c   : > { %v4747_v30 = vadd.f32 %v2508_v41, %v2180_v36  ;;  %2218 = vmatmul.bf16.gmra.mxu1 %v3379_v5  ;;  %v4012_v41 = vld [vmem:[%s4230_s7 + $0x2f0] sm:$0xf0]  ;;  %v4107_v36 = vld [vmem:[%s4230_s7 + $0x5ec] sm:$0xf]  ;;  %v3772_v5 = vld [vmem:[%s4230_s7 + $0x5f4] sm:$0xf0] }
 0x20d   : > { %v3775_v4 = vor.u32 %v4107_v36, %v3772_v5 }
 0x20e   : > { %5452 = vst [vmem:[#allocation57_spill] sm:$0xff] %v4747_v30  ;;  %v4751_v16 = vpop.f32.mrf.mxu3  ;;  %v3400_v30 = vld [vmem:[%s4230_s7 + $0x30c] sm:$0xf0] }
 0x20f   : > { %5453 = vst [vmem:[#allocation58_spill] sm:$0xff] %v4751_v16  ;;  %v3387_v16 = vor.u32 %v4012_v41, %v3386_v42  ;;  %v3418_v41 = vld [vmem:[%s4230_s7 + $0x320] sm:$0xf] }
 0x210   : > { %v2515_v6 = vpop.f32.mrf.mxu2  ;;  %v1852_v51 = vpop.f32.mrf.mxu0 }
 0x211   : > { %v2181_v28 = vpop.f32.mrf.mxu1 }
 0x212   : > { %v2182_v3 = vadd.f32 %v2181_v28, %v1852_v51 }
 0x214   : > { %v4756_v33 = vadd.f32 %v2510_v24, %v2182_v3  ;;  %v3391_v24 = vor.u32 %v4011_v47, %v3388_v43  ;;  %v4019_v43 = vld [vmem:[%s4230_s7 + $0x328] sm:$0xf0] }
 0x215   : > { %3884 = vmatmul.msk.bf16.gmra.mxu2 %vm1538_vm0, %v3407_v17 }
 0x216   : > { %5454 = vst [vmem:[#allocation59_spill] sm:$0xff] %v4756_v33  ;;  %v4766_v49 = vpop.f32.mrf.mxu3  ;;  %v4014_v33 = vld [vmem:[%s4230_s7 + $0x304] sm:$0xf] }
 0x218   : > { %v2518_v14 = vpop.f32.mrf.mxu2  ;;  %v1855_v51 = vpop.f32.mrf.mxu0 }
 0x219   : > { %v2184_v28 = vpop.f32.mrf.mxu1 }
 0x21a   : > { %v2185_v3 = vadd.f32 %v2184_v28, %v1855_v51  ;;  %v3419_v51 = vor.u32 %v4019_v43, %v3418_v41  ;;  %v3398_v28 = vld [vmem:[%s4230_s7 + $0x300] sm:$0xf] }
 0x21b   : > { %1894 = vmatmul.bf16.gmra.mxu0 %v3387_v16  ;;  %2383 = vmatmul.bf16.gmra.mxu3 %v3775_v4 }
 0x21c   : > { %v4768_v17 = vadd.f32 %v2513_v7, %v2185_v3  ;;  %2223 = vmatmul.bf16.gmra.mxu1 %v3391_v24  ;;  %v4015_v7 = vld [vmem:[%s4230_s7 + $0x308] sm:$0xf0]  ;;  %v3622_v3 = vld [vmem:[%s4230_s7 + $0x4b8] sm:$0xf]  ;;  %v4070_v24 = vld [vmem:[%s4230_s7 + $0x4c0] sm:$0xf0] }
 0x21d   : > { %v3623_v41 = vor.u32 %v4070_v24, %v3622_v3 }
 0x21e   : > { %5455 = vst [vmem:[#allocation60_spill] sm:$0xff] %v4768_v17  ;;  %v4772_v42 = vpop.f32.mrf.mxu3  ;;  %v3410_v17 = vld [vmem:[%s4230_s7 + $0x318] sm:$0xf] }
 0x21f   : > { %5456 = vst [vmem:[#allocation61_spill] sm:$0xff] %v4772_v42  ;;  %v3399_v42 = vor.u32 %v4015_v7, %v3398_v28  ;;  %v3412_v28 = vld [vmem:[%s4230_s7 + $0x324] sm:$0xf0] }
 0x220   : > { %v2520_v47 = vpop.f32.mrf.mxu2  ;;  %v1857_v36 = vpop.f32.mrf.mxu0 }
 0x221   : > { %v2186_v5 = vpop.f32.mrf.mxu1 }
 0x222   : > { %v2187_v16 = vadd.f32 %v2186_v5, %v1857_v36 }
 0x224   : > { %v4777_v4 = vadd.f32 %v2515_v6, %v2187_v16  ;;  %v3403_v6 = vor.u32 %v4014_v33, %v3400_v30  ;;  %v3430_v30 = vld [vmem:[%s4230_s7 + $0x338] sm:$0xf]  ;;  %v4022_v33 = vld [vmem:[%s4230_s7 + $0x340] sm:$0xf0] }
 0x225   : > { %3885 = vmatmul.msk.bf16.gmra.mxu2 %vm1538_vm0, %v3419_v51 }
 0x226   : > { %5457 = vst [vmem:[#allocation62_spill] sm:$0xff] %v4777_v4  ;;  %v4787_v22 = vpop.f32.mrf.mxu3  ;;  %v4017_v4 = vld [vmem:[%s4230_s7 + $0x31c] sm:$0xf] }
 0x228   : > { %v2523_v43 = vpop.f32.mrf.mxu2  ;;  %v1860_v36 = vpop.f32.mrf.mxu0 }
 0x229   : > { %v2189_v5 = vpop.f32.mrf.mxu1 }
 0x22a   : > { %v2190_v16 = vadd.f32 %v2189_v5, %v1860_v36 }
 0x22b   : > { %1899 = vmatmul.bf16.gmra.mxu0 %v3399_v42  ;;  %3902 = vmatmul.msk.bf16.vlgmr.msra.gmra.mxu3 %vm1538_vm0, %v3623_v41  ;;  %v3431_v42 = vor.u32 %v4022_v33, %v3430_v30 }
 0x22c   : > { %v4790_v51 = vadd.f32 %v2518_v14, %v2190_v16  ;;  %2228 = vmatmul.bf16.gmra.mxu1 %v3403_v6  ;;  %v4018_v14 = vld [vmem:[%s4230_s7 + $0x320] sm:$0xf0]  ;;  %v3634_v16 = vld [vmem:[%s4230_s7 + $0x4d0] sm:$0xf]  ;;  %v4073_v6 = vld [vmem:[%s4230_s7 + $0x4d8] sm:$0xf0] }
 0x22d   : > { %v3635_v30 = vor.u32 %v4073_v6, %v3634_v16 }
 0x22e   : > { %5458 = vst [vmem:[#allocation63_spill] sm:$0xff] %v4790_v51  ;;  %v4794_v7 = vpop.f32.mrf.mxu3  ;;  %v3422_v51 = vld [vmem:[%s4230_s7 + $0x330] sm:$0xf] }
 0x22f   : > { %5459 = vst [vmem:[#allocation64_spill] sm:$0xff] %v4794_v7  ;;  %v3411_v7 = vor.u32 %v4018_v14, %v3410_v17  ;;  %v3424_v17 = vld [vmem:[%s4230_s7 + $0x33c] sm:$0xf0] }
 0x230   : > { %v2525_v3 = vpop.f32.mrf.mxu2  ;;  %v1862_v24 = vpop.f32.mrf.mxu0 }
 0x231   : > { %v2191_v36 = vpop.f32.mrf.mxu1 }
 0x232   : > { %v2192_v5 = vadd.f32 %v2191_v36, %v1862_v24 }
 0x234   : > { %v4799_v41 = vadd.f32 %v2520_v47, %v2192_v5  ;;  %v3415_v47 = vor.u32 %v4017_v4, %v3412_v28  ;;  %v3442_v4 = vld [vmem:[%s4230_s7 + $0x350] sm:$0xf]  ;;  %v4025_v28 = vld [vmem:[%s4230_s7 + $0x358] sm:$0xf0] }
 0x235   : > { %3886 = vmatmul.msk.bf16.gmra.mxu2 %vm1538_vm0, %v3431_v42 }
 0x236   : > { %5460 = vst [vmem:[#allocation65_spill] sm:$0xff] %v4799_v41  ;;  %v4809_v63 = vpop.f32.mrf.mxu3  ;;  %v4020_v41 = vld [vmem:[%s4230_s7 + $0x334] sm:$0xf] }
 0x238   : > { %v2528_v33 = vpop.f32.mrf.mxu2  ;;  %v1865_v24 = vpop.f32.mrf.mxu0 }
 0x239   : > { %v2194_v36 = vpop.f32.mrf.mxu1 }
 0x23a   : > { %v2195_v5 = vadd.f32 %v2194_v36, %v1865_v24 }
 0x23b   : > { %1904 = vmatmul.bf16.gmra.mxu0 %v3411_v7  ;;  %3903 = vmatmul.msk.bf16.gmra.mxu3 %vm1538_vm0, %v3635_v30  ;;  %v3443_v7 = vor.u32 %v4025_v28, %v3442_v4 }
 0x23c   : > { %v4812_v42 = vadd.f32 %v2523_v43, %v2195_v5  ;;  %2233 = vmatmul.bf16.gmra.mxu1 %v3415_v47  ;;  %v4021_v43 = vld [vmem:[%s4230_s7 + $0x338] sm:$0xf0]  ;;  %v3646_v5 = vld [vmem:[%s4230_s7 + $0x4e8] sm:$0xf]  ;;  %v4076_v47 = vld [vmem:[%s4230_s7 + $0x4f0] sm:$0xf0] }
 0x23d   : > { %v3647_v4 = vor.u32 %v4076_v47, %v3646_v5 }
 0x23e   : > { %5461 = vst [vmem:[#allocation66_spill] sm:$0xff] %v4812_v42  ;;  %v4816_v14 = vpop.f32.mrf.mxu3  ;;  %v3434_v42 = vld [vmem:[%s4230_s7 + $0x348] sm:$0xf] }
 0x23f   : > { %5462 = vst [vmem:[#allocation67_spill] sm:$0xff] %v4816_v14  ;;  %v3423_v14 = vor.u32 %v4021_v43, %v3422_v51  ;;  %v3436_v51 = vld [vmem:[%s4230_s7 + $0x354] sm:$0xf0] }
 0x240   : > { %v2530_v16 = vpop.f32.mrf.mxu2  ;;  %v1867_v6 = vpop.f32.mrf.mxu0 }
 0x241   : > { %v2196_v24 = vpop.f32.mrf.mxu1 }
 0x242   : > { %v2197_v36 = vadd.f32 %v2196_v24, %v1867_v6 }
 0x244   : > { %v4821_v30 = vadd.f32 %v2525_v3, %v2197_v36  ;;  %v3427_v3 = vor.u32 %v4020_v41, %v3424_v17  ;;  %v3454_v41 = vld [vmem:[%s4230_s7 + $0x368] sm:$0xf]  ;;  %v4028_v17 = vld [vmem:[%s4230_s7 + $0x370] sm:$0xf0] }
 0x245   : > { %3887 = vmatmul.msk.bf16.gmra.mxu2 %vm1538_vm0, %v3443_v7 }
 0x246   : > { %5463 = vst [vmem:[#allocation68_spill] sm:$0xff] %v4821_v30  ;;  %v4831_v45 = vpop.f32.mrf.mxu3  ;;  %v4023_v30 = vld [vmem:[%s4230_s7 + $0x34c] sm:$0xf] }
 0x248   : > { %v2533_v28 = vpop.f32.mrf.mxu2  ;;  %v1870_v6 = vpop.f32.mrf.mxu0 }
 0x249   : > { %v2199_v24 = vpop.f32.mrf.mxu1 }
 0x24a   : > { %v2200_v36 = vadd.f32 %v2199_v24, %v1870_v6 }
 0x24b   : > { %1909 = vmatmul.bf16.gmra.mxu0 %v3423_v14  ;;  %3904 = vmatmul.msk.bf16.gmra.mxu3 %vm1538_vm0, %v3647_v4  ;;  %v3455_v14 = vor.u32 %v4028_v17, %v3454_v41 }
 0x24c   : > { %v4834_v7 = vadd.f32 %v2528_v33, %v2200_v36  ;;  %2238 = vmatmul.bf16.gmra.mxu1 %v3427_v3  ;;  %v4024_v33 = vld [vmem:[%s4230_s7 + $0x350] sm:$0xf0]  ;;  %v3658_v36 = vld [vmem:[%s4230_s7 + $0x500] sm:$0xf]  ;;  %v4079_v3 = vld [vmem:[%s4230_s7 + $0x508] sm:$0xf0] }
 0x24d   : > { %v3659_v41 = vor.u32 %v4079_v3, %v3658_v36 }
 0x24e   : > { %5464 = vst [vmem:[#allocation69_spill] sm:$0xff] %v4834_v7  ;;  %v4838_v43 = vpop.f32.mrf.mxu3  ;;  %v3446_v7 = vld [vmem:[%s4230_s7 + $0x360] sm:$0xf] }
 0x24f   : > { %5465 = vst [vmem:[#allocation70_spill] sm:$0xff] %v4838_v43  ;;  %v3435_v43 = vor.u32 %v4024_v33, %v3434_v42  ;;  %v3448_v42 = vld [vmem:[%s4230_s7 + $0x36c] sm:$0xf0] }
 0x250   : > { %v2535_v5 = vpop.f32.mrf.mxu2  ;;  %v1872_v47 = vpop.f32.mrf.mxu0 }
 0x251   : > { %v2201_v6 = vpop.f32.mrf.mxu1 }
 0x252   : > { %v2202_v24 = vadd.f32 %v2201_v6, %v1872_v47 }
 0x254   : > { %v4843_v4 = vadd.f32 %v2530_v16, %v2202_v24  ;;  %v3439_v16 = vor.u32 %v4023_v30, %v3436_v51  ;;  %v3466_v30 = vld [vmem:[%s4230_s7 + $0x380] sm:$0xf]  ;;  %v4031_v51 = vld [vmem:[%s4230_s7 + $0x388] sm:$0xf0] }
 0x255   : > { %3888 = vmatmul.msk.bf16.gmra.mxu2 %vm1538_vm0, %v3455_v14 }
 0x256   : > { %5466 = vst [vmem:[#allocation71_spill] sm:$0xff] %v4843_v4  ;;  %v4853_v44 = vpop.f32.mrf.mxu3  ;;  %v4026_v4 = vld [vmem:[%s4230_s7 + $0x364] sm:$0xf] }
 0x258   : > { %v2538_v17 = vpop.f32.mrf.mxu2  ;;  %v1875_v47 = vpop.f32.mrf.mxu0 }
 0x259   : > { %v2204_v6 = vpop.f32.mrf.mxu1 }
 0x25a   : > { %v2205_v24 = vadd.f32 %v2204_v6, %v1875_v47 }
 0x25b   : > { %1914 = vmatmul.bf16.gmra.mxu0 %v3435_v43  ;;  %3905 = vmatmul.msk.bf16.gmra.mxu3 %vm1538_vm0, %v3659_v41  ;;  %v3467_v43 = vor.u32 %v4031_v51, %v3466_v30 }
 0x25c   : > { %v4856_v14 = vadd.f32 %v2533_v28, %v2205_v24  ;;  %2243 = vmatmul.bf16.gmra.mxu1 %v3439_v16  ;;  %v4027_v28 = vld [vmem:[%s4230_s7 + $0x368] sm:$0xf0]  ;;  %v3670_v24 = vld [vmem:[%s4230_s7 + $0x518] sm:$0xf]  ;;  %v4082_v16 = vld [vmem:[%s4230_s7 + $0x520] sm:$0xf0] }
 0x25d   : > { %v3671_v30 = vor.u32 %v4082_v16, %v3670_v24 }
 0x25e   : > { %5467 = vst [vmem:[#allocation72_spill] sm:$0xff] %v4856_v14  ;;  %v4860_v33 = vpop.f32.mrf.mxu3  ;;  %v3458_v14 = vld [vmem:[%s4230_s7 + $0x378] sm:$0xf] }
 0x25f   : > { %5468 = vst [vmem:[#allocation73_spill] sm:$0xff] %v4860_v33  ;;  %v3447_v33 = vor.u32 %v4027_v28, %v3446_v7  ;;  %v3460_v7 = vld [vmem:[%s4230_s7 + $0x384] sm:$0xf0] }
 0x260   : > { %v2540_v36 = vpop.f32.mrf.mxu2  ;;  %v1877_v3 = vpop.f32.mrf.mxu0 }
 0x261   : > { %v2206_v47 = vpop.f32.mrf.mxu1 }
 0x262   : > { %v2207_v6 = vadd.f32 %v2206_v47, %v1877_v3 }
 0x264   : > { %v4865_v41 = vadd.f32 %v2535_v5, %v2207_v6  ;;  %v3451_v5 = vor.u32 %v4026_v4, %v3448_v42  ;;  %v3478_v4 = vld [vmem:[%s4230_s7 + $0x398] sm:$0xf]  ;;  %v4034_v42 = vld [vmem:[%s4230_s7 + $0x3a0] sm:$0xf0] }
 0x265   : > { %3889 = vmatmul.msk.bf16.gmra.mxu2 %vm1538_vm0, %v3467_v43 }
 0x266   : > { %5469 = vst [vmem:[#allocation74_spill] sm:$0xff] %v4865_v41  ;;  %v4875_v54 = vpop.f32.mrf.mxu3  ;;  %v4029_v41 = vld [vmem:[%s4230_s7 + $0x37c] sm:$0xf] }
 0x268   : > { %v2543_v51 = vpop.f32.mrf.mxu2  ;;  %v1880_v3 = vpop.f32.mrf.mxu0 }
 0x269   : > { %v2209_v47 = vpop.f32.mrf.mxu1 }
 0x26a   : > { %v2210_v6 = vadd.f32 %v2209_v47, %v1880_v3 }
 0x26b   : > { %1919 = vmatmul.bf16.gmra.mxu0 %v3447_v33  ;;  %3906 = vmatmul.msk.bf16.gmra.mxu3 %vm1538_vm0, %v3671_v30  ;;  %v3479_v33 = vor.u32 %v4034_v42, %v3478_v4 }
 0x26c   : > { %v4878_v43 = vadd.f32 %v2538_v17, %v2210_v6  ;;  %2248 = vmatmul.bf16.gmra.mxu1 %v3451_v5  ;;  %v4030_v17 = vld [vmem:[%s4230_s7 + $0x380] sm:$0xf0]  ;;  %v3682_v6 = vld [vmem:[%s4230_s7 + $0x530] sm:$0xf]  ;;  %v4085_v5 = vld [vmem:[%s4230_s7 + $0x538] sm:$0xf0] }
 0x26d   : > { %v3683_v4 = vor.u32 %v4085_v5, %v3682_v6 }
 0x26e   : > { %5470 = vst [vmem:[#allocation75_spill] sm:$0xff] %v4878_v43  ;;  %v4882_v28 = vpop.f32.mrf.mxu3  ;;  %v3470_v43 = vld [vmem:[%s4230_s7 + $0x390] sm:$0xf] }
 0x26f   : > { %5471 = vst [vmem:[#allocation76_spill] sm:$0xff] %v4882_v28  ;;  %v3459_v28 = vor.u32 %v4030_v17, %v3458_v14  ;;  %v3472_v14 = vld [vmem:[%s4230_s7 + $0x39c] sm:$0xf0] }
 0x270   : > { %v2545_v24 = vpop.f32.mrf.mxu2  ;;  %v1882_v16 = vpop.f32.mrf.mxu0 }
 0x271   : > { %v2211_v3 = vpop.f32.mrf.mxu1 }
 0x272   : > { %v2212_v47 = vadd.f32 %v2211_v3, %v1882_v16 }
 0x274   : > { %v4887_v30 = vadd.f32 %v2540_v36, %v2212_v47  ;;  %v3463_v36 = vor.u32 %v4029_v41, %v3460_v7  ;;  %v3490_v41 = vld [vmem:[%s4230_s7 + $0x3b0] sm:$0xf]  ;;  %v4037_v7 = vld [vmem:[%s4230_s7 + $0x3b8] sm:$0xf0] }
 0x275   : > { %3890 = vmatmul.msk.bf16.gmra.mxu2 %vm1538_vm0, %v3479_v33 }
 0x276   : > { %5472 = vst [vmem:[#allocation77_spill] sm:$0xff] %v4887_v30  ;;  %v4897_v10 = vpop.f32.mrf.mxu3  ;;  %v4032_v30 = vld [vmem:[%s4230_s7 + $0x394] sm:$0xf] }
 0x278   : > { %v2548_v42 = vpop.f32.mrf.mxu2  ;;  %v1885_v16 = vpop.f32.mrf.mxu0 }
 0x279   : > { %v2214_v3 = vpop.f32.mrf.mxu1 }
 0x27a   : > { %v2215_v47 = vadd.f32 %v2214_v3, %v1885_v16 }
 0x27b   : > { %1924 = vmatmul.bf16.gmra.mxu0 %v3459_v28  ;;  %3907 = vmatmul.msk.bf16.gmra.mxu3 %vm1538_vm0, %v3683_v4  ;;  %v3491_v28 = vor.u32 %v4037_v7, %v3490_v41 }
 0x27c   : > { %v4900_v33 = vadd.f32 %v2543_v51, %v2215_v47  ;;  %2253 = vmatmul.bf16.gmra.mxu1 %v3463_v36  ;;  %v4033_v51 = vld [vmem:[%s4230_s7 + $0x398] sm:$0xf0]  ;;  %v3694_v47 = vld [vmem:[%s4230_s7 + $0x548] sm:$0xf]  ;;  %v4088_v36 = vld [vmem:[%s4230_s7 + $0x550] sm:$0xf0] }
 0x27d   : > { %v3695_v41 = vor.u32 %v4088_v36, %v3694_v47 }
 0x27e   : > { %5473 = vst [vmem:[#allocation78_spill] sm:$0xff] %v4900_v33  ;;  %v4904_v17 = vpop.f32.mrf.mxu3  ;;  %v3482_v33 = vld [vmem:[%s4230_s7 + $0x3a8] sm:$0xf] }
 0x27f   : > { %5474 = vst [vmem:[#allocation79_spill] sm:$0xff] %v4904_v17  ;;  %v3471_v17 = vor.u32 %v4033_v51, %v3470_v43  ;;  %v3484_v43 = vld [vmem:[%s4230_s7 + $0x3b4] sm:$0xf0] }
 0x280   : > { %v2550_v6 = vpop.f32.mrf.mxu2  ;;  %v1887_v5 = vpop.f32.mrf.mxu0 }
 0x281   : > { %v2216_v16 = vpop.f32.mrf.mxu1 }
 0x282   : > { %v2217_v3 = vadd.f32 %v2216_v16, %v1887_v5 }
 0x284   : > { %v4909_v4 = vadd.f32 %v2545_v24, %v2217_v3  ;;  %v3475_v24 = vor.u32 %v4032_v30, %v3472_v14  ;;  %v3502_v30 = vld [vmem:[%s4230_s7 + $0x3c8] sm:$0xf]  ;;  %v4040_v14 = vld [vmem:[%s4230_s7 + $0x3d0] sm:$0xf0] }
 0x285   : > { %3891 = vmatmul.msk.bf16.gmra.mxu2 %vm1538_vm0, %v3491_v28 }
 0x286   : > { %5475 = vst [vmem:[#allocation80_spill] sm:$0xff] %v4909_v4  ;;  %v4919_v12 = vpop.f32.mrf.mxu3  ;;  %v4035_v4 = vld [vmem:[%s4230_s7 + $0x3ac] sm:$0xf] }
 0x288   : > { %v2553_v7 = vpop.f32.mrf.mxu2  ;;  %v1890_v5 = vpop.f32.mrf.mxu0 }
 0x289   : > { %v2219_v16 = vpop.f32.mrf.mxu1 }
 0x28a   : > { %v2220_v3 = vadd.f32 %v2219_v16, %v1890_v5 }
 0x28b   : > { %1929 = vmatmul.bf16.gmra.mxu0 %v3471_v17  ;;  %3908 = vmatmul.msk.bf16.gmra.mxu3 %vm1538_vm0, %v3695_v41  ;;  %v3503_v17 = vor.u32 %v4040_v14, %v3502_v30 }
 0x28c   : > { %v4922_v28 = vadd.f32 %v2548_v42, %v2220_v3  ;;  %2258 = vmatmul.bf16.gmra.mxu1 %v3475_v24  ;;  %v4036_v42 = vld [vmem:[%s4230_s7 + $0x3b0] sm:$0xf0]  ;;  %v3706_v3 = vld [vmem:[%s4230_s7 + $0x560] sm:$0xf]  ;;  %v4091_v24 = vld [vmem:[%s4230_s7 + $0x568] sm:$0xf0] }
 0x28d   : > { %v3707_v30 = vor.u32 %v4091_v24, %v3706_v3 }
 0x28e   : > { %5476 = vst [vmem:[#allocation81_spill] sm:$0xff] %v4922_v28  ;;  %v4926_v51 = vpop.f32.mrf.mxu3  ;;  %v3494_v28 = vld [vmem:[%s4230_s7 + $0x3c0] sm:$0xf] }
 0x28f   : > { %5477 = vst [vmem:[#allocation82_spill] sm:$0xff] %v4926_v51  ;;  %v3483_v51 = vor.u32 %v4036_v42, %v3482_v33  ;;  %v3496_v33 = vld [vmem:[%s4230_s7 + $0x3cc] sm:$0xf0] }
 0x290   : > { %v2555_v47 = vpop.f32.mrf.mxu2  ;;  %v1892_v36 = vpop.f32.mrf.mxu0 }
 0x291   : > { %v2221_v5 = vpop.f32.mrf.mxu1 }
 0x292   : > { %v2222_v16 = vadd.f32 %v2221_v5, %v1892_v36 }
 0x294   : > { %v4931_v41 = vadd.f32 %v2550_v6, %v2222_v16  ;;  %v3487_v6 = vor.u32 %v4035_v4, %v3484_v43  ;;  %v3514_v4 = vld [vmem:[%s4230_s7 + $0x3e0] sm:$0xf]  ;;  %v4043_v43 = vld [vmem:[%s4230_s7 + $0x3e8] sm:$0xf0] }
 0x295   : > { %3892 = vmatmul.msk.bf16.gmra.mxu2 %vm1538_vm0, %v3503_v17 }
 0x296   : > { %5478 = vst [vmem:[#allocation83_spill] sm:$0xff] %v4931_v41  ;;  %v4941_v60 = vpop.f32.mrf.mxu3  ;;  %v4038_v41 = vld [vmem:[%s4230_s7 + $0x3c4] sm:$0xf] }
 0x297   : > { %5479 = vst [vmem:[#allocation84_spill] sm:$0xff] %v4941_v60 }
 0x298   : > { %v2558_v14 = vpop.f32.mrf.mxu2  ;;  %v1895_v36 = vpop.f32.mrf.mxu0 }
 0x299   : > { %v2224_v5 = vpop.f32.mrf.mxu1 }
 0x29a   : > { %v2225_v16 = vadd.f32 %v2224_v5, %v1895_v36 }
 0x29b   : > { %1934 = vmatmul.bf16.gmra.mxu0 %v3483_v51  ;;  %3909 = vmatmul.msk.bf16.gmra.mxu3 %vm1538_vm0, %v3707_v30  ;;  %v3515_v51 = vor.u32 %v4043_v43, %v3514_v4 }
 0x29c   : > { %v4944_v17 = vadd.f32 %v2553_v7, %v2225_v16  ;;  %2263 = vmatmul.bf16.gmra.mxu1 %v3487_v6  ;;  %v4039_v7 = vld [vmem:[%s4230_s7 + $0x3c8] sm:$0xf0]  ;;  %v3718_v16 = vld [vmem:[%s4230_s7 + $0x578] sm:$0xf]  ;;  %v4094_v6 = vld [vmem:[%s4230_s7 + $0x580] sm:$0xf0] }
 0x29d   : > { %v3719_v4 = vor.u32 %v4094_v6, %v3718_v16 }
 0x29e   : > { %5480 = vst [vmem:[#allocation85_spill] sm:$0xff] %v4944_v17  ;;  %v4948_v42 = vpop.f32.mrf.mxu3 }
 0x29f   : > { %5481 = vst [vmem:[#allocation86_spill] sm:$0xff] %v4948_v42  ;;  %v3495_v42 = vor.u32 %v4039_v7, %v3494_v28  ;;  %v3526_v28 = vld [vmem:[%s4230_s7 + $0x3f8] sm:$0xf]  ;;  %v4046_v7 = vld [vmem:[%s4230_s7 + $0x400] sm:$0xf0] }
 0x2a0   : > { %v2560_v3 = vpop.f32.mrf.mxu2  ;;  %v1897_v24 = vpop.f32.mrf.mxu0 }
 0x2a1   : > { %v2226_v36 = vpop.f32.mrf.mxu1 }
 0x2a2   : > { %v2227_v5 = vadd.f32 %v2226_v36, %v1897_v24 }
 0x2a4   : > { %v4953_v30 = vadd.f32 %v2555_v47, %v2227_v5  ;;  %v3499_v47 = vor.u32 %v4038_v41, %v3496_v33  ;;  %v3527_v41 = vor.u32 %v4046_v7, %v3526_v28 }
 0x2a5   : > { %3893 = vmatmul.msk.bf16.gmra.mxu2 %vm1538_vm0, %v3515_v51 }
 0x2a6   : > { %5482 = vst [vmem:[#allocation87_spill] sm:$0xff] %v4953_v30  ;;  %v4963_v8 = vpop.f32.mrf.mxu3 }
 0x2a7   : > { %5483 = vst [vmem:[#allocation88_spill] sm:$0xff] %v4963_v8  ;;  %v4097_v8 = vld [vmem:[%s4230_s7 + $0x598] sm:$0xf0] }
 0x2a8   : > { %v2563_v43 = vpop.f32.mrf.mxu2  ;;  %v1900_v24 = vpop.f32.mrf.mxu0 }
 0x2a9   : > { %v2229_v36 = vpop.f32.mrf.mxu1 }
 0x2aa   : > { %v2230_v5 = vadd.f32 %v2229_v36, %v1900_v24  ;;  %v3730_v36 = vld [vmem:[%s4230_s7 + $0x590] sm:$0xf] }
 0x2ab   : > { %1939 = vmatmul.bf16.gmra.mxu0 %v3495_v42  ;;  %3910 = vmatmul.msk.bf16.gmra.mxu3 %vm1538_vm0, %v3719_v4  ;;  %v4042_v42 = vld [vmem:[%s4230_s7 + $0x3e0] sm:$0xf0]  ;;  %v3508_v4 = vld [vmem:[%s4230_s7 + $0x3e4] sm:$0xf0] }
 0x2ac   : > { %v4966_v51 = vadd.f32 %v2558_v14, %v2230_v5  ;;  %2268 = vmatmul.bf16.gmra.mxu1 %v3499_v47  ;;  %v4041_v14 = vld [vmem:[%s4230_s7 + $0x3dc] sm:$0xf]  ;;  %v3507_v5 = vor.u32 %v4042_v42, %v3506_v52 }
 0x2ad   : > { %v3511_v28 = vor.u32 %v4041_v14, %v3508_v4  ;;  %v4049_v52 = vld [vmem:[%s4230_s7 + $0x418] sm:$0xf0]  ;;  %v3518_v14 = vld [vmem:[%s4230_s7 + $0x3f0] sm:$0xf] }
 0x2ae   : > { %5484 = vst [vmem:[#allocation89_spill] sm:$0xff] %v4966_v51  ;;  %v2648_v17 = vpop.f32.mrf.mxu3  ;;  %v3731_v51 = vor.u32 %v4097_v8, %v3730_v36  ;;  %v3538_v8 = vld [vmem:[%s4230_s7 + $0x410] sm:$0xf] }
 0x2af   : > { %v3539_v36 = vor.u32 %v4049_v52, %v3538_v8 }
 0x2b0   : > { %v2565_v16 = vpop.f32.mrf.mxu2  ;;  %v1902_v6 = vpop.f32.mrf.mxu0 }
 0x2b1   : > { %v2231_v30 = vpop.f32.mrf.mxu1 }
 0x2b2   : > { %v2232_v33 = vadd.f32 %v2231_v30, %v1902_v6 }
 0x2b4   : > { %v4971_v24 = vadd.f32 %v2560_v3, %v2232_v33 }
 0x2b5   : > { %3894 = vmatmul.msk.bf16.gmra.mxu2 %vm1538_vm0, %v3527_v41 }
 0x2b6   : > { %5485 = vst [vmem:[#allocation90_spill] sm:$0xff] %v4971_v24  ;;  %v2650_v47 = vpop.f32.mrf.mxu3 }
 0x2b8   : > { %v2568_v40 = vpop.f32.mrf.mxu2  ;;  %v1905_v60 = vpop.f32.mrf.mxu0 }
 0x2b9   : > { %v2234_v30 = vpop.f32.mrf.mxu1 }
 0x2ba   : > { %v2235_v3 = vadd.f32 %v2234_v30, %v1905_v60  ;;  %v3520_v30 = vld [vmem:[%s4230_s7 + $0x3fc] sm:$0xf0] }
 0x2bb   : > { %1944 = vmatmul.bf16.gmra.mxu0 %v3507_v5  ;;  %3911 = vmatmul.msk.bf16.gmra.mxu3 %vm1538_vm0, %v3731_v51  ;;  %v4045_v5 = vld [vmem:[%s4230_s7 + $0x3f8] sm:$0xf0]  ;;  %v3742_v51 = vld [vmem:[%s4230_s7 + $0x5a8] sm:$0xf] }
 0x2bc   : > { %v4980_v7 = vadd.f32 %v2563_v43, %v2235_v3  ;;  %2273 = vmatmul.bf16.gmra.mxu1 %v3511_v28  ;;  %v4100_v43 = vld [vmem:[%s4230_s7 + $0x5b0] sm:$0xf0] }
 0x2bd   : > { %v4044_v28 = vld [vmem:[%s4230_s7 + $0x3f4] sm:$0xf]  ;;  %v3743_v24 = vor.u32 %v4100_v43, %v3742_v51  ;;  %v3550_v43 = vld [vmem:[%s4230_s7 + $0x428] sm:$0xf] }
 0x2be   : > { %5486 = vst [vmem:[#allocation91_spill] sm:$0xff] %v4980_v7  ;;  %v4982_v6 = vpop.f32.mrf.mxu3  ;;  %v3519_v7 = vor.u32 %v4045_v5, %v3518_v14  ;;  %v3523_v52 = vor.u32 %v4044_v28, %v3520_v30  ;;  %v5005_v5 = vld [vmem:[%s5351_s2] ss:$0 sm:$0xff]  ;;  %v2322_v30 = vadd.f32 %v4682_v31, %v4398_v9  ;;  %v4047_v31 = vld [vmem:[%s4230_s7 + $0x40c] sm:$0xf] }
 0x2bf   : > { %v3532_v9 = vld [vmem:[%s4230_s7 + $0x414] sm:$0xf0] }
 0x2c0   : > { %v2570_v41 = vpop.f32.mrf.mxu2  ;;  %v1907_v33 = vpop.f32.mrf.mxu0 }
 0x2c1   : > { %v2236_v42 = vpop.f32.mrf.mxu1 }
 0x2c2   : > { %v2237_v60 = vadd.f32 %v2236_v42, %v1907_v33  ;;  %v2320_v33 = vadd.f32 %v4667_v0, %v4385_v56  ;;  %v4052_v56 = vld [vmem:[%s4230_s7 + $0x430] sm:$0xf0]  ;;  %v5487_v0 = vmax.f32 %v4383_v55, %v4663_v38  ;;  %v3754_v38 = vld [vmem:[%s4230_s7 + $0x5c0] sm:$0xf] }
 0x2c3   : > { %v3551_v28 = vor.u32 %v4052_v56, %v3550_v43 }
 0x2c4   : > { %v4987_v4 = vadd.f32 %v2565_v16, %v2237_v60 }
 0x2c5   : > { %3895 = vmatmul.msk.bf16.gmra.mxu2 %vm1538_vm0, %v3539_v36  ;;  %v2649_v36 = vadd.f32 %v2648_v17, %v2320_v33  ;;  %v4048_v33 = vld [vmem:[%s4230_s7 + $0x410] sm:$0xf0] }
 0x2c6   : > { %v4995_v3 = vpop.f32.mrf.mxu3 }
 0x2c8   : > { %v2573_v61 = vpop.f32.mrf.mxu2  ;;  %v1910_v8 = vpop.f32.mrf.mxu0 }
 0x2c9   : > { %v2239_v16 = vpop.f32.mrf.mxu1 }
 0x2ca   : > { %v2240_v42 = vadd.f32 %v2239_v16, %v1910_v8  ;;  %v3530_v16 = vld [vmem:[%s4230_s7 + $0x408] sm:$0xf] }
 0x2cb   : > { %1949 = vmatmul.bf16.gmra.mxu0 %v3519_v7  ;;  %3912 = vmatmul.msk.bf16.gmra.mxu3 %vm1538_vm0, %v3743_v24 }
 0x2cc   : > { %v2569_v60 = vadd.f32 %v2568_v40, %v2240_v42  ;;  %2278 = vmatmul.bf16.gmra.mxu1 %v3523_v52  ;;  %v2651_v42 = vadd.f32 %v2650_v47, %v2322_v30  ;;  %v3531_v47 = vor.u32 %v4048_v33, %v3530_v16  ;;  %v3535_v30 = vor.u32 %v4047_v31, %v3532_v9 }
 0x2ce   : > { %v2754_v14 = vmax.f32 %v2569_v60, %v2649_v36  ;;  %v5007_v51 = vpop.f32.mrf.mxu3  ;;  %v4103_v60 = vld [vmem:[%s4230_s7 + $0x5c8] sm:$0xf0] }
 0x2d0   : > { %v2786_v40 = vmax.f32 %v5487_v0, %v2754_v14  ;;  %v2575_v17 = vpop.f32.mrf.mxu2  ;;  %v1912_v24 = vpop.f32.mrf.mxu0  ;;  %v3755_v0 = vor.u32 %v4103_v60, %v3754_v38  ;;  %v3562_v38 = vld [vmem:[%s4230_s7 + $0x440] sm:$0xf] }
 0x2d1   : > { %v2241_v7 = vpop.f32.mrf.mxu1 }
 0x2d2   : > { %v2822_v8 = vadd.f32 %v5005_v5, %v2786_v40  ;;  %v2242_v52 = vadd.f32 %v2241_v7, %v1912_v24 }
 0x2d4   : > { %v2854_v36 = vmax.f32 %v2822_v8, 0.0  ;;  %v2571_v55 = vadd.f32 %v2570_v41, %v2242_v52  ;;  %v5488_v41 = vmax.f32 %v4390_v1, %v4672_v26  ;;  %v2325_v8 = vadd.f32 %v4688_v53, %v4402_v19  ;;  %v4055_v19 = vld [vmem:[%s4230_s7 + $0x448] sm:$0xf0] }
 0x2d5   : > { %3896 = vmatmul.msk.bf16.gmra.mxu2 %vm1538_vm0, %v3551_v28  ;;  %v5489_v53 = vmax.f32 %v4400_v18, %v4684_v32  ;;  %v3563_v9 = vor.u32 %v4055_v19, %v3562_v38  ;;  %v3766_v32 = vld [vmem:[%s4230_s7 + $0x5d8] sm:$0xf]  ;;  %v2330_v38 = vadd.f32 %v4709_v21, %v4419_v48  ;;  %v4058_v48 = vld [vmem:[%s4230_s7 + $0x460] sm:$0xf0]  ;;  %v5491_v21 = vmax.f32 %v4417_v46, %v4705_v57  ;;  %v3778_v57 = vld [vmem:[%s4230_s7 + $0x5f0] sm:$0xf] }
 0x2d6   : > { %v2886_v14 = vpack.c.bf16 %v2854_v36, %v2854_v36  ;;  %v2755_v43 = vmax.f32 %v2571_v55, %v2651_v42  ;;  %v5029_v56 = vpop.f32.mrf.mxu3  ;;  %v2654_v33 = vadd.f32 %v4982_v6, %v2325_v8  ;;  %v3544_v8 = vld [vmem:[%s4230_s7 + $0x42c] sm:$0xf0] }
 0x2d8   : > { %2919 = vst.msk [vmem:[%s5024_s9 + $0x10] sm:$0xf] %vm2914_vm1, %v2886_v14  ;;  %v2787_v40 = vmax.f32 %v5488_v41, %v2755_v43  ;;  %v2578_v24 = vpop.f32.mrf.mxu2  ;;  %v1915_v7 = vpop.f32.mrf.mxu0  ;;  %v2327_v14 = vadd.f32 %v4703_v58, %v4415_v37  ;;  %v4051_v41 = vld [vmem:[%s4230_s7 + $0x428] sm:$0xf0] }
 0x2d9   : > { %v2244_v28 = vpop.f32.mrf.mxu1 }
 0x2da   : > { %v2823_v52 = vadd.f32 %v5005_v5, %v2787_v40  ;;  %v2245_v16 = vadd.f32 %v2244_v28, %v1915_v7  ;;  %v2656_v40 = vadd.f32 %v4995_v3, %v2327_v14  ;;  %v4050_v28 = vld [vmem:[%s4230_s7 + $0x424] sm:$0xf]  ;;  %v3574_v14 = vld [vmem:[%s4230_s7 + $0x458] sm:$0xf] }
 0x2db   : > { %1954 = vmatmul.bf16.gmra.mxu0 %v3531_v47  ;;  %3913 = vmatmul.msk.bf16.gmra.mxu3 %vm1538_vm0, %v3755_v0  ;;  %v3542_v0 = vld [vmem:[%s4230_s7 + $0x420] sm:$0xf] }
 0x2dc   : > { %v2855_v1 = vmax.f32 %v2823_v52, 0.0  ;;  %v2574_v26 = vadd.f32 %v2573_v61, %v2245_v16  ;;  %2283 = vmatmul.bf16.gmra.mxu1 %v3535_v30  ;;  %v4106_v30 = vld [vmem:[%s4230_s7 + $0x5e0] sm:$0xf0]  ;;  %v3543_v37 = vor.u32 %v4051_v41, %v3542_v0  ;;  %v3575_v0 = vor.u32 %v4058_v48, %v3574_v14  ;;  %v3586_v48 = vld [vmem:[%s4230_s7 + $0x470] sm:$0xf] }
 0x2dd   : > { %v3767_v58 = vor.u32 %v4106_v30, %v3766_v32  ;;  %v2332_v41 = vadd.f32 %v4724_v50, %v4432_v2  ;;  %v4054_v32 = vld [vmem:[%s4230_s7 + $0x440] sm:$0xf0] }
 0x2de   : > { %v2887_v42 = vpack.c.bf16 %v2855_v1, %v2855_v1  ;;  %v2756_v36 = vmax.f32 %v2574_v26, %v2654_v33  ;;  %v5041_v55 = vpop.f32.mrf.mxu3  ;;  %v5490_v1 = vmax.f32 %v4407_v29, %v4693_v34 }
 0x2df   : > { %v2661_v30 = vadd.f32 %v5029_v56, %v2332_v41 }
 0x2e0   : > { %2920 = vst.msk [vmem:[%s5024_s9 + $0x14] sm:$0xf] %vm2914_vm1, %v2887_v42  ;;  %v2788_v60 = vmax.f32 %v5489_v53, %v2756_v36  ;;  %v2580_v6 = vpop.f32.mrf.mxu2  ;;  %v1917_v61 = vpop.f32.mrf.mxu0  ;;  %v3547_v42 = vor.u32 %v4050_v28, %v3544_v8  ;;  %v4109_v8 = vld [vmem:[%s4230_s7 + $0x5f8] sm:$0xf0] }
 0x2e1   : > { %v2246_v31 = vpop.f32.mrf.mxu1  ;;  %v3779_v50 = vor.u32 %v4109_v8, %v3778_v57  ;;  %v3566_v8 = vld [vmem:[%s4230_s7 + $0x450] sm:$0xf] }
 0x2e2   : > { %v2824_v43 = vadd.f32 %v5005_v5, %v2788_v60  ;;  %v2247_v47 = vadd.f32 %v2246_v31, %v1917_v61  ;;  %v2659_v60 = vadd.f32 %v5007_v51, %v2330_v38  ;;  %v5493_v38 = vld [vmem:[#allocation11_spill] sm:$0xff] }
 0x2e4   : > { %v2856_v7 = vmax.f32 %v2824_v43, 0.0  ;;  %v2576_v18 = vadd.f32 %v2575_v17, %v2247_v47 }
 0x2e5   : > { %3897 = vmatmul.msk.bf16.gmra.mxu2 %vm1538_vm0, %v3563_v9 }
 0x2e6   : > { %v2888_v52 = vpack.c.bf16 %v2856_v7, %v2856_v7  ;;  %v2757_v16 = vmax.f32 %v2576_v18, %v2656_v40  ;;  %v5061_v33 = vpop.f32.mrf.mxu3  ;;  %v3554_v18 = vld [vmem:[%s4230_s7 + $0x438] sm:$0xf] }
 0x2e7   : > { %v3555_v2 = vor.u32 %v4054_v32, %v3554_v18 }
 0x2e8   : > { %2921 = vst.msk [vmem:[%s5024_s9 + $0x18] sm:$0xf] %vm2914_vm1, %v2888_v52  ;;  %v2789_v3 = vmax.f32 %v5490_v1, %v2757_v16  ;;  %v2583_v26 = vpop.f32.mrf.mxu2  ;;  %v1920_v17 = vpop.f32.mrf.mxu0  ;;  %v4053_v52 = vld [vmem:[%s4230_s7 + $0x43c] sm:$0xf]  ;;  %v3556_v16 = vld [vmem:[%s4230_s7 + $0x444] sm:$0xf0] }
 0x2e9   : > { %v2249_v36 = vpop.f32.mrf.mxu1 }
 0x2ea   : > { %v2825_v19 = vadd.f32 %v5005_v5, %v2789_v3  ;;  %v2250_v53 = vadd.f32 %v2249_v36, %v1920_v17  ;;  %v5492_v3 = vmax.f32 %v4424_v59, %v4714_v35 }
 0x2eb   : > { %1959 = vmatmul.bf16.gmra.mxu0 %v3543_v37  ;;  %3914 = vmatmul.msk.bf16.gmra.mxu3 %vm1538_vm0, %v3767_v58 }
 0x2ec   : > { %v2857_v29 = vmax.f32 %v2825_v19, 0.0  ;;  %v2579_v34 = vadd.f32 %v2578_v24, %v2250_v53  ;;  %2288 = vmatmul.bf16.gmra.mxu1 %v3547_v42  ;;  %v3559_v42 = vor.u32 %v4053_v52, %v3556_v16  ;;  %v5494_v19 = vld [vmem:[#allocation55_spill] sm:$0xff]  ;;  %v4057_v52 = vld [vmem:[%s4230_s7 + $0x458] sm:$0xf0]  ;;  %v4056_v16 = vld [vmem:[%s4230_s7 + $0x454] sm:$0xf] }
 0x2ed   : > { %v2335_v53 = vadd.f32 %v5494_v19, %v5493_v38  ;;  %v5501_v38 = vld [vmem:[#allocation14_spill] sm:$0xff] }
 0x2ee   : > { %v2889_v61 = vpack.c.bf16 %v2857_v29, %v2857_v29  ;;  %v2758_v31 = vmax.f32 %v2579_v34, %v2659_v60  ;;  %v5073_v9 = vpop.f32.mrf.mxu3  ;;  %v5502_v19 = vld [vmem:[#allocation58_spill] sm:$0xff] }
 0x2ef   : > { %v2664_v34 = vadd.f32 %v5041_v55, %v2335_v53  ;;  %v2340_v53 = vadd.f32 %v5502_v19, %v5501_v38 }
 0x2f0   : > { %2922 = vst.msk [vmem:[%s5024_s9 + $0x1c] sm:$0xf] %vm2914_vm1, %v2889_v61  ;;  %v2790_v43 = vmax.f32 %v5491_v21, %v2758_v31  ;;  %v2585_v51 = vpop.f32.mrf.mxu2  ;;  %v1922_v24 = vpop.f32.mrf.mxu0  ;;  %v4061_v21 = vld [vmem:[%s4230_s7 + $0x478] sm:$0xf0] }
 0x2f1   : > { %v2251_v47 = vpop.f32.mrf.mxu1 }
 0x2f2   : > { %v2826_v40 = vadd.f32 %v5005_v5, %v2790_v43  ;;  %v2252_v7 = vadd.f32 %v2251_v47, %v1922_v24  ;;  %v5495_v43 = vld [vmem:[#allocation10_spill] sm:$0xff] }
 0x2f3   : > { %v5496_v24 = vld [vmem:[#allocation54_spill] sm:$0xff] }
 0x2f4   : > { %v2858_v28 = vmax.f32 %v2826_v40, 0.0  ;;  %v2581_v46 = vadd.f32 %v2580_v6, %v2252_v7  ;;  %v5497_v47 = vmax.f32 %v5495_v43, %v5496_v24  ;;  %v3587_v40 = vor.u32 %v4061_v21, %v3586_v48  ;;  %v5498_v7 = vld [vmem:[#allocation12_spill] sm:$0xff]  ;;  %v3598_v48 = vld [vmem:[%s4230_s7 + $0x488] sm:$0xf]  ;;  %v5503_v43 = vld [vmem:[#allocation13_spill] sm:$0xff] }
 0x2f5   : > { %3898 = vmatmul.msk.bf16.gmra.mxu2 %vm1538_vm0, %v3575_v0  ;;  %v2337_v18 = vadd.f32 %v4745_v13, %v5498_v7  ;;  %v5499_v13 = vld [vmem:[#allocation56_spill] sm:$0xff]  ;;  %v5504_v24 = vld [vmem:[#allocation57_spill] sm:$0xff] }
 0x2f6   : > { %v2890_v37 = vpack.c.bf16 %v2858_v28, %v2858_v28  ;;  %v2759_v58 = vmax.f32 %v2581_v46, %v2661_v30  ;;  %v5093_v1 = vpop.f32.mrf.mxu3  ;;  %v4064_v21 = vld [vmem:[%s4230_s7 + $0x490] sm:$0xf0] }
 0x2f7   : > { %v2666_v28 = vadd.f32 %v5061_v33, %v2337_v18 }
 0x2f8   : > { %2923 = vst.msk [vmem:[%s5024_s9 + $0x20] sm:$0xf] %vm2914_vm1, %v2890_v37  ;;  %v2791_v56 = vmax.f32 %v5492_v3, %v2759_v58  ;;  %v2588_v17 = vpop.f32.mrf.mxu2  ;;  %v1925_v6 = vpop.f32.mrf.mxu0  ;;  %v3568_v37 = vld [vmem:[%s4230_s7 + $0x45c] sm:$0xf0]  ;;  %v3567_v3 = vor.u32 %v4057_v52, %v3566_v8  ;;  %v4060_v8 = vld [vmem:[%s4230_s7 + $0x470] sm:$0xf0] }
 0x2f9   : > { %v2254_v36 = vpop.f32.mrf.mxu1  ;;  %v4059_v52 = vld [vmem:[%s4230_s7 + $0x46c] sm:$0xf] }
 0x2fa   : > { %v2827_v60 = vadd.f32 %v5005_v5, %v2791_v56  ;;  %v2255_v29 = vadd.f32 %v2254_v36, %v1925_v6  ;;  %v5500_v56 = vmax.f32 %v4441_v27, %v5499_v13 }
 0x2fb   : > { %1964 = vmatmul.bf16.gmra.mxu0 %v3555_v2  ;;  %3915 = vmatmul.msk.bf16.gmra.mxu3 %vm1538_vm0, %v3779_v50 }
 0x2fc   : > { %v2859_v59 = vmax.f32 %v2827_v60, 0.0  ;;  %v2584_v35 = vadd.f32 %v2583_v26, %v2255_v29  ;;  %2293 = vmatmul.bf16.gmra.mxu1 %v3559_v42  ;;  %v3571_v42 = vor.u32 %v4056_v16, %v3568_v37  ;;  %v3580_v16 = vld [vmem:[%s4230_s7 + $0x474] sm:$0xf0] }
 0x2fe   : > { %v2891_v61 = vpack.c.bf16 %v2859_v59, %v2859_v59  ;;  %v2760_v31 = vmax.f32 %v2584_v35, %v2664_v34  ;;  %v5105_v14 = vpop.f32.mrf.mxu3  ;;  %v2669_v34 = vadd.f32 %v5073_v9, %v2340_v53 }
 0x300   : > { %2924 = vst.msk [vmem:[%s5024_s9 + $0x24] sm:$0xf] %vm2914_vm1, %v2891_v61  ;;  %v2792_v0 = vmax.f32 %v5497_v47, %v2760_v31  ;;  %v2590_v55 = vpop.f32.mrf.mxu2  ;;  %v1927_v41 = vpop.f32.mrf.mxu0  ;;  %v5505_v47 = vmax.f32 %v5503_v43, %v5504_v24 }
 0x301   : > { %v2256_v26 = vpop.f32.mrf.mxu1 }
 0x302   : > { %v2828_v32 = vadd.f32 %v5005_v5, %v2792_v0  ;;  %v2257_v30 = vadd.f32 %v2256_v26, %v1927_v41  ;;  %v3599_v26 = vor.u32 %v4064_v21, %v3598_v48  ;;  %v5511_v48 = vld [vmem:[#allocation16_spill] sm:$0xff] }
 0x303   : > { %v5512_v21 = vld [vmem:[#allocation60_spill] sm:$0xff] }
 0x304   : > { %v2860_v46 = vmax.f32 %v2828_v32, 0.0  ;;  %v2586_v57 = vadd.f32 %v2585_v51, %v2257_v30  ;;  %v5513_v43 = vmax.f32 %v5511_v48, %v5512_v21 }
 0x305   : > { %3899 = vmatmul.msk.bf16.gmra.mxu2 %vm1538_vm0, %v3587_v40  ;;  %v5506_v40 = vld [vmem:[#allocation15_spill] sm:$0xff] }
 0x306   : > { %v2892_v58 = vpack.c.bf16 %v2860_v46, %v2860_v46  ;;  %v2761_v2 = vmax.f32 %v2586_v57, %v2666_v28  ;;  %v5123_v50 = vpop.f32.mrf.mxu3  ;;  %v2342_v7 = vadd.f32 %v4766_v49, %v5506_v40  ;;  %v3578_v57 = vld [vmem:[%s4230_s7 + $0x468] sm:$0xf] }
 0x307   : > { %v5507_v49 = vld [vmem:[#allocation59_spill] sm:$0xff] }
 0x308   : > { %2925 = vst.msk [vmem:[%s5024_s9 + $0x28] sm:$0xf] %vm2914_vm1, %v2892_v58  ;;  %v2793_v6 = vmax.f32 %v5500_v56, %v2761_v2  ;;  %v2593_v33 = vpop.f32.mrf.mxu2  ;;  %v1930_v51 = vpop.f32.mrf.mxu0  ;;  %v2671_v30 = vadd.f32 %v5093_v1, %v2342_v7  ;;  %v5508_v13 = vmax.f32 %v4458_v62, %v5507_v49 }
 0x309   : > { %v2259_v36 = vpop.f32.mrf.mxu1 }
 0x30a   : > { %v2829_v60 = vadd.f32 %v5005_v5, %v2793_v6  ;;  %v2260_v29 = vadd.f32 %v2259_v36, %v1930_v51  ;;  %v3583_v6 = vor.u32 %v4059_v52, %v3580_v16  ;;  %v5510_v36 = vld [vmem:[#allocation61_spill] sm:$0xff] }
 0x30b   : > { %1969 = vmatmul.bf16.gmra.mxu0 %v3567_v3  ;;  %v3579_v3 = vor.u32 %v4060_v8, %v3578_v57 }
 0x30c   : > { %v2861_v59 = vmax.f32 %v2829_v60, 0.0  ;;  %v2589_v35 = vadd.f32 %v2588_v17, %v2260_v29  ;;  %2298 = vmatmul.bf16.gmra.mxu1 %v3571_v42  ;;  %v5509_v42 = vld [vmem:[#allocation17_spill] sm:$0xff] }
 0x30d   : > { %v2345_v38 = vadd.f32 %v5510_v36, %v5509_v42  ;;  %v5520_v42 = vld [vmem:[#allocation63_spill] sm:$0xff] }
 0x30e   : > { %v2893_v27 = vpack.c.bf16 %v2861_v59, %v2861_v59  ;;  %v2762_v61 = vmax.f32 %v2589_v35, %v2669_v34  ;;  %v5134_v31 = vpop.f32.mrf.mxu3  ;;  %v3610_v35 = vld [vmem:[%s4230_s7 + $0x4a0] sm:$0xf] }
 0x30f   : > { %v2674_v60 = vadd.f32 %v5105_v14, %v2345_v38  ;;  %v5514_v14 = vld [vmem:[#allocation18_spill] sm:$0xff] }
 0x310   : > { %2926 = vst.msk [vmem:[%s5024_s9 + $0x2c] sm:$0xf] %vm2914_vm1, %v2893_v27  ;;  %v2794_v0 = vmax.f32 %v5505_v47, %v2762_v61  ;;  %v2595_v9 = vpop.f32.mrf.mxu2  ;;  %v1932_v41 = vpop.f32.mrf.mxu0  ;;  %v4067_v27 = vld [vmem:[%s4230_s7 + $0x4a8] sm:$0xf0] }
 0x311   : > { %v2261_v17 = vpop.f32.mrf.mxu1 }
 0x312   : > { %v2830_v18 = vadd.f32 %v5005_v5, %v2794_v0  ;;  %v2262_v32 = vadd.f32 %v2261_v17, %v1932_v41  ;;  %v3611_v17 = vor.u32 %v4067_v27, %v3610_v35 }
 0x314   : > { %v2862_v28 = vmax.f32 %v2830_v18, 0.0  ;;  %v2591_v46 = vadd.f32 %v2590_v55, %v2262_v32 }
 0x315   : > { %3900 = vmatmul.msk.bf16.gmra.mxu2 %vm1538_vm0, %v3599_v26 }
 0x316   : > { %v2894_v37 = vpack.c.bf16 %v2862_v28, %v2862_v28  ;;  %v2763_v58 = vmax.f32 %v2591_v46, %v2671_v30  ;;  %v2680_v2 = vpop.f32.mrf.mxu3  ;;  %v5515_v46 = vld [vmem:[#allocation62_spill] sm:$0xff] }
 0x317   : > { %v5516_v57 = vmax.f32 %v4475_v39, %v5515_v46  ;;  %v5519_v39 = vld [vmem:[#allocation19_spill] sm:$0xff]  ;;  %v5528_v46 = vld [vmem:[#allocation66_spill] sm:$0xff] }
 0x318   : > { %2927 = vst.msk [vmem:[%s5024_s9 + $0x30] sm:$0xf] %vm2914_vm1, %v2894_v37  ;;  %v2795_v56 = vmax.f32 %v5508_v13, %v2763_v58  ;;  %v2598_v1 = vpop.f32.mrf.mxu2  ;;  %v1935_v55 = vpop.f32.mrf.mxu0  ;;  %v5517_v58 = vld [vmem:[#allocation20_spill] sm:$0xff]  ;;  %v5521_v36 = vmax.f32 %v5519_v39, %v5520_v42 }
 0x319   : > { %v2264_v51 = vpop.f32.mrf.mxu1 }
 0x31a   : > { %v2831_v19 = vadd.f32 %v5005_v5, %v2795_v56  ;;  %v2265_v53 = vadd.f32 %v2264_v51, %v1935_v55 }
 0x31b   : > { %1974 = vmatmul.bf16.gmra.mxu0 %v3579_v3  ;;  %v5518_v3 = vld [vmem:[#allocation64_spill] sm:$0xff] }
 0x31c   : > { %v2863_v29 = vmax.f32 %v2831_v19, 0.0  ;;  %v2594_v34 = vadd.f32 %v2593_v33, %v2265_v53  ;;  %2303 = vmatmul.bf16.gmra.mxu1 %v3583_v6  ;;  %v2347_v33 = vadd.f32 %v4787_v22, %v5514_v14 }
 0x31e   : > { %v2895_v62 = vpack.c.bf16 %v2863_v29, %v2863_v29  ;;  %v2764_v59 = vmax.f32 %v2594_v34, %v2674_v60  ;;  %v2683_v61 = vpop.f32.mrf.mxu3  ;;  %v2676_v7 = vadd.f32 %v5123_v50, %v2347_v33  ;;  %v2350_v50 = vadd.f32 %v5518_v3, %v5517_v58  ;;  %v5522_v29 = vld [vmem:[#allocation21_spill] sm:$0xff]  ;;  %v5526_v33 = vld [vmem:[#allocation67_spill] sm:$0xff]  ;;  %v5530_v3 = vld [vmem:[#allocation24_spill] sm:$0xff] }
 0x31f   : > { %v2352_v34 = vadd.f32 %v4809_v63, %v5522_v29  ;;  %v5525_v63 = vld [vmem:[#allocation23_spill] sm:$0xff] }
 0x320   : > { %2928 = vst.msk [vmem:[%s5024_s9 + $0x34] sm:$0xf] %vm2914_vm1, %v2895_v62  ;;  %v2796_v24 = vmax.f32 %v5513_v43, %v2764_v59  ;;  %v2600_v47 = vpop.f32.mrf.mxu2  ;;  %v1937_v0 = vpop.f32.mrf.mxu0  ;;  %v2679_v13 = vadd.f32 %v5134_v31, %v2350_v50  ;;  %v5523_v43 = vld [vmem:[#allocation65_spill] sm:$0xff]  ;;  %v2357_v50 = vadd.f32 %v4831_v45, %v5530_v3  ;;  %v5533_v45 = vld [vmem:[#allocation26_spill] sm:$0xff] }
 0x321   : > { %v2266_v41 = vpop.f32.mrf.mxu1 }
 0x322   : > { %v2832_v26 = vadd.f32 %v5005_v5, %v2796_v24  ;;  %v2267_v40 = vadd.f32 %v2266_v41, %v1937_v0  ;;  %v5524_v24 = vmax.f32 %v4492_v20, %v5523_v43  ;;  %v5527_v20 = vld [vmem:[#allocation22_spill] sm:$0xff] }
 0x324   : > { %v2864_v18 = vmax.f32 %v2832_v26, 0.0  ;;  %v2596_v32 = vadd.f32 %v2595_v9, %v2267_v40  ;;  %v2355_v26 = vadd.f32 %v5526_v33, %v5525_v63 }
 0x325   : > { %3901 = vmatmul.msk.bf16.gmra.mxu2 %vm1538_vm0, %v3611_v17 }
 0x326   : > { %v2896_v30 = vpack.c.bf16 %v2864_v18, %v2864_v18  ;;  %v2765_v28 = vmax.f32 %v2596_v32, %v2676_v7  ;;  %v2685_v16 = vpop.f32.mrf.mxu3  ;;  %v2684_v7 = vadd.f32 %v2683_v61, %v2355_v26 }
 0x328   : > { %2929 = vst.msk [vmem:[%s5024_s9 + $0x38] sm:$0xf] %vm2914_vm1, %v2896_v30  ;;  %v2797_v8 = vmax.f32 %v5516_v57, %v2765_v28  ;;  %v2603_v52 = vpop.f32.mrf.mxu2  ;;  %v1940_v22 = vpop.f32.mrf.mxu0  ;;  %v5529_v57 = vmax.f32 %v5527_v20, %v5528_v46 }
 0x329   : > { %v2269_v37 = vpop.f32.mrf.mxu1 }
 0x32a   : > { %v2833_v9 = vadd.f32 %v5005_v5, %v2797_v8  ;;  %v2270_v49 = vadd.f32 %v2269_v37, %v1940_v22 }
 0x32c   : > { %v2865_v56 = vmax.f32 %v2833_v9, 0.0  ;;  %v2599_v55 = vadd.f32 %v2598_v1, %v2270_v49  ;;  %v2681_v1 = vadd.f32 %v2680_v2, %v2352_v34 }
 0x32e   : > { %v2897_v6 = vpack.c.bf16 %v2865_v56, %v2865_v56  ;;  %v2766_v51 = vmax.f32 %v2599_v55, %v2679_v13  ;;  %v2688_v59 = vpop.f32.mrf.mxu3 }
 0x330   : > { %2930 = vst.msk [vmem:[%s5024_s9 + $0x3c] sm:$0xf] %vm2914_vm1, %v2897_v6  ;;  %v2798_v38 = vmax.f32 %v5521_v36, %v2766_v51  ;;  %v2605_v19 = vpop.f32.mrf.mxu2  ;;  %v1942_v53 = vpop.f32.mrf.mxu0  ;;  %v5531_v51 = vld [vmem:[#allocation68_spill] sm:$0xff] }
 0x331   : > { %v2271_v60 = vpop.f32.mrf.mxu1  ;;  %v5532_v39 = vmax.f32 %v4509_v11, %v5531_v51  ;;  %v5536_v11 = vld [vmem:[#allocation69_spill] sm:$0xff] }
 0x332   : > { %v2834_v62 = vadd.f32 %v5005_v5, %v2798_v38  ;;  %v2272_v31 = vadd.f32 %v2271_v60, %v1942_v53  ;;  %v5534_v60 = vld [vmem:[#allocation70_spill] sm:$0xff] }
 0x333   : > { %v2360_v29 = vadd.f32 %v5534_v60, %v5533_v45 }
 0x334   : > { %v2866_v35 = vmax.f32 %v2834_v62, 0.0  ;;  %v2601_v27 = vadd.f32 %v2600_v47, %v2272_v31 }
 0x336   : > { %v2898_v48 = vpack.c.bf16 %v2866_v35, %v2866_v35  ;;  %v2767_v21 = vmax.f32 %v2601_v27, %v2681_v1  ;;  %v2690_v32 = vpop.f32.mrf.mxu3  ;;  %v5535_v27 = vld [vmem:[#allocation25_spill] sm:$0xff] }
 0x338   : > { %2931 = vst.msk [vmem:[%s5024_s9 + $0x40] sm:$0xf] %vm2914_vm1, %v2898_v48  ;;  %v2799_v0 = vmax.f32 %v5524_v24, %v2767_v21  ;;  %v2608_v41 = vpop.f32.mrf.mxu2  ;;  %v1945_v17 = vpop.f32.mrf.mxu0  ;;  %v5537_v48 = vmax.f32 %v5535_v27, %v5536_v11  ;;  %v5550_v27 = vld [vmem:[#allocation76_spill] sm:$0xff] }
 0x339   : > { %v2274_v14 = vpop.f32.mrf.mxu1 }
 0x33a   : > { %v2835_v40 = vadd.f32 %v5005_v5, %v2799_v0  ;;  %v2275_v2 = vadd.f32 %v2274_v14, %v1945_v17  ;;  %v5538_v14 = vld [vmem:[#allocation27_spill] sm:$0xff] }
 0x33b   : > { %v2362_v63 = vadd.f32 %v4853_v44, %v5538_v14  ;;  %v5542_v44 = vld [vmem:[#allocation73_spill] sm:$0xff] }
 0x33c   : > { %v2867_v47 = vmax.f32 %v2835_v40, 0.0  ;;  %v2604_v18 = vadd.f32 %v2603_v52, %v2275_v2  ;;  %v2686_v52 = vadd.f32 %v2685_v16, %v2357_v50 }
 0x33e   : > { %v2899_v30 = vpack.c.bf16 %v2867_v47, %v2867_v47  ;;  %v2768_v28 = vmax.f32 %v2604_v18, %v2684_v7  ;;  %v2693_v6 = vpop.f32.mrf.mxu3  ;;  %v5539_v47 = vld [vmem:[#allocation71_spill] sm:$0xff] }
 0x33f   : > { %v5540_v18 = vmax.f32 %v4526_v15, %v5539_v47  ;;  %v5543_v15 = vld [vmem:[#allocation28_spill] sm:$0xff] }
 0x340   : > { %2932 = vst.msk [vmem:[%s5024_s9 + $0x44] sm:$0xf] %vm2914_vm1, %v2899_v30  ;;  %v2800_v8 = vmax.f32 %v5529_v57, %v2768_v28  ;;  %v2610_v22 = vpop.f32.mrf.mxu2  ;;  %v1947_v37 = vpop.f32.mrf.mxu0  ;;  %v5541_v57 = vld [vmem:[#allocation29_spill] sm:$0xff] }
 0x341   : > { %v2276_v58 = vpop.f32.mrf.mxu1 }
 0x342   : > { %v2836_v61 = vadd.f32 %v5005_v5, %v2800_v8  ;;  %v2277_v9 = vadd.f32 %v2276_v58, %v1947_v37  ;;  %v2365_v8 = vadd.f32 %v5542_v44, %v5541_v57 }
 0x344   : > { %v2868_v49 = vmax.f32 %v2836_v61, 0.0  ;;  %v2606_v13 = vadd.f32 %v2605_v19, %v2277_v9  ;;  %v2689_v19 = vadd.f32 %v2688_v59, %v2360_v29 }
 0x346   : > { %v2900_v56 = vpack.c.bf16 %v2868_v49, %v2868_v49  ;;  %v2769_v55 = vmax.f32 %v2606_v13, %v2686_v52  ;;  %v2695_v0 = vpop.f32.mrf.mxu3  ;;  %v5544_v52 = vld [vmem:[#allocation72_spill] sm:$0xff] }
 0x347   : > { %v5545_v49 = vmax.f32 %v5543_v15, %v5544_v52 }
 0x348   : > { %2933 = vst.msk [vmem:[%s5024_s9 + $0x48] sm:$0xf] %vm2914_vm1, %v2900_v56  ;;  %v2801_v42 = vmax.f32 %v5532_v39, %v2769_v55  ;;  %v2613_v36 = vpop.f32.mrf.mxu2  ;;  %v1950_v38 = vpop.f32.mrf.mxu0  ;;  %v5546_v39 = vld [vmem:[#allocation30_spill] sm:$0xff] }
 0x349   : > { %v2279_v53 = vpop.f32.mrf.mxu1 }
 0x34a   : > { %v2837_v16 = vadd.f32 %v5005_v5, %v2801_v42  ;;  %v2280_v34 = vadd.f32 %v2279_v53, %v1950_v38  ;;  %v2367_v42 = vadd.f32 %v4875_v54, %v5546_v39  ;;  %v5549_v54 = vld [vmem:[#allocation32_spill] sm:$0xff]  ;;  %v5560_v39 = vld [vmem:[#allocation78_spill] sm:$0xff] }
 0x34b   : > { %v2370_v11 = vadd.f32 %v5550_v27, %v5549_v54  ;;  %v5563_v54 = vld [vmem:[#allocation36_spill] sm:$0xff] }
 0x34c   : > { %v2869_v62 = vmax.f32 %v2837_v16, 0.0  ;;  %v2609_v31 = vadd.f32 %v2608_v41, %v2280_v34  ;;  %v2691_v41 = vadd.f32 %v2690_v32, %v2362_v63  ;;  %v2696_v53 = vadd.f32 %v2695_v0, %v2367_v42  ;;  %v5547_v34 = vld [vmem:[#allocation74_spill] sm:$0xff]  ;;  %v5564_v27 = vld [vmem:[#allocation80_spill] sm:$0xff] }
 0x34e   : > { %v2901_v1 = vpack.c.bf16 %v2869_v62, %v2869_v62  ;;  %v2770_v35 = vmax.f32 %v2609_v31, %v2689_v19  ;;  %v2698_v58 = vpop.f32.mrf.mxu3  ;;  %v5548_v19 = vmax.f32 %v4543_v25, %v5547_v34  ;;  %v5551_v25 = vld [vmem:[#allocation31_spill] sm:$0xff] }
 0x350   : > { %2934 = vst.msk [vmem:[%s5024_s9 + $0x4c] sm:$0xf] %vm2914_vm1, %v2901_v1  ;;  %v2802_v21 = vmax.f32 %v5537_v48, %v2770_v35  ;;  %v2615_v43 = vpop.f32.mrf.mxu2  ;;  %v1952_v24 = vpop.f32.mrf.mxu0 }
 0x351   : > { %v2281_v17 = vpop.f32.mrf.mxu1 }
 0x352   : > { %v2838_v59 = vadd.f32 %v5005_v5, %v2802_v21  ;;  %v2282_v33 = vadd.f32 %v2281_v17, %v1952_v24 }
 0x354   : > { %v2870_v26 = vmax.f32 %v2838_v59, 0.0  ;;  %v2611_v40 = vadd.f32 %v2610_v22, %v2282_v33  ;;  %v2694_v22 = vadd.f32 %v2693_v6, %v2365_v8  ;;  %v5552_v59 = vld [vmem:[#allocation75_spill] sm:$0xff]  ;;  %v5555_v8 = vld [vmem:[#allocation77_spill] sm:$0xff] }
 0x355   : > { %v5553_v33 = vmax.f32 %v5551_v25, %v5552_v59 }
 0x356   : > { %v2902_v2 = vpack.c.bf16 %v2870_v26, %v2870_v26  ;;  %v2771_v7 = vmax.f32 %v2611_v40, %v2691_v41  ;;  %v2700_v60 = vpop.f32.mrf.mxu3 }
 0x358   : > { %2935 = vst.msk [vmem:[%s5024_s9 + $0x50] sm:$0xf] %vm2914_vm1, %v2902_v2  ;;  %v2803_v30 = vmax.f32 %v5540_v18, %v2771_v7  ;;  %v2618_v28 = vpop.f32.mrf.mxu2  ;;  %v1955_v20 = vpop.f32.mrf.mxu0  ;;  %v5554_v7 = vld [vmem:[#allocation33_spill] sm:$0xff] }
 0x359   : > { %v2284_v46 = vpop.f32.mrf.mxu1  ;;  %v2372_v47 = vadd.f32 %v4897_v10, %v5554_v7  ;;  %v5557_v10 = vld [vmem:[#allocation35_spill] sm:$0xff]  ;;  %v5569_v7 = vld [vmem:[#allocation81_spill] sm:$0xff] }
 0x35a   : > { %v2839_v37 = vadd.f32 %v5005_v5, %v2803_v30  ;;  %v2285_v32 = vadd.f32 %v2284_v46, %v1955_v20 }
 0x35c   : > { %v2871_v3 = vmax.f32 %v2839_v37, 0.0  ;;  %v2614_v50 = vadd.f32 %v2613_v36, %v2285_v32  ;;  %v5556_v37 = vmax.f32 %v4560_v23, %v5555_v8  ;;  %v5559_v23 = vld [vmem:[#allocation34_spill] sm:$0xff] }
 0x35d   : > { %v5561_v42 = vmax.f32 %v5559_v23, %v5560_v39 }
 0x35e   : > { %v2903_v61 = vpack.c.bf16 %v2871_v3, %v2871_v3  ;;  %v2772_v9 = vmax.f32 %v2614_v50, %v2694_v22  ;;  %v2703_v63 = vpop.f32.mrf.mxu3 }
 0x360   : > { %2936 = vst.msk [vmem:[%s5024_s9 + $0x54] sm:$0xf] %vm2914_vm1, %v2903_v61  ;;  %v2804_v13 = vmax.f32 %v5545_v49, %v2772_v9  ;;  %v2620_v56 = vpop.f32.mrf.mxu2  ;;  %v1957_v55 = vpop.f32.mrf.mxu0  ;;  %v5558_v61 = vld [vmem:[#allocation79_spill] sm:$0xff] }
 0x361   : > { %v2286_v51 = vpop.f32.mrf.mxu1  ;;  %v2375_v9 = vadd.f32 %v5558_v61, %v5557_v10  ;;  %v5573_v10 = vld [vmem:[#allocation3_spill] sm:$0xff] }
 0x362   : > { %v2840_v38 = vadd.f32 %v5005_v5, %v2804_v13  ;;  %v2287_v6 = vadd.f32 %v2286_v51, %v1957_v55  ;;  %v5574_v61 = vld [vmem:[#allocation47_spill] sm:$0xff] }
 0x363   : > { %v2704_v49 = vadd.f32 %v2703_v63, %v2375_v9  ;;  %v2310_v9 = vadd.f32 %v5574_v61, %v5573_v10 }
 0x364   : > { %v2872_v36 = vmax.f32 %v2840_v38, 0.0  ;;  %v2616_v45 = vadd.f32 %v2615_v43, %v2287_v6  ;;  %v2699_v43 = vadd.f32 %v2698_v58, %v2370_v11  ;;  %v5565_v11 = vmax.f32 %v5563_v54, %v5564_v27  ;;  %v5584_v27 = vld [vmem:[#allocation5_spill] sm:$0xff] }
 0x366   : > { %v2904_v29 = vpack.c.bf16 %v2872_v36, %v2872_v36  ;;  %v2773_v16 = vmax.f32 %v2616_v45, %v2696_v53  ;;  %v2705_v3 = vpop.f32.mrf.mxu3  ;;  %v5562_v45 = vld [vmem:[#allocation37_spill] sm:$0xff] }
 0x368   : > { %2937 = vst.msk [vmem:[%s5024_s9 + $0x58] sm:$0xf] %vm2914_vm1, %v2904_v29  ;;  %v2805_v62 = vmax.f32 %v5548_v19, %v2773_v16  ;;  %v2623_v31 = vpop.f32.mrf.mxu2  ;;  %v1960_v1 = vpop.f32.mrf.mxu0 }
 0x369   : > { %v2289_v35 = vpop.f32.mrf.mxu1 }
 0x36a   : > { %v2841_v48 = vadd.f32 %v5005_v5, %v2805_v62  ;;  %v2290_v21 = vadd.f32 %v2289_v35, %v1960_v1 }
 0x36c   : > { %v2873_v24 = vmax.f32 %v2841_v48, 0.0  ;;  %v2619_v0 = vadd.f32 %v2618_v28, %v2290_v21  ;;  %v2701_v28 = vadd.f32 %v2700_v60, %v2372_v47  ;;  %v2377_v60 = vadd.f32 %v4919_v12, %v5562_v45  ;;  %v5566_v12 = vld [vmem:[#allocation39_spill] sm:$0xff]  ;;  %v5580_v45 = vld [vmem:[#allocation89_spill] sm:$0xff] }
 0x36e   : > { %v2905_v17 = vpack.c.bf16 %v2873_v24, %v2873_v24  ;;  %v2774_v14 = vmax.f32 %v2619_v0, %v2699_v43  ;;  %v2708_v34 = vpop.f32.mrf.mxu3  ;;  %v2706_v19 = vadd.f32 %v2705_v3, %v2377_v60  ;;  %v5567_v0 = vld [vmem:[#allocation82_spill] sm:$0xff] }
 0x370   : > { %2938 = vst.msk [vmem:[%s5024_s9 + $0x5c] sm:$0xf] %vm2914_vm1, %v2905_v17  ;;  %v2806_v41 = vmax.f32 %v5553_v33, %v2774_v14  ;;  %v2625_v26 = vpop.f32.mrf.mxu2  ;;  %v1962_v40 = vpop.f32.mrf.mxu0  ;;  %v2380_v17 = vadd.f32 %v5567_v0, %v5566_v12  ;;  %v5587_v12 = vld [vmem:[#allocation85_spill] sm:$0xff] }
 0x371   : > { %v2291_v2 = vpop.f32.mrf.mxu1 }
 0x372   : > { %v2842_v18 = vadd.f32 %v5005_v5, %v2806_v41  ;;  %v2292_v30 = vadd.f32 %v2291_v2, %v1962_v40  ;;  %v2709_v25 = vadd.f32 %v2708_v34, %v2380_v17  ;;  %v5568_v2 = vld [vmem:[#allocation38_spill] sm:$0xff] }
 0x373   : > { %v5570_v47 = vmax.f32 %v5568_v2, %v5569_v7 }
 0x374   : > { %v2874_v20 = vmax.f32 %v2842_v18, 0.0  ;;  %v2621_v46 = vadd.f32 %v2620_v56, %v2292_v30 }
 0x376   : > { %v2906_v57 = vpack.c.bf16 %v2874_v20, %v2874_v20  ;;  %v2775_v44 = vmax.f32 %v2621_v46, %v2701_v28  ;;  %v2710_v41 = vpop.f32.mrf.mxu3  ;;  %v5571_v46 = vld [vmem:[#allocation41_spill] sm:$0xff] }
 0x378   : > { %2939 = vst.msk [vmem:[%s5024_s9 + $0x60] sm:$0xf] %vm2914_vm1, %v2906_v57  ;;  %v2807_v32 = vmax.f32 %v5556_v37, %v2775_v44  ;;  %v2628_v58 = vpop.f32.mrf.mxu2  ;;  %v1965_v22 = vpop.f32.mrf.mxu0  ;;  %v5572_v57 = vld [vmem:[#allocation84_spill] sm:$0xff] }
 0x379   : > { %v2294_v50 = vpop.f32.mrf.mxu1  ;;  %v2382_v44 = vadd.f32 %v5572_v57, %v5571_v46 }
 0x37a   : > { %v2843_v15 = vadd.f32 %v5005_v5, %v2807_v32  ;;  %v2295_v52 = vadd.f32 %v2294_v50, %v1965_v22 }
 0x37b   : > { %v2711_v32 = vadd.f32 %v2710_v41, %v2382_v44  ;;  %v5589_v41 = vld [vmem:[#allocation45_spill] sm:$0xff]  ;;  %v5592_v44 = vld [vmem:[#allocation4_spill] sm:$0xff] }
 0x37c   : > { %v2875_v13 = vmax.f32 %v2843_v15, 0.0  ;;  %v2624_v56 = vadd.f32 %v2623_v31, %v2295_v52  ;;  %v5575_v52 = vld [vmem:[#allocation40_spill] sm:$0xff] }
 0x37e   : > { %v2907_v55 = vpack.c.bf16 %v2875_v13, %v2875_v13  ;;  %v2776_v51 = vmax.f32 %v2624_v56, %v2704_v49  ;;  %v2713_v15 = vpop.f32.mrf.mxu3  ;;  %v5576_v49 = vld [vmem:[#allocation83_spill] sm:$0xff] }
 0x37f   : > { %v5577_v13 = vmax.f32 %v5575_v52, %v5576_v49 }
 0x380   : > { %2940 = vst.msk [vmem:[%s5024_s9 + $0x64] sm:$0xf] %vm2914_vm1, %v2907_v55  ;;  %v2808_v38 = vmax.f32 %v5561_v42, %v2776_v51  ;;  %v2630_v6 = vpop.f32.mrf.mxu2  ;;  %v1967_v53 = vpop.f32.mrf.mxu0  ;;  %v5578_v42 = vld [vmem:[#allocation43_spill] sm:$0xff] }
 0x381   : > { %v2296_v36 = vpop.f32.mrf.mxu1 }
 0x382   : > { %v2844_v29 = vadd.f32 %v5005_v5, %v2808_v38  ;;  %v2297_v16 = vadd.f32 %v2296_v36, %v1967_v53  ;;  %v5579_v38 = vld [vmem:[#allocation86_spill] sm:$0xff] }
 0x384   : > { %v2876_v62 = vmax.f32 %v2844_v29, 0.0  ;;  %v2626_v31 = vadd.f32 %v2625_v26, %v2297_v16 }
 0x386   : > { %v2908_v1 = vpack.c.bf16 %v2876_v62, %v2876_v62  ;;  %v2777_v35 = vmax.f32 %v2626_v31, %v2706_v19  ;;  %v5581_v19 = vld [vmem:[#allocation2_spill] sm:$0xff] }
 0x387   : > { %v5582_v62 = vld [vmem:[#allocation46_spill] sm:$0xff] }
 0x388   : > { %2941 = vst.msk [vmem:[%s5024_s9 + $0x68] sm:$0xf] %vm2914_vm1, %v2908_v1  ;;  %v2809_v48 = vmax.f32 %v5565_v11, %v2777_v35  ;;  %v2633_v21 = vpop.f32.mrf.mxu2  ;;  %v1970_v43 = vpop.f32.mrf.mxu0  ;;  %v5583_v31 = vmax.f32 %v5581_v19, %v5582_v62  ;;  %v5585_v11 = vld [vmem:[#allocation49_spill] sm:$0xff] }
 0x389   : > { %v2299_v24 = vpop.f32.mrf.mxu1 }
 0x38a   : > { %v2845_v14 = vadd.f32 %v5005_v5, %v2809_v48  ;;  %v2300_v63 = vadd.f32 %v2299_v24, %v1970_v43  ;;  %v2312_v48 = vadd.f32 %v5585_v11, %v5584_v27  ;;  %v5586_v24 = vld [vmem:[#allocation42_spill] sm:$0xff]  ;;  %v5607_v27 = vld [vmem:[#allocation52_spill] sm:$0xff] }
 0x38b   : > { %v5588_v0 = vmax.f32 %v5586_v24, %v5587_v12 }
 0x38c   : > { %v2877_v59 = vmax.f32 %v2845_v14, 0.0  ;;  %v2629_v33 = vadd.f32 %v2628_v58, %v2300_v63  ;;  %v2715_v63 = vpop.f32.mrf.mxu3 }
 0x38e   : > { %v2909_v26 = vpack.c.bf16 %v2877_v59, %v2877_v59  ;;  %v2778_v40 = vmax.f32 %v2629_v33, %v2709_v25 }
 0x390   : > { %2942 = vst.msk [vmem:[%s5024_s9 + $0x6c] sm:$0xf] %vm2914_vm1, %v2909_v26  ;;  %v2810_v18 = vmax.f32 %v5570_v47, %v2778_v40  ;;  %v2635_v30 = vpop.f32.mrf.mxu2  ;;  %v1972_v28 = vpop.f32.mrf.mxu0  ;;  %v5590_v26 = vld [vmem:[#allocation88_spill] sm:$0xff] }
 0x391   : > { %v2301_v20 = vpop.f32.mrf.mxu1  ;;  %v2387_v40 = vadd.f32 %v5590_v26, %v5589_v41 }
 0x392   : > { %v2846_v8 = vadd.f32 %v5005_v5, %v2810_v18  ;;  %v2302_v37 = vadd.f32 %v2301_v20, %v1972_v28  ;;  %v5591_v18 = vld [vmem:[#allocation90_spill] sm:$0xff] }
 0x393   : > { %v2716_v20 = vadd.f32 %v2715_v63, %v2387_v40 }
 0x394   : > { %v2878_v58 = vmax.f32 %v2846_v8, 0.0  ;;  %v2631_v22 = vadd.f32 %v2630_v6, %v2302_v37  ;;  %v2385_v6 = vadd.f32 %v5579_v38, %v5578_v42  ;;  %v5593_v8 = vld [vmem:[#allocation48_spill] sm:$0xff]  ;;  %v5601_v38 = vld [vmem:[#allocation6_spill] sm:$0xff] }
 0x395   : > { %v5594_v37 = vmax.f32 %v5592_v44, %v5593_v8 }
 0x396   : > { %v2910_v3 = vpack.c.bf16 %v2878_v58, %v2878_v58  ;;  %v2779_v50 = vmax.f32 %v2631_v22, %v2711_v32  ;;  %v2714_v29 = vadd.f32 %v2713_v15, %v2385_v6  ;;  %v5598_v15 = vld [vmem:[#allocation87_spill] sm:$0xff]  ;;  %v5602_v6 = vld [vmem:[#allocation50_spill] sm:$0xff] }
 0x398   : > { %2943 = vst.msk [vmem:[%s5024_s9 + $0x70] sm:$0xf] %vm2914_vm1, %v2910_v3  ;;  %v2811_v56 = vmax.f32 %v5577_v13, %v2779_v50  ;;  %v2638_v55 = vpop.f32.mrf.mxu2  ;;  %v1975_v51 = vpop.f32.mrf.mxu0  ;;  %v5595_v3 = vld [vmem:[#allocation7_spill] sm:$0xff] }
 0x399   : > { %v2639_v23 = vadd.f32 %v2638_v55, %v2310_v9  ;;  %v2304_v39 = vpop.f32.mrf.mxu1  ;;  %v5596_v50 = vld [vmem:[#allocation51_spill] sm:$0xff]  ;;  %v5597_v9 = vld [vmem:[#allocation44_spill] sm:$0xff] }
 0x39a   : > { %v2847_v53 = vadd.f32 %v5005_v5, %v2811_v56  ;;  %v2305_v36 = vadd.f32 %v2304_v39, %v1975_v51  ;;  %v2315_v10 = vadd.f32 %v5596_v50, %v5595_v3 }
 0x39b   : > { %v2750_v60 = vmax.f32 %v5580_v45, %v2639_v23  ;;  %v5600_v23 = vld [vmem:[#allocation91_spill] sm:$0xff] }
 0x39c   : > { %v2879_v16 = vmax.f32 %v2847_v53, 0.0  ;;  %v2634_v34 = vadd.f32 %v2633_v21, %v2305_v36  ;;  %v5603_v53 = vmax.f32 %v5601_v38, %v5602_v6 }
 0x39d   : > { %v2782_v1 = vmax.f32 %v5583_v31, %v2750_v60  ;;  %v5604_v60 = vld [vmem:[#allocation9_spill] sm:$0xff] }
 0x39e   : > { %v2911_v35 = vpack.c.bf16 %v2879_v16, %v2879_v16  ;;  %v2780_v54 = vmax.f32 %v2634_v34, %v2714_v29  ;;  %v5605_v29 = vld [vmem:[#allocation53_spill] sm:$0xff] }
 0x39f   : > { %v2818_v43 = vadd.f32 %v5005_v5, %v2782_v1  ;;  %v2317_v16 = vadd.f32 %v5605_v29, %v5604_v60 }
 0x3a0   : > { %2944 = vst.msk [vmem:[%s5024_s9 + $0x74] sm:$0xf] %vm2914_vm1, %v2911_v35  ;;  %v2812_v17 = vmax.f32 %v5588_v0, %v2780_v54  ;;  %v2640_v14 = vpop.f32.mrf.mxu2  ;;  %v1977_v21 = vpop.f32.mrf.mxu0  ;;  %v5606_v54 = vld [vmem:[#allocation8_spill] sm:$0xff] }
 0x3a1   : > { %v2850_v25 = vmax.f32 %v2818_v43, 0.0  ;;  %v2641_v59 = vadd.f32 %v2640_v14, %v2312_v48  ;;  %v2306_v33 = vpop.f32.mrf.mxu1  ;;  %v5608_v11 = vmax.f32 %v5606_v54, %v5607_v27 }
 0x3a2   : > { %v2848_v2 = vadd.f32 %v5005_v5, %v2812_v17  ;;  %v2307_v7 = vadd.f32 %v2306_v33, %v1977_v21 }
 0x3a3   : > { %v2882_v47 = vpack.c.bf16 %v2850_v25, %v2850_v25  ;;  %v2751_v28 = vmax.f32 %v5591_v18, %v2641_v59 }
 0x3a4   : > { %v2880_v46 = vmax.f32 %v2848_v2, 0.0  ;;  %v2636_v57 = vadd.f32 %v2635_v30, %v2307_v7  ;;  %v5599_v30 = vmax.f32 %v5597_v9, %v5598_v15 }
 0x3a5   : > { %2915 = vst.msk [vmem:[%s5024_s9] sm:$0xf] %vm2914_vm1, %v2882_v47  ;;  %v2783_v32 = vmax.f32 %v5594_v37, %v2751_v28 }
 0x3a6   : > { %v2912_v58 = vpack.c.bf16 %v2880_v46, %v2880_v46  ;;  %v2781_v22 = vmax.f32 %v2636_v57, %v2716_v20 }
 0x3a7   : > { %v2819_v61 = vadd.f32 %v5005_v5, %v2783_v32 }
 0x3a8   : > { %2945 = vst.msk [vmem:[%s5024_s9 + $0x78] sm:$0xf] %vm2914_vm1, %v2912_v58  ;;  %v2813_v52 = vmax.f32 %v5599_v30, %v2781_v22  ;;  %v2643_v49 = vpop.f32.mrf.mxu2 }
 0x3a9   : > { %v2851_v13 = vmax.f32 %v2819_v61, 0.0  ;;  %v2644_v56 = vadd.f32 %v2643_v49, %v2315_v10 }
 0x3aa   : > { %v2849_v55 = vadd.f32 %v5005_v5, %v2813_v52 }
 0x3ab   : > { %v2883_v51 = vpack.c.bf16 %v2851_v13, %v2851_v13  ;;  %v2752_v39 = vmax.f32 %v5600_v23, %v2644_v56 }
 0x3ac   : > { %v2881_v42 = vmax.f32 %v2849_v55, 0.0 }
 0x3ad   : > { %2916 = vst.msk [vmem:[%s5024_s9 + $0x4] sm:$0xf] %vm2914_vm1, %v2883_v51  ;;  %v2784_v36 = vmax.f32 %v5603_v53, %v2752_v39 }
 0x3ae   : > { %v2913_v45 = vpack.c.bf16 %v2881_v42, %v2881_v42 }
 0x3af   : > { %v2820_v34 = vadd.f32 %v5005_v5, %v2784_v36 }
 0x3b0   : > { %2946 = vst.msk [vmem:[%s5024_s9 + $0x7c] sm:$0xf] %vm2914_vm1, %v2913_v45  ;;  %v2645_v19 = vpop.f32.mrf.mxu2 }
 0x3b1   : > { %v2852_v62 = vmax.f32 %v2820_v34, 0.0  ;;  %v2646_v31 = vadd.f32 %v2645_v19, %v2317_v16 }
 0x3b3   : > { %v2884_v1 = vpack.c.bf16 %v2852_v62, %v2852_v62  ;;  %v2753_v35 = vmax.f32 %v4987_v4, %v2646_v31 }
 0x3b5   : > { %2917 = vst.msk [vmem:[%s5024_s9 + $0x8] sm:$0xf] %vm2914_vm1, %v2884_v1  ;;  %v2785_v48 = vmax.f32 %v5608_v11, %v2753_v35 }
 0x3b7   : > { %v2821_v43 = vadd.f32 %v5005_v5, %v2785_v48 }
 0x3b9   : > { %v2853_v24 = vmax.f32 %v2821_v43, 0.0 }
 0x3bb   : > { %v2885_v12 = vpack.c.bf16 %v2853_v24, %v2853_v24 }
 0x3bd   : > { %2918 = vst.msk [vmem:[%s5024_s9 + $0xc] sm:$0xf] %vm2914_vm1, %v2885_v12 }
 0x3be PF: > { %s13_s12 = sadd.s32 1, %s4162_s12  }
 0x3bf   : > { %p10_p5 = scmp.ge.s32.totalorder %s13_s12, 4  }
 0x3c1   :  { %12 = sbr.rel (!%p10_p5) target bundleno = 1 (0x1), region = 62 }

// kernel: net_forward.5
= control target key start
LH: loop header
LB: loop body
LE: loop exit
PB: predicated region body
PF: predicated region fallthrough
CT: control target
= control target key end

     0   :  { %s4012_s0 = inlined_call_operand.vmem [shape: bf16[288,576], index: 0, kind: input, shape index: {}]   ;;  %s4013_s1 = inlined_call_operand.vmem [shape: bf16[576,64], index: 1, kind: input, shape index: {}]   ;;  %s4014_s2 = inlined_call_operand.vmem [shape: f32[1,64], index: 2, kind: input, shape index: {}]   ;;  %s4015_s3 = inlined_call_operand.vmem [shape: bf16[576,128], index: 3, kind: input, shape index: {}]   ;;  %s4016_s4 = inlined_call_operand.vmem [shape: f32[1,128], index: 4, kind: input, shape index: {}]   ;;  %s4017_s5 = inlined_call_operand.vmem [shape: bf16[128,128], index: 5, kind: input, shape index: {}]   ;;  %s4018_s6 = inlined_call_operand.vmem [shape: f32[1,128], index: 6, kind: input, shape index: {}]   ;;  %s4019_s7 = inlined_call_operand.hbm [shape: f32[8,128], index: 7, kind: output, shape index: {}]  }
   0x1   :  { %v2754_v0 = vld [vmem:[%s4013_s1 + $0x38] sm:$0xff]  ;;  %v2753_v1 = vld [vmem:[%s4013_s1 + $0x30] sm:$0xff]  ;;  %v2752_v2 = vld [vmem:[%s4013_s1 + $0x28] sm:$0xff] }
   0x2   :  { %929 = vmatpush.bf16.msra.mxu0 %v2754_v0  ;;  %2827 = vmatpush.bf16.msra.mxu1 %v2754_v0 }
   0x3   :  { %2828 = vmatpush.bf16.msra.mxu2 %v2754_v0  ;;  %2829 = vmatpush.bf16.msra.mxu3 %v2754_v0 }
   0x6   :  { %930 = vmatpush.bf16.msra.mxu0 %v2753_v1  ;;  %2830 = vmatpush.bf16.msra.mxu1 %v2753_v1 }
   0x7   :  { %2831 = vmatpush.bf16.msra.mxu2 %v2753_v1  ;;  %2832 = vmatpush.bf16.msra.mxu3 %v2753_v1 }
   0x8   :  { %12 = vsyncpa [#allocation3], 0  ;;  %v2751_v3 = vld [vmem:[%s4013_s1 + $0x20] sm:$0xff]  ;;  %v2750_v4 = vld [vmem:[%s4013_s1 + $0x18] sm:$0xff]  ;;  %vm874_vm0 = vcmask 523264   ;;  %s2882_s16 = smov 64  }
   0x9   :  { %v2749_v5 = vld [vmem:[%s4013_s1 + $0x10] sm:$0xff]  ;;  %v2748_v6 = vld [vmem:[%s4013_s1 + $0x8] sm:$0xff]  ;;  %v2747_v7 = vld [vmem:[%s4013_s1] sm:$0xff]  ;;  %s2883_s21 = smov [#allocation2]  }
   0xa   :  { %931 = vmatpush.bf16.msra.mxu0 %v2752_v2  ;;  %2833 = vmatpush.bf16.msra.mxu1 %v2752_v2  ;;  %v1960_v8 = vld [vmem:[%s4012_s0] sm:$0xf]  ;;  %v2659_v9 = vld [vmem:[%s4012_s0 + $0x10] sm:$0xf0]  ;;  %v2100_v10 = vld [vmem:[%s4012_s0 + $0x118] sm:$0xf] }
   0xb   :  { %2834 = vmatpush.bf16.msra.mxu2 %v2752_v2  ;;  %2835 = vmatpush.bf16.msra.mxu3 %v2752_v2  ;;  %v2694_v11 = vld [vmem:[%s4012_s0 + $0x128] sm:$0xf0]  ;;  %v2140_v12 = vld [vmem:[%s4012_s0 + $0x168] sm:$0xf]  ;;  %v2704_v13 = vld [vmem:[%s4012_s0 + $0x178] sm:$0xf0]  ;;  %v1961_v18 = vor.u32 %v2659_v9, %v1960_v8 }
   0xc   :  { %v2782_v14 = vld [vmem:[%s4013_s1 + $0x118] sm:$0xff]  ;;  %v2240_v16 = vld [vmem:[%s4012_s0 + $0x230] sm:$0xf]  ;;  %v2729_v17 = vld [vmem:[%s4012_s0 + $0x240] sm:$0xf0]  ;;  %v2101_v19 = vor.u32 %v2694_v11, %v2100_v10  ;;  %v2141_v20 = vor.u32 %v2704_v13, %v2140_v12 }
   0xd   :  { %v2762_v15 = vld [vmem:[%s4013_s1 + $0x78] sm:$0xff]  ;;  %v2241_v21 = vor.u32 %v2729_v17, %v2240_v16  ;;  %v2761_v23 = vld [vmem:[%s4013_s1 + $0x70] sm:$0xff]  ;;  %v2760_v27 = vld [vmem:[%s4013_s1 + $0x68] sm:$0xff] }
   0xe   :  { %932 = vmatpush.bf16.msra.mxu0 %v2751_v3  ;;  %2836 = vmatpush.bf16.msra.mxu1 %v2751_v3  ;;  %v2770_v22 = vld [vmem:[%s4013_s1 + $0xb8] sm:$0xff]  ;;  %v2781_v24 = vld [vmem:[%s4013_s1 + $0x110] sm:$0xff]  ;;  %v2768_v28 = vld [vmem:[%s4013_s1 + $0xa8] sm:$0xff] }
   0xf   :  { %2837 = vmatpush.bf16.msra.mxu2 %v2751_v3  ;;  %2838 = vmatpush.bf16.msra.mxu3 %v2751_v3  ;;  %v2778_v25 = vld [vmem:[%s4013_s1 + $0xf8] sm:$0xff]  ;;  %v2769_v26 = vld [vmem:[%s4013_s1 + $0xb0] sm:$0xff]  ;;  %v2759_v29 = vld [vmem:[%s4013_s1 + $0x60] sm:$0xff] }
  0x10   :  { %v1980_v30 = vld [vmem:[%s4012_s0 + $0x28] sm:$0xf]  ;;  %v2664_v31 = vld [vmem:[%s4012_s0 + $0x38] sm:$0xf0]  ;;  %v2120_v32 = vld [vmem:[%s4012_s0 + $0x140] sm:$0xf] }
  0x11   :  { %v2699_v33 = vld [vmem:[%s4012_s0 + $0x150] sm:$0xf0]  ;;  %v2160_v34 = vld [vmem:[%s4012_s0 + $0x190] sm:$0xf]  ;;  %v2709_v35 = vld [vmem:[%s4012_s0 + $0x1a0] sm:$0xf0]  ;;  %v1981_v39 = vor.u32 %v2664_v31, %v1980_v30 }
  0x12   :  { %933 = vmatpush.bf16.msra.mxu0 %v2750_v4  ;;  %2839 = vmatpush.bf16.msra.mxu1 %v2750_v4  ;;  %v2758_v36 = vld [vmem:[%s4013_s1 + $0x58] sm:$0xff]  ;;  %v2734_v38 = vld [vmem:[%s4012_s0 + $0x268] sm:$0xf0]  ;;  %v2121_v40 = vor.u32 %v2699_v33, %v2120_v32  ;;  %v2161_v41 = vor.u32 %v2709_v35, %v2160_v34  ;;  %v2757_v43 = vld [vmem:[%s4013_s1 + $0x50] sm:$0xff] }
  0x13   :  { %2840 = vmatpush.bf16.msra.mxu2 %v2750_v4  ;;  %2841 = vmatpush.bf16.msra.mxu3 %v2750_v4  ;;  %v2260_v37 = vld [vmem:[%s4012_s0 + $0x258] sm:$0xf]  ;;  %v2777_v44 = vld [vmem:[%s4013_s1 + $0xf0] sm:$0xff]  ;;  %v2767_v45 = vld [vmem:[%s4013_s1 + $0xa0] sm:$0xff] }
  0x14   :  { %v2261_v42 = vor.u32 %v2734_v38, %v2260_v37  ;;  %v2780_v46 = vld [vmem:[%s4013_s1 + $0x108] sm:$0xff]  ;;  %v2766_v49 = vld [vmem:[%s4013_s1 + $0x98] sm:$0xff]  ;;  %v2755_v50 = vld [vmem:[%s4013_s1 + $0x40] sm:$0xff] }
  0x15   :  { %v2756_v47 = vld [vmem:[%s4013_s1 + $0x48] sm:$0xff]  ;;  %v2775_v51 = vld [vmem:[%s4013_s1 + $0xe0] sm:$0xff]  ;;  %v2000_v52 = vld [vmem:[%s4012_s0 + $0x50] sm:$0xf] }
  0x16   :  { %934 = vmatpush.bf16.msra.mxu0 %v2749_v5  ;;  %2842 = vmatpush.bf16.msra.mxu1 %v2749_v5  ;;  %v2776_v48 = vld [vmem:[%s4013_s1 + $0xe8] sm:$0xff]  ;;  %v2669_v53 = vld [vmem:[%s4012_s0 + $0x60] sm:$0xf0]  ;;  %v1962_v55 = vld [vmem:[%s4012_s0 + $0x14] sm:$0xf0] }
  0x17   :  { %2843 = vmatpush.bf16.msra.mxu2 %v2749_v5  ;;  %2844 = vmatpush.bf16.msra.mxu3 %v2749_v5  ;;  %v2657_v54 = vld [vmem:[%s4012_s0 + $0x4] sm:$0xf]  ;;  %v2180_v56 = vld [vmem:[%s4012_s0 + $0x1b8] sm:$0xf]  ;;  %v2714_v57 = vld [vmem:[%s4012_s0 + $0x1c8] sm:$0xf0]  ;;  %v2001_v60 = vor.u32 %v2669_v53, %v2000_v52 }
  0x18   :  { %v2280_v58 = vld [vmem:[%s4012_s0 + $0x280] sm:$0xf]  ;;  %v2739_v59 = vld [vmem:[%s4012_s0 + $0x290] sm:$0xf0]  ;;  %v1965_v61 = vor.u32 %v2657_v54, %v1962_v55  ;;  %v2181_v62 = vor.u32 %v2714_v57, %v2180_v56  ;;  %v2774_v0 = vld [vmem:[%s4013_s1 + $0xd8] sm:$0xff] }
  0x19   :  { %v2281_v63 = vor.u32 %v2739_v59, %v2280_v58  ;;  %v2765_v1 = vld [vmem:[%s4013_s1 + $0x90] sm:$0xff]  ;;  %v2764_v3 = vld [vmem:[%s4013_s1 + $0x88] sm:$0xff]  ;;  %v2763_v5 = vld [vmem:[%s4013_s1 + $0x80] sm:$0xff] }
  0x1a   :  { %935 = vmatpush.bf16.msra.mxu0 %v2748_v6  ;;  %2845 = vmatpush.bf16.msra.mxu1 %v2748_v6  ;;  %v2773_v2 = vld [vmem:[%s4013_s1 + $0xd0] sm:$0xff]  ;;  %v2772_v4 = vld [vmem:[%s4013_s1 + $0xc8] sm:$0xff]  ;;  %v1982_v9 = vld [vmem:[%s4012_s0 + $0x3c] sm:$0xf0] }
  0x1b   :  { %2846 = vmatpush.bf16.msra.mxu2 %v2748_v6  ;;  %2847 = vmatpush.bf16.msra.mxu3 %v2748_v6  ;;  %v2020_v6 = vld [vmem:[%s4012_s0 + $0x78] sm:$0xf]  ;;  %v2662_v8 = vld [vmem:[%s4012_s0 + $0x2c] sm:$0xf]  ;;  %v2200_v10 = vld [vmem:[%s4012_s0 + $0x1e0] sm:$0xf] }
  0x1c   :  { %v2719_v11 = vld [vmem:[%s4012_s0 + $0x1f0] sm:$0xf0]  ;;  %v2300_v12 = vld [vmem:[%s4012_s0 + $0x2a8] sm:$0xf]  ;;  %v2744_v13 = vld [vmem:[%s4012_s0 + $0x2b8] sm:$0xf0]  ;;  %v1985_v16 = vor.u32 %v2662_v8, %v1982_v9 }
  0x1d   :  { %v2201_v17 = vor.u32 %v2719_v11, %v2200_v10  ;;  %v2060_v32 = vld [vmem:[%s4012_s0 + $0xc8] sm:$0xf]  ;;  %v2684_v33 = vld [vmem:[%s4012_s0 + $0xd8] sm:$0xf0]  ;;  %v2022_v35 = vld [vmem:[%s4012_s0 + $0x8c] sm:$0xf0] }
  0x1e   :  { %936 = vmatpush.bf16.msra.mxu0 %v2747_v7  ;;  %2848 = vmatpush.bf16.msra.mxu1 %v2747_v7  ;;  %v2672_v34 = vld [vmem:[%s4012_s0 + $0x7c] sm:$0xf]  ;;  %v2663_v38 = vld [vmem:[%s4012_s0 + $0x34] sm:$0xf]  ;;  %v2682_v56 = vld [vmem:[%s4012_s0 + $0xcc] sm:$0xf] }
  0x1f   :  { %2849 = vmatpush.bf16.msra.mxu2 %v2747_v7  ;;  %2850 = vmatpush.bf16.msra.mxu3 %v2747_v7  ;;  %v2674_v7 = vld [vmem:[%s4012_s0 + $0x88] sm:$0xf0]  ;;  %v2660_v37 = vld [vmem:[%s4012_s0 + $0x18] sm:$0xf0]  ;;  %v2062_v57 = vld [vmem:[%s4012_s0 + $0xdc] sm:$0xf0] }
  0x20   :  { %v1976_v58 = vld [vmem:[%s4012_s0 + $0x10] sm:$0xf]  ;;  %v2661_v59 = vld [vmem:[%s4012_s0 + $0x20] sm:$0xf0]  ;;  %v2028_v8 = vld [vmem:[%s4012_s0 + $0x80] sm:$0xf] }
  0x21   :  { %937 = vmatmul.bf16.vlgmr.msra.gmra.mxu0 %v1961_v18  ;;  %972 = vmatmul.bf16.vlgmr.msra.gmra.mxu1 %v2101_v19  ;;  %v2301_v18 = vor.u32 %v2744_v13, %v2300_v12  ;;  %v2779_v19 = vld [vmem:[%s4013_s1 + $0x100] sm:$0xff]  ;;  %v2675_v9 = vld [vmem:[%s4012_s0 + $0x90] sm:$0xf0]  ;;  %v2678_v10 = vld [vmem:[%s4012_s0 + $0xac] sm:$0xf] }
  0x22   :  { %1329 = vmatpush.bf16.msrb.mxu0 %v2782_v14  ;;  %1028 = vmatpush.bf16.msrb.mxu1 %v2762_v15  ;;  %v2771_v14 = vld [vmem:[%s4013_s1 + $0xc0] sm:$0xff]  ;;  %v2021_v15 = vor.u32 %v2674_v7, %v2020_v6  ;;  %v1996_v6 = vld [vmem:[%s4012_s0 + $0x38] sm:$0xf]  ;;  %v2666_v7 = vld [vmem:[%s4012_s0 + $0x48] sm:$0xf0] }
  0x23   :  { %982 = vmatmul.bf16.vlgmr.msra.gmra.mxu2 %v2141_v20  ;;  %1007 = vmatmul.bf16.vlgmr.msra.gmra.mxu3 %v2241_v21  ;;  %v2040_v20 = vld [vmem:[%s4012_s0 + $0xa0] sm:$0xf]  ;;  %v2679_v21 = vld [vmem:[%s4012_s0 + $0xb0] sm:$0xf0]  ;;  %v1997_v13 = vor.u32 %v2666_v7, %v1996_v6  ;;  %v2693_v6 = vld [vmem:[%s4012_s0 + $0x124] sm:$0xf] }
  0x24   :  { %1127 = vmatpush.bf16.msrb.mxu2 %v2770_v22  ;;  %1226 = vmatpush.bf16.msrb.mxu3 %v2778_v25  ;;  %v2667_v22 = vld [vmem:[%s4012_s0 + $0x54] sm:$0xf]  ;;  %v2724_v25 = vld [vmem:[%s4012_s0 + $0x218] sm:$0xf0]  ;;  %v2050_v11 = vld [vmem:[%s4012_s0 + $0xbc] sm:$0xf0] }
  0x25   :  { %v2110_v7 = vld [vmem:[%s4012_s0 + $0x134] sm:$0xf0] }
  0x26   :  { %1029 = vmatpush.bf16.msrb.mxu1 %v2761_v23  ;;  %1330 = vmatpush.bf16.msrb.mxu0 %v2781_v24  ;;  %v2002_v23 = vld [vmem:[%s4012_s0 + $0x64] sm:$0xf0] }
  0x27   :  { %v2220_v24 = vld [vmem:[%s4012_s0 + $0x208] sm:$0xf] }
  0x28   :  { %1128 = vmatpush.bf16.msrb.mxu2 %v2769_v26  ;;  %1227 = vmatpush.bf16.msrb.mxu3 %v2777_v44  ;;  %v2658_v26 = vld [vmem:[%s4012_s0 + $0xc] sm:$0xf]  ;;  %v2221_v30 = vor.u32 %v2724_v25, %v2220_v24  ;;  %v2080_v44 = vld [vmem:[%s4012_s0 + $0xf0] sm:$0xf]  ;;  %v2016_v24 = vld [vmem:[%s4012_s0 + $0x60] sm:$0xf] }
  0x29   :  { %v2671_v25 = vld [vmem:[%s4012_s0 + $0x70] sm:$0xf0] }
  0x2a   :  { %1030 = vmatpush.bf16.msrb.mxu1 %v2760_v27  ;;  %1331 = vmatpush.bf16.msrb.mxu0 %v2780_v46  ;;  %v1970_v27 = vld [vmem:[%s4012_s0 + $0x1c] sm:$0xf0]  ;;  %v2677_v46 = vld [vmem:[%s4012_s0 + $0xa4] sm:$0xf] }
  0x2b   :  { %v1973_v31 = vor.u32 %v2658_v26, %v1970_v27  ;;  %v2048_v26 = vld [vmem:[%s4012_s0 + $0xa8] sm:$0xf]  ;;  %v2680_v27 = vld [vmem:[%s4012_s0 + $0xb8] sm:$0xf0] }
  0x2c   :  { %1129 = vmatpush.bf16.msrb.mxu2 %v2768_v28  ;;  %1228 = vmatpush.bf16.msrb.mxu3 %v2776_v48  ;;  %v2041_v28 = vor.u32 %v2679_v21, %v2040_v20  ;;  %v1988_v48 = vld [vmem:[%s4012_s0 + $0x30] sm:$0xf] }
  0x2e   :  { %1031 = vmatpush.bf16.msrb.mxu1 %v2759_v29  ;;  %1332 = vmatpush.bf16.msrb.mxu0 %v2779_v19  ;;  %v2005_v29 = vor.u32 %v2667_v22, %v2002_v23  ;;  %v2692_v22 = vld [vmem:[%s4012_s0 + $0x11c] sm:$0xf]  ;;  %v2102_v23 = vld [vmem:[%s4012_s0 + $0x12c] sm:$0xf0] }
  0x30   :  { %1130 = vmatpush.bf16.msrb.mxu2 %v2767_v45  ;;  %1229 = vmatpush.bf16.msrb.mxu3 %v2775_v51  ;;  %v2689_v45 = vld [vmem:[%s4012_s0 + $0x100] sm:$0xf0]  ;;  %v2010_v51 = vld [vmem:[%s4012_s0 + $0x6c] sm:$0xf0] }
  0x31   :  { %942 = vmatmul.bf16.gmra.mxu0 %v1981_v39  ;;  %977 = vmatmul.bf16.gmra.mxu1 %v2121_v40  ;;  %v1990_v39 = vld [vmem:[%s4012_s0 + $0x44] sm:$0xf0]  ;;  %v2061_v40 = vor.u32 %v2684_v33, %v2060_v32  ;;  %v2081_v52 = vor.u32 %v2689_v45, %v2080_v44  ;;  %v2017_v32 = vor.u32 %v2671_v25, %v2016_v24  ;;  %v2676_v45 = vld [vmem:[%s4012_s0 + $0x98] sm:$0xf0] }
  0x32   :  { %1032 = vmatpush.bf16.msrb.mxu1 %v2758_v36  ;;  %v1968_v36 = vld [vmem:[%s4012_s0 + $0x8] sm:$0xf] }
  0x33   :  { %987 = vmatmul.bf16.gmra.mxu2 %v2161_v41  ;;  %1012 = vmatmul.bf16.gmra.mxu3 %v2261_v42  ;;  %v2025_v41 = vor.u32 %v2672_v34, %v2022_v35  ;;  %v1969_v42 = vor.u32 %v2660_v37, %v1968_v36  ;;  %v2049_v35 = vor.u32 %v2680_v27, %v2048_v26  ;;  %v2036_v44 = vld [vmem:[%s4012_s0 + $0x88] sm:$0xf]  ;;  %v2707_v26 = vld [vmem:[%s4012_s0 + $0x194] sm:$0xf] }
  0x34   :  { %1131 = vmatpush.bf16.msrb.mxu2 %v2766_v49  ;;  %1230 = vmatpush.bf16.msrb.mxu3 %v2774_v0  ;;  %v2665_v49 = vld [vmem:[%s4012_s0 + $0x40] sm:$0xf0]  ;;  %v2065_v0 = vor.u32 %v2682_v56, %v2062_v57  ;;  %v2162_v27 = vld [vmem:[%s4012_s0 + $0x1a4] sm:$0xf0] }
  0x35   :  { %v1989_v54 = vor.u32 %v2665_v49, %v1988_v48  ;;  %v2688_v48 = vld [vmem:[%s4012_s0 + $0xfc] sm:$0xf]  ;;  %v2090_v49 = vld [vmem:[%s4012_s0 + $0x10c] sm:$0xf0] }
  0x36   :  { %1033 = vmatpush.bf16.msrb.mxu1 %v2757_v43  ;;  %v1993_v43 = vor.u32 %v2663_v38, %v1990_v39 }
  0x38   :  { %1132 = vmatpush.bf16.msrb.mxu2 %v2765_v1  ;;  %1231 = vmatpush.bf16.msrb.mxu3 %v2773_v2  ;;  %v1977_v1 = vor.u32 %v2661_v59, %v1976_v58  ;;  %v2093_v58 = vor.u32 %v2688_v48, %v2090_v49 }
  0x3a   :  { %1034 = vmatpush.bf16.msrb.mxu1 %v2756_v47  ;;  %v2042_v47 = vld [vmem:[%s4012_s0 + $0xb4] sm:$0xf0] }
  0x3b   :  { %v2045_v53 = vor.u32 %v2677_v46, %v2042_v47  ;;  %v2068_v46 = vld [vmem:[%s4012_s0 + $0xd0] sm:$0xf]  ;;  %v2685_v47 = vld [vmem:[%s4012_s0 + $0xe0] sm:$0xf0] }
  0x3c   :  { %1133 = vmatpush.bf16.msrb.mxu2 %v2764_v3  ;;  %1232 = vmatpush.bf16.msrb.mxu3 %v2772_v4  ;;  %v2687_v4 = vld [vmem:[%s4012_s0 + $0xf4] sm:$0xf] }
  0x3e   :  { %1035 = vmatpush.bf16.msrb.mxu1 %v2755_v50  ;;  %v2668_v50 = vld [vmem:[%s4012_s0 + $0x5c] sm:$0xf] }
  0x3f   :  { %v2013_v55 = vor.u32 %v2668_v50, %v2010_v51 }
  0x40   :  { %1134 = vmatpush.bf16.msrb.mxu2 %v2763_v5  ;;  %1233 = vmatpush.bf16.msrb.mxu3 %v2771_v14  ;;  %v2082_v5 = vld [vmem:[%s4012_s0 + $0x104] sm:$0xf0] }
  0x41   :  { %947 = vmatmul.bf16.gmra.mxu0 %v2001_v60  ;;  %1036 = vmatmul.bf16.vlgmr.msrb.gmra.mxu1 %v1965_v61  ;;  %v2008_v60 = vld [vmem:[%s4012_s0 + $0x58] sm:$0xf]  ;;  %v2670_v61 = vld [vmem:[%s4012_s0 + $0x68] sm:$0xf0]  ;;  %v2085_v12 = vor.u32 %v2687_v4, %v2082_v5 }
  0x42   :  { %v2009_v2 = vor.u32 %v2670_v61, %v2008_v60  ;;  %v2088_v4 = vld [vmem:[%s4012_s0 + $0xf8] sm:$0xf]  ;;  %v2690_v5 = vld [vmem:[%s4012_s0 + $0x108] sm:$0xf0] }
  0x43   :  { %992 = vmatmul.bf16.gmra.mxu2 %v2181_v62  ;;  %1017 = vmatmul.bf16.gmra.mxu3 %v2281_v63  ;;  %v2673_v62 = vld [vmem:[%s4012_s0 + $0x84] sm:$0xf]  ;;  %v2030_v63 = vld [vmem:[%s4012_s0 + $0x94] sm:$0xf0] }
  0x44   :  { %v2033_v3 = vor.u32 %v2673_v62, %v2030_v63 }
  0x51   :  { %952 = vmatmul.bf16.gmra.mxu0 %v2021_v15  ;;  %1041 = vmatmul.bf16.gmra.mxu1 %v1985_v16  ;;  %v2029_v16 = vor.u32 %v2675_v9, %v2028_v8 }
  0x53   :  { %997 = vmatmul.bf16.gmra.mxu2 %v2201_v17  ;;  %1022 = vmatmul.bf16.gmra.mxu3 %v2301_v18  ;;  %v2053_v17 = vor.u32 %v2678_v10, %v2050_v11 }
  0x61   :  { %957 = vmatmul.bf16.gmra.mxu0 %v2041_v28  ;;  %1046 = vmatmul.bf16.gmra.mxu1 %v2005_v29  ;;  %v2683_v28 = vld [vmem:[%s4012_s0 + $0xd4] sm:$0xf]  ;;  %v2070_v29 = vld [vmem:[%s4012_s0 + $0xe4] sm:$0xf0] }
  0x62   :  { %v2073_v37 = vor.u32 %v2683_v28, %v2070_v29  ;;  %v2076_v28 = vld [vmem:[%s4012_s0 + $0xd8] sm:$0xf]  ;;  %v2686_v29 = vld [vmem:[%s4012_s0 + $0xe8] sm:$0xf0] }
  0x63   :  { %1002 = vmatmul.bf16.gmra.mxu2 %v2221_v30  ;;  %1234 = vmatmul.bf16.vlgmr.msrb.gmra.mxu3 %v1973_v31  ;;  %v2105_v31 = vor.u32 %v2692_v22, %v2102_v23 }
  0x71   :  { %962 = vmatmul.bf16.gmra.mxu0 %v2061_v40  ;;  %1051 = vmatmul.bf16.gmra.mxu1 %v2025_v41 }
  0x73   :  { %1135 = vmatmul.bf16.vlgmr.msrb.gmra.mxu2 %v1969_v42  ;;  %1239 = vmatmul.bf16.gmra.mxu3 %v1993_v43  ;;  %v2697_v42 = vld [vmem:[%s4012_s0 + $0x144] sm:$0xf]  ;;  %v2122_v43 = vld [vmem:[%s4012_s0 + $0x154] sm:$0xf0] }
  0x74   :  { %v2125_v51 = vor.u32 %v2697_v42, %v2122_v43  ;;  %v2077_v42 = vor.u32 %v2686_v29, %v2076_v28 }
  0x81   :  { %967 = vmatmul.bf16.gmra.mxu0 %v2081_v52  ;;  %1056 = vmatmul.bf16.gmra.mxu1 %v2045_v53  ;;  %v2037_v52 = vor.u32 %v2676_v45, %v2036_v44 }
  0x83   :  { %1140 = vmatmul.bf16.gmra.mxu2 %v1989_v54  ;;  %1244 = vmatmul.bf16.gmra.mxu3 %v2013_v55  ;;  %v2069_v55 = vor.u32 %v2685_v47, %v2068_v46 }
  0x91   :  { %1061 = vmatmul.bf16.gmra.mxu1 %v2065_v0  ;;  %2462 = vmatmul.msk.bf16.vlgmr.msrb.gmra.mxu0 %vm874_vm0, %v1977_v1  ;;  %v2702_v0 = vld [vmem:[%s4012_s0 + $0x16c] sm:$0xf]  ;;  %v2142_v1 = vld [vmem:[%s4012_s0 + $0x17c] sm:$0xf0] }
  0x92   :  { %v2145_v9 = vor.u32 %v2702_v0, %v2142_v1  ;;  %v2691_v0 = vld [vmem:[%s4012_s0 + $0x110] sm:$0xf0]  ;;  %v2700_v1 = vld [vmem:[%s4012_s0 + $0x158] sm:$0xf0] }
  0x93   :  { %1145 = vmatmul.bf16.gmra.mxu2 %v2009_v2  ;;  %1249 = vmatmul.bf16.gmra.mxu3 %v2033_v3  ;;  %v2056_v2 = vld [vmem:[%s4012_s0 + $0xb0] sm:$0xf]  ;;  %v2681_v3 = vld [vmem:[%s4012_s0 + $0xc0] sm:$0xf0] }
  0x94   :  { %v2057_v10 = vor.u32 %v2681_v3, %v2056_v2  ;;  %v2703_v2 = vld [vmem:[%s4012_s0 + $0x174] sm:$0xf]  ;;  %v2150_v3 = vld [vmem:[%s4012_s0 + $0x184] sm:$0xf0] }
  0x9e   :  { %v938_v14 = vpop.f32.mrf.mxu0  ;;  %v3249_v15 = vpop.f32.mrf.mxu1 }
  0xa1   :  { %1066 = vmatmul.bf16.gmra.mxu1 %v2085_v12  ;;  %2463 = vmatmul.msk.bf16.gmra.mxu0 %vm874_vm0, %v1997_v13  ;;  %v2089_v13 = vor.u32 %v2690_v5, %v2088_v4 }
  0xa3   :  { %1150 = vmatmul.bf16.gmra.mxu2 %v2029_v16  ;;  %1254 = vmatmul.bf16.gmra.mxu3 %v2053_v17  ;;  %v2113_v17 = vor.u32 %v2693_v6, %v2110_v7 }
  0xa6   :  { %v3252_v18 = vpop.f32.mrf.mxu2  ;;  %v940_v19 = vpop.f32.mrf.mxu0 }
  0xa7   :  { %v3254_v20 = vpop.f32.mrf.mxu1  ;;  %v3256_v21 = vpop.f32.mrf.mxu3 }
  0xae   :  { %v3282_v30 = vpop.f32.mrf.mxu2  ;;  %v943_v33 = vpop.f32.mrf.mxu0 }
  0xaf   :  { %v3284_v34 = vpop.f32.mrf.mxu1  ;;  %v3286_v36 = vpop.f32.mrf.mxu3 }
  0xb1   :  { %1071 = vmatmul.bf16.gmra.mxu1 %v2105_v31  ;;  %2464 = vmatmul.msk.bf16.gmra.mxu0 %vm874_vm0, %v2017_v32  ;;  %v2108_v31 = vld [vmem:[%s4012_s0 + $0x120] sm:$0xf]  ;;  %v2695_v32 = vld [vmem:[%s4012_s0 + $0x130] sm:$0xf0] }
  0xb2   :  { %v2109_v45 = vor.u32 %v2695_v32, %v2108_v31 }
  0xb3   :  { %1155 = vmatmul.bf16.gmra.mxu2 %v2049_v35  ;;  %1259 = vmatmul.bf16.gmra.mxu3 %v2073_v37  ;;  %v2130_v35 = vld [vmem:[%s4012_s0 + $0x15c] sm:$0xf0] }
  0xb6   :  { %v3289_v38 = vpop.f32.mrf.mxu2  ;;  %v945_v39 = vpop.f32.mrf.mxu0 }
  0xb7   :  { %v3291_v40 = vpop.f32.mrf.mxu1  ;;  %v3293_v41 = vpop.f32.mrf.mxu3 }
  0xbe   :  { %v3319_v50 = vpop.f32.mrf.mxu2  ;;  %v948_v53 = vpop.f32.mrf.mxu0 }
  0xbf   :  { %v1037_v54 = vpop.f32.mrf.mxu1  ;;  %v3323_v57 = vpop.f32.mrf.mxu3 }
  0xc0   :  { %v3321_v56 = vadd.f32 %v1037_v54, %v938_v14 }
  0xc1   :  { %1076 = vmatmul.bf16.gmra.mxu1 %v2125_v51  ;;  %2465 = vmatmul.msk.bf16.gmra.mxu0 %vm874_vm0, %v2037_v52 }
  0xc3   :  { %1160 = vmatmul.bf16.gmra.mxu2 %v2069_v55  ;;  %1264 = vmatmul.bf16.gmra.mxu3 %v2093_v58  ;;  %v2182_v58 = vld [vmem:[%s4012_s0 + $0x1cc] sm:$0xf0] }
  0xc6   :  { %v3326_v59 = vpop.f32.mrf.mxu2  ;;  %v950_v60 = vpop.f32.mrf.mxu0 }
  0xc7   :  { %v1039_v61 = vpop.f32.mrf.mxu1  ;;  %v3330_v63 = vpop.f32.mrf.mxu3 }
  0xc8   :  { %v3328_v62 = vadd.f32 %v1039_v61, %v940_v19  ;;  %v2096_v61 = vld [vmem:[%s4012_s0 + $0x100] sm:$0xf] }
  0xc9   :  { %v2097_v6 = vor.u32 %v2691_v0, %v2096_v61 }
  0xce   :  { %v3356_v8 = vpop.f32.mrf.mxu2  ;;  %v953_v11 = vpop.f32.mrf.mxu0 }
  0xcf   :  { %v1042_v12 = vpop.f32.mrf.mxu1  ;;  %v3360_v16 = vpop.f32.mrf.mxu3 }
  0xd0   :  { %v3358_v14 = vadd.f32 %v1042_v12, %v943_v33  ;;  %v2698_v33 = vld [vmem:[%s4012_s0 + $0x14c] sm:$0xf] }
  0xd1   :  { %1081 = vmatmul.bf16.gmra.mxu1 %v2145_v9  ;;  %2466 = vmatmul.msk.bf16.gmra.mxu0 %vm874_vm0, %v2057_v10  ;;  %v2133_v48 = vor.u32 %v2698_v33, %v2130_v35  ;;  %v2202_v33 = vld [vmem:[%s4012_s0 + $0x1f4] sm:$0xf0]  ;;  %v2116_v35 = vld [vmem:[%s4012_s0 + $0x128] sm:$0xf] }
  0xd3   :  { %1165 = vmatmul.bf16.gmra.mxu2 %v2089_v13  ;;  %1269 = vmatmul.bf16.gmra.mxu3 %v2113_v17  ;;  %v2153_v17 = vor.u32 %v2703_v2, %v2150_v3 }
  0xd6   :  { %v3363_v19 = vpop.f32.mrf.mxu2  ;;  %v955_v22 = vpop.f32.mrf.mxu0 }
  0xd7   :  { %v1044_v23 = vpop.f32.mrf.mxu1  ;;  %v3367_v25 = vpop.f32.mrf.mxu3 }
  0xd8   :  { %v3365_v24 = vadd.f32 %v1044_v23, %v945_v39  ;;  %v2165_v39 = vor.u32 %v2707_v26, %v2162_v27 }
  0xde   :  { %v3393_v37 = vpop.f32.mrf.mxu2  ;;  %v958_v43 = vpop.f32.mrf.mxu0 }
  0xdf   :  { %v1047_v44 = vpop.f32.mrf.mxu1  ;;  %v3397_v47 = vpop.f32.mrf.mxu3 }
  0xe0   :  { %v3395_v46 = vadd.f32 %v1047_v44, %v948_v53  ;;  %v2712_v53 = vld [vmem:[%s4012_s0 + $0x1bc] sm:$0xf]  ;;  %v2170_v44 = vld [vmem:[%s4012_s0 + $0x1ac] sm:$0xf0] }
  0xe1   :  { %1086 = vmatmul.bf16.gmra.mxu1 %v2165_v39  ;;  %2467 = vmatmul.msk.bf16.gmra.mxu0 %vm874_vm0, %v2077_v42  ;;  %v2185_v5 = vor.u32 %v2712_v53, %v2182_v58  ;;  %v2705_v39 = vld [vmem:[%s4012_s0 + $0x180] sm:$0xf0]  ;;  %v2708_v42 = vld [vmem:[%s4012_s0 + $0x19c] sm:$0xf] }
  0xe3   :  { %1170 = vmatmul.bf16.gmra.mxu2 %v2109_v45  ;;  %1274 = vmatmul.bf16.gmra.mxu3 %v2133_v48 }
  0xe6   :  { %v3400_v49 = vpop.f32.mrf.mxu2  ;;  %v960_v51 = vpop.f32.mrf.mxu0 }
  0xe7   :  { %v1049_v52 = vpop.f32.mrf.mxu1  ;;  %v1235_v55 = vpop.f32.mrf.mxu3 }
  0xe8   :  { %v3402_v54 = vadd.f32 %v1049_v52, %v950_v60  ;;  %v2128_v60 = vld [vmem:[%s4012_s0 + $0x148] sm:$0xf] }
  0xe9   :  { %v2129_v10 = vor.u32 %v2700_v1, %v2128_v60  ;;  %v2173_v1 = vor.u32 %v2708_v42, %v2170_v44 }
  0xee   :  { %v3428_v4 = vpop.f32.mrf.mxu2  ;;  %v963_v7 = vpop.f32.mrf.mxu0 }
  0xef   :  { %v1052_v9 = vpop.f32.mrf.mxu1  ;;  %v1237_v13 = vpop.f32.mrf.mxu3 }
  0xf0   :  { %v3430_v12 = vadd.f32 %v1052_v9, %v953_v11  ;;  %v2717_v11 = vld [vmem:[%s4012_s0 + $0x1e4] sm:$0xf] }
  0xf1   :  { %1091 = vmatmul.bf16.gmra.mxu1 %v2185_v5  ;;  %2468 = vmatmul.msk.bf16.gmra.mxu0 %vm874_vm0, %v2097_v6  ;;  %v2205_v48 = vor.u32 %v2717_v11, %v2202_v33 }
  0xf3   :  { %1175 = vmatmul.bf16.gmra.mxu2 %v2129_v10  ;;  %1279 = vmatmul.bf16.gmra.mxu3 %v2153_v17 }
  0xf6   :  { %v1136_v23 = vpop.f32.mrf.mxu2  ;;  %v3434_v27 = vpop.f32.mrf.mxu0 }
  0xf7   :  { %v1137_v26 = vadd.f32 %v1136_v23, %v3321_v56  ;;  %v1054_v28 = vpop.f32.mrf.mxu1  ;;  %v1240_v31 = vpop.f32.mrf.mxu3  ;;  %v2696_v56 = vld [vmem:[%s4012_s0 + $0x138] sm:$0xf0]  ;;  %v2136_v23 = vld [vmem:[%s4012_s0 + $0x150] sm:$0xf] }
  0xf8   :  { %v3436_v29 = vadd.f32 %v1054_v28, %v955_v22  ;;  %v2148_v22 = vld [vmem:[%s4012_s0 + $0x170] sm:$0xf]  ;;  %v2117_v52 = vor.u32 %v2696_v56, %v2116_v35  ;;  %v2713_v28 = vld [vmem:[%s4012_s0 + $0x1c4] sm:$0xf] }
  0xf9   :  { %v1236_v32 = vadd.f32 %v1235_v55, %v1137_v26  ;;  %v2149_v61 = vor.u32 %v2705_v39, %v2148_v22  ;;  %v2710_v26 = vld [vmem:[%s4012_s0 + $0x1a8] sm:$0xf0] }
  0xfe   :  { %v1138_v45 = vpop.f32.mrf.mxu2  ;;  %v3463_v53 = vpop.f32.mrf.mxu0 }
  0xff   :  { %v1139_v55 = vadd.f32 %v1138_v45, %v3328_v62  ;;  %v1057_v58 = vpop.f32.mrf.mxu1  ;;  %v1242_v60 = vpop.f32.mrf.mxu3 }
 0x100   :  { %v3465_v0 = vadd.f32 %v1057_v58, %v958_v43  ;;  %v2722_v43 = vld [vmem:[%s4012_s0 + $0x20c] sm:$0xf] }
 0x101   :  { %v1238_v2 = vadd.f32 %v1237_v13, %v1139_v55  ;;  %1096 = vmatmul.bf16.gmra.mxu1 %v2205_v48  ;;  %2469 = vmatmul.msk.bf16.gmra.mxu0 %vm874_vm0, %v2117_v52  ;;  %v2222_v13 = vld [vmem:[%s4012_s0 + $0x21c] sm:$0xf0] }
 0x102   :  { %v2225_v33 = vor.u32 %v2722_v43, %v2222_v13  ;;  %v2718_v43 = vld [vmem:[%s4012_s0 + $0x1ec] sm:$0xf]  ;;  %v2210_v13 = vld [vmem:[%s4012_s0 + $0x1fc] sm:$0xf0] }
 0x103   :  { %1180 = vmatmul.bf16.gmra.mxu2 %v2149_v61  ;;  %1284 = vmatmul.bf16.gmra.mxu3 %v2173_v1 }
 0x106   :  { %v1141_v3 = vpop.f32.mrf.mxu2  ;;  %v3469_v6 = vpop.f32.mrf.mxu0 }
 0x107   :  { %v1142_v5 = vadd.f32 %v1141_v3, %v3358_v14  ;;  %v1059_v62 = vpop.f32.mrf.mxu1  ;;  %v1245_v10 = vpop.f32.mrf.mxu3  ;;  %v2701_v14 = vld [vmem:[%s4012_s0 + $0x160] sm:$0xf0] }
 0x108   :  { %v3471_v9 = vadd.f32 %v1059_v62, %v960_v51  ;;  %v2168_v51 = vld [vmem:[%s4012_s0 + $0x198] sm:$0xf]  ;;  %v2137_v35 = vor.u32 %v2701_v14, %v2136_v23  ;;  %v2242_v62 = vld [vmem:[%s4012_s0 + $0x244] sm:$0xf0] }
 0x109   :  { %v1241_v17 = vadd.f32 %v1240_v31, %v1142_v5  ;;  %v2190_v31 = vld [vmem:[%s4012_s0 + $0x1d4] sm:$0xf0]  ;;  %v2169_v42 = vor.u32 %v2710_v26, %v2168_v51 }
 0x10a   :  { %v2193_v52 = vor.u32 %v2713_v28, %v2190_v31 }
 0x10e   :  { %v1143_v11 = vpop.f32.mrf.mxu2  ;;  %v1334_v39 = vpop.f32.mrf.mxu0 }
 0x10f   :  { %v1144_v56 = vadd.f32 %v1143_v11, %v3365_v24  ;;  %v1062_v22 = vpop.f32.mrf.mxu1  ;;  %v3500_v45 = vadd.f32 %v1334_v39, %v1236_v32  ;;  %v1247_v48 = vpop.f32.mrf.mxu3 }
 0x110   :  { %v3498_v44 = vadd.f32 %v1062_v22, %v963_v7  ;;  %v2213_v22 = vor.u32 %v2718_v43, %v2210_v13 }
 0x111   :  { %v1243_v55 = vadd.f32 %v1242_v60, %v1144_v56  ;;  %1101 = vmatmul.bf16.gmra.mxu1 %v2225_v33  ;;  %2470 = vmatmul.msk.bf16.gmra.mxu0 %vm874_vm0, %v2137_v35  ;;  %v2727_v60 = vld [vmem:[%s4012_s0 + $0x234] sm:$0xf] }
 0x112   :  { %v2245_v14 = vor.u32 %v2727_v60, %v2242_v62  ;;  %v2230_v60 = vld [vmem:[%s4012_s0 + $0x224] sm:$0xf0] }
 0x113   :  { %1185 = vmatmul.bf16.gmra.mxu2 %v2169_v42  ;;  %1289 = vmatmul.bf16.gmra.mxu3 %v2193_v52 }
 0x116   :  { %v1146_v58 = vpop.f32.mrf.mxu2  ;;  %v1336_v24 = vpop.f32.mrf.mxu0 }
 0x117   :  { %v1147_v61 = vadd.f32 %v1146_v58, %v3395_v46  ;;  %v1064_v1 = vpop.f32.mrf.mxu1  ;;  %v3507_v7 = vadd.f32 %v1336_v24, %v1238_v2  ;;  %v1250_v32 = vpop.f32.mrf.mxu3  ;;  %v2156_v46 = vld [vmem:[%s4012_s0 + $0x178] sm:$0xf]  ;;  %v2188_v2 = vld [vmem:[%s4012_s0 + $0x1c0] sm:$0xf]  ;;  %v2720_v24 = vld [vmem:[%s4012_s0 + $0x1f8] sm:$0xf0] }
 0x118   :  { %v3505_v3 = vadd.f32 %v1064_v1, %v3434_v27  ;;  %v2706_v27 = vld [vmem:[%s4012_s0 + $0x188] sm:$0xf0] }
 0x119   :  { %v1246_v5 = vadd.f32 %v1245_v10, %v1147_v61  ;;  %v2715_v10 = vld [vmem:[%s4012_s0 + $0x1d0] sm:$0xf0]  ;;  %v2157_v51 = vor.u32 %v2706_v27, %v2156_v46 }
 0x11a   :  { %v2189_v11 = vor.u32 %v2715_v10, %v2188_v2 }
 0x11e   :  { %v1148_v23 = vpop.f32.mrf.mxu2  ;;  %v1339_v31 = vpop.f32.mrf.mxu0 }
 0x11f   :  { %v1149_v26 = vadd.f32 %v1148_v23, %v3402_v54  ;;  %v1067_v28 = vpop.f32.mrf.mxu1  ;;  %v3537_v35 = vadd.f32 %v1339_v31, %v1241_v17  ;;  %v1252_v56 = vpop.f32.mrf.mxu3  ;;  %v2262_v17 = vld [vmem:[%s4012_s0 + $0x26c] sm:$0xf0] }
 0x120   :  { %v3535_v33 = vadd.f32 %v1067_v28, %v3463_v53  ;;  %v2732_v53 = vld [vmem:[%s4012_s0 + $0x25c] sm:$0xf] }
 0x121   :  { %v1248_v39 = vadd.f32 %v1247_v48, %v1149_v26  ;;  %1106 = vmatmul.bf16.gmra.mxu1 %v2245_v14  ;;  %2471 = vmatmul.msk.bf16.gmra.mxu0 %vm874_vm0, %v2157_v51  ;;  %v2176_v48 = vld [vmem:[%s4012_s0 + $0x1a0] sm:$0xf]  ;;  %v2265_v46 = vor.u32 %v2732_v53, %v2262_v17  ;;  %v2728_v53 = vld [vmem:[%s4012_s0 + $0x23c] sm:$0xf]  ;;  %v2250_v17 = vld [vmem:[%s4012_s0 + $0x24c] sm:$0xf0] }
 0x123   :  { %1190 = vmatmul.bf16.gmra.mxu2 %v2189_v11  ;;  %1294 = vmatmul.bf16.gmra.mxu3 %v2213_v22 }
 0x126   :  { %v1151_v42 = vpop.f32.mrf.mxu2  ;;  %v1341_v54 = vpop.f32.mrf.mxu0 }
 0x127   :  { %v1152_v52 = vadd.f32 %v1151_v42, %v3430_v12  ;;  %v3541_v58 = vadd.f32 %v1341_v54, %v1243_v55  ;;  %v1255_v61 = vpop.f32.mrf.mxu3  ;;  %v2711_v12 = vld [vmem:[%s4012_s0 + $0x1b0] sm:$0xf0]  ;;  %v2208_v55 = vld [vmem:[%s4012_s0 + $0x1e8] sm:$0xf]  ;;  %v3570_v26 = vpop.f32.mrf.mxu1  ;;  %v2228_v54 = vld [vmem:[%s4012_s0 + $0x210] sm:$0xf] }
 0x128   :  { %v2177_v27 = vor.u32 %v2711_v12, %v2176_v48  ;;  %v2209_v43 = vor.u32 %v2720_v24, %v2208_v55 }
 0x129   :  { %v1251_v1 = vadd.f32 %v1250_v32, %v1152_v52  ;;  %v2723_v32 = vld [vmem:[%s4012_s0 + $0x214] sm:$0xf]  ;;  %v2196_v52 = vld [vmem:[%s4012_s0 + $0x1c8] sm:$0xf] }
 0x12a   :  { %v2233_v14 = vor.u32 %v2723_v32, %v2230_v60 }
 0x12e   :  { %v1153_v62 = vpop.f32.mrf.mxu2  ;;  %v1344_v10 = vpop.f32.mrf.mxu0 }
 0x12f   :  { %v1154_v2 = vadd.f32 %v1153_v62, %v3436_v29  ;;  %v3568_v13 = vadd.f32 %v1344_v10, %v1246_v5  ;;  %v1257_v23 = vpop.f32.mrf.mxu3  ;;  %v2737_v5 = vld [vmem:[%s4012_s0 + $0x284] sm:$0xf] }
 0x131   :  { %v1253_v51 = vadd.f32 %v1252_v56, %v1154_v2  ;;  %1111 = vmatmul.bf16.gmra.mxu1 %v2265_v46  ;;  %2472 = vmatmul.msk.bf16.gmra.mxu0 %vm874_vm0, %v2177_v27  ;;  %v2282_v56 = vld [vmem:[%s4012_s0 + $0x294] sm:$0xf0]  ;;  %v2253_v27 = vor.u32 %v2728_v53, %v2250_v17 }
 0x132   :  { %v2285_v12 = vor.u32 %v2737_v5, %v2282_v56  ;;  %v2302_v5 = vld [vmem:[%s4012_s0 + $0x2bc] sm:$0xf0]  ;;  %v2730_v56 = vld [vmem:[%s4012_s0 + $0x248] sm:$0xf0] }
 0x133   :  { %1195 = vmatmul.bf16.gmra.mxu2 %v2209_v43  ;;  %1299 = vmatmul.bf16.gmra.mxu3 %v2233_v14 }
 0x136   :  { %v1156_v28 = vpop.f32.mrf.mxu2  ;;  %v1346_v11 = vpop.f32.mrf.mxu0 }
 0x137   :  { %v1157_v31 = vadd.f32 %v1156_v28, %v3465_v0  ;;  %v3574_v22 = vadd.f32 %v1346_v11, %v1248_v39  ;;  %v1260_v29 = vpop.f32.mrf.mxu3  ;;  %v2716_v0 = vld [vmem:[%s4012_s0 + $0x1d8] sm:$0xf0]  ;;  %v3588_v39 = vpop.f32.mrf.mxu1 }
 0x138   :  { %v2197_v55 = vor.u32 %v2716_v0, %v2196_v52  ;;  %v2733_v52 = vld [vmem:[%s4012_s0 + $0x264] sm:$0xf]  ;;  %v2270_v0 = vld [vmem:[%s4012_s0 + $0x274] sm:$0xf0] }
 0x139   :  { %v1256_v42 = vadd.f32 %v1255_v61, %v1157_v31  ;;  %v2725_v61 = vld [vmem:[%s4012_s0 + $0x220] sm:$0xf0] }
 0x13a   :  { %v2229_v60 = vor.u32 %v2725_v61, %v2228_v54 }
 0x13e   :  { %v1158_v48 = vpop.f32.mrf.mxu2  ;;  %v1349_v32 = vpop.f32.mrf.mxu0 }
 0x13f   :  { %v1159_v24 = vadd.f32 %v1158_v48, %v3471_v9  ;;  %v3603_v62 = vadd.f32 %v1349_v32, %v1251_v1  ;;  %v1262_v46 = vpop.f32.mrf.mxu3  ;;  %v3606_v10 = vpop.f32.mrf.mxu1  ;;  %v2742_v1 = vld [vmem:[%s4012_s0 + $0x2ac] sm:$0xf] }
 0x140   :  { %v2305_v61 = vor.u32 %v2742_v1, %v2302_v5 }
 0x141   :  { %v1258_v2 = vadd.f32 %v1257_v23, %v1159_v24  ;;  %1116 = vmatmul.bf16.gmra.mxu1 %v2285_v12  ;;  %2473 = vmatmul.msk.bf16.gmra.mxu0 %vm874_vm0, %v2197_v55  ;;  %v2798_v23 = vld [vmem:[%s4015_s3 + $0x78] sm:$0xff] }
 0x142   :  { %1806 = vmatpush.bf16.msra.mxu2 %v2798_v23 }
 0x143   :  { %1200 = vmatmul.bf16.gmra.mxu2 %v2229_v60  ;;  %1304 = vmatmul.bf16.gmra.mxu3 %v2253_v27  ;;  %v2273_v60 = vor.u32 %v2733_v52, %v2270_v0 }
 0x146   :  { %v1161_v43 = vpop.f32.mrf.mxu2  ;;  %v1351_v28 = vpop.f32.mrf.mxu0 }
 0x147   :  { %v1162_v14 = vadd.f32 %v1161_v43, %v3498_v44  ;;  %v3609_v31 = vadd.f32 %v1351_v28, %v1253_v51  ;;  %v1265_v9 = vpop.f32.mrf.mxu3  ;;  %v2216_v44 = vld [vmem:[%s4012_s0 + $0x1f0] sm:$0xf]  ;;  %v2721_v51 = vld [vmem:[%s4012_s0 + $0x200] sm:$0xf0]  ;;  %v3639_v55 = vpop.f32.mrf.mxu1  ;;  %v2790_v43 = vld [vmem:[%s4015_s3 + $0x38] sm:$0xff] }
 0x148   :  { %v2217_v53 = vor.u32 %v2721_v51, %v2216_v44  ;;  %1793 = vmatpush.bf16.msra.mxu1 %v2790_v43  ;;  %v2806_v44 = vld [vmem:[%s4015_s3 + $0xb8] sm:$0xff]  ;;  %v1073_v43 = vadd.f32 %v3588_v39, %v3249_v15  ;;  %v2288_v15 = vld [vmem:[%s4012_s0 + $0x288] sm:$0xf] }
 0x149   :  { %v1261_v11 = vadd.f32 %v1260_v29, %v1162_v14  ;;  %v2248_v29 = vld [vmem:[%s4012_s0 + $0x238] sm:$0xf]  ;;  %1819 = vmatpush.bf16.msra.mxu3 %v2806_v44  ;;  %v2740_v39 = vld [vmem:[%s4012_s0 + $0x298] sm:$0xf0] }
 0x14a   :  { %v2249_v12 = vor.u32 %v2730_v56, %v2248_v29  ;;  %v2236_v51 = vld [vmem:[%s4012_s0 + $0x218] sm:$0xf]  ;;  %v2738_v29 = vld [vmem:[%s4012_s0 + $0x28c] sm:$0xf]  ;;  %v2290_v56 = vld [vmem:[%s4012_s0 + $0x29c] sm:$0xf0] }
 0x14e   :  { %v1163_v54 = vpop.f32.mrf.mxu2  ;;  %v1354_v48 = vpop.f32.mrf.mxu0 }
 0x14f   :  { %v1164_v17 = vadd.f32 %v1163_v54, %v3505_v3  ;;  %v3641_v24 = vadd.f32 %v1354_v48, %v1256_v42  ;;  %v3643_v32 = vpop.f32.mrf.mxu3  ;;  %v3652_v5 = vpop.f32.mrf.mxu1  ;;  %v2293_v48 = vor.u32 %v2738_v29, %v2290_v56 }
 0x151   :  { %v1263_v27 = vadd.f32 %v1262_v46, %v1164_v17  ;;  %1121 = vmatmul.bf16.gmra.mxu1 %v2305_v61  ;;  %2474 = vmatmul.msk.bf16.gmra.mxu0 %vm874_vm0, %v2217_v53 }
 0x153   :  { %1205 = vmatmul.bf16.gmra.mxu2 %v2249_v12  ;;  %1309 = vmatmul.bf16.gmra.mxu3 %v2273_v60  ;;  %v2797_v12 = vld [vmem:[%s4015_s3 + $0x70] sm:$0xff] }
 0x154   :  { %1807 = vmatpush.bf16.msra.mxu2 %v2797_v12  ;;  %v2805_v12 = vld [vmem:[%s4015_s3 + $0xb0] sm:$0xff] }
 0x155   :  { %1820 = vmatpush.bf16.msra.mxu3 %v2805_v12 }
 0x156   :  { %v1166_v3 = vpop.f32.mrf.mxu2  ;;  %v1356_v28 = vpop.f32.mrf.mxu0 }
 0x157   :  { %v1167_v14 = vadd.f32 %v1166_v3, %v3535_v33  ;;  %v3650_v42 = vadd.f32 %v1356_v28, %v1258_v2  ;;  %v1270_v1 = vpop.f32.mrf.mxu3  ;;  %v2726_v33 = vld [vmem:[%s4012_s0 + $0x228] sm:$0xf0]  ;;  %v2268_v2 = vld [vmem:[%s4012_s0 + $0x260] sm:$0xf]  ;;  %v3684_v60 = vpop.f32.mrf.mxu1 }
 0x158   :  { %v2237_v0 = vor.u32 %v2726_v33, %v2236_v51 }
 0x159   :  { %v1266_v23 = vadd.f32 %v1265_v9, %v1167_v14  ;;  %v1424_v46 = vmax.f32 %v3500_v45, %v3650_v42  ;;  %v2735_v9 = vld [vmem:[%s4012_s0 + $0x270] sm:$0xf0] }
 0x15a   :  { %v2269_v61 = vor.u32 %v2735_v9, %v2268_v2  ;;  %v2256_v2 = vld [vmem:[%s4012_s0 + $0x240] sm:$0xf]  ;;  %v2731_v9 = vld [vmem:[%s4012_s0 + $0x250] sm:$0xf0] }
 0x15e   :  { %v1168_v52 = vpop.f32.mrf.mxu2  ;;  %v1359_v54 = vpop.f32.mrf.mxu0 }
 0x15f   :  { %v3677_v53 = vadd.f32 %v1359_v54, %v1261_v11  ;;  %v3679_v17 = vpop.f32.mrf.mxu3  ;;  %v1084_v29 = vpop.f32.mrf.mxu1 }
 0x161   :  { %2475 = vmatmul.msk.bf16.gmra.mxu0 %vm874_vm0, %v2237_v0  ;;  %v2257_v0 = vor.u32 %v2731_v9, %v2256_v2  ;;  %v2789_v2 = vld [vmem:[%s4015_s3 + $0x30] sm:$0xff] }
 0x162   :  { %1794 = vmatpush.bf16.msra.mxu1 %v2789_v2 }
 0x163   :  { %1210 = vmatmul.bf16.gmra.mxu2 %v2269_v61  ;;  %1314 = vmatmul.bf16.gmra.mxu3 %v2293_v48  ;;  %v2289_v61 = vor.u32 %v2740_v39, %v2288_v15  ;;  %v1070_v48 = vadd.f32 %v3570_v26, %v3469_v6  ;;  %v1078_v6 = vadd.f32 %v3639_v55, %v3284_v34  ;;  %v2276_v34 = vld [vmem:[%s4012_s0 + $0x268] sm:$0xf]  ;;  %v2736_v55 = vld [vmem:[%s4012_s0 + $0x278] sm:$0xf0] }
 0x166   :  { %v1171_v3 = vpop.f32.mrf.mxu2  ;;  %v1361_v28 = vpop.f32.mrf.mxu0 }
 0x167   :  { %v1172_v14 = vadd.f32 %v1171_v3, %v1073_v43  ;;  %v3688_v11 = vadd.f32 %v1361_v28, %v1263_v27  ;;  %v1275_v44 = vpop.f32.mrf.mxu3  ;;  %v2743_v27 = vld [vmem:[%s4012_s0 + $0x2b4] sm:$0xf]  ;;  %v1169_v28 = vadd.f32 %v1168_v52, %v1070_v48  ;;  %v1087_v15 = vpop.f32.mrf.mxu1  ;;  %v2277_v48 = vor.u32 %v2736_v55, %v2276_v34 }
 0x169   :  { %v1271_v51 = vadd.f32 %v1270_v1, %v1172_v14  ;;  %v2310_v1 = vld [vmem:[%s4012_s0 + $0x2c4] sm:$0xf0]  ;;  %v1268_v26 = vadd.f32 %v3643_v32, %v1169_v28  ;;  %v2308_v32 = vld [vmem:[%s4012_s0 + $0x2b0] sm:$0xf] }
 0x16a   :  { %v2313_v14 = vor.u32 %v2743_v27, %v2310_v1 }
 0x16e   :  { %v1173_v56 = vpop.f32.mrf.mxu2  ;;  %v1364_v54 = vpop.f32.mrf.mxu0 }
 0x16f   :  { %v3712_v43 = vadd.f32 %v1364_v54, %v1266_v23  ;;  %v1277_v3 = vpop.f32.mrf.mxu3  ;;  %v1080_v54 = vadd.f32 %v3652_v5, %v3291_v40  ;;  %v1083_v40 = vadd.f32 %v3684_v60, %v3252_v18  ;;  %v2741_v18 = vld [vmem:[%s4012_s0 + $0x2a0] sm:$0xf0] }
 0x171   :  { %v1427_v33 = vmax.f32 %v3541_v58, %v3712_v43  ;;  %2476 = vmatmul.msk.bf16.gmra.mxu0 %vm874_vm0, %v2257_v0 }
 0x173   :  { %1215 = vmatmul.bf16.gmra.mxu2 %v2289_v61  ;;  %1319 = vmatmul.bf16.gmra.mxu3 %v2313_v14 }
 0x176   :  { %v1176_v23 = vpop.f32.mrf.mxu2  ;;  %v1366_v9 = vpop.f32.mrf.mxu0 }
 0x177   :  { %v1177_v52 = vadd.f32 %v1176_v23, %v1078_v6  ;;  %v3726_v39 = vadd.f32 %v1366_v9, %v1268_v26  ;;  %v1280_v27 = vpop.f32.mrf.mxu3  ;;  %v1075_v6 = vadd.f32 %v3606_v10, %v3254_v20  ;;  %v1089_v9 = vpop.f32.mrf.mxu1 }
 0x179   :  { %v1276_v1 = vadd.f32 %v1275_v44, %v1177_v52  ;;  %v2745_v44 = vld [vmem:[%s4012_s0 + $0x2c0] sm:$0xf0]  ;;  %v1174_v0 = vadd.f32 %v1173_v56, %v1075_v6 }
 0x17a   :  { %v2309_v2 = vor.u32 %v2745_v44, %v2308_v32  ;;  %v2296_v32 = vld [vmem:[%s4012_s0 + $0x290] sm:$0xf] }
 0x17b   :  { %v1273_v5 = vadd.f32 %v3679_v17, %v1174_v0  ;;  %v1085_v17 = vadd.f32 %v1084_v29, %v3282_v30  ;;  %v2297_v44 = vor.u32 %v2741_v18, %v2296_v32  ;;  %v1088_v30 = vadd.f32 %v1087_v15, %v3289_v38  ;;  %v2316_v32 = vld [vmem:[%s4012_s0 + $0x2b8] sm:$0xf]  ;;  %v2746_v38 = vld [vmem:[%s4012_s0 + $0x2c8] sm:$0xf0]  ;;  %s1949_s0 = sshll.u32 %s4019_s7, 4  ;;  %s1950_s0 = int_to_ptr.hbm [resolvable:$true] %s1949_s0 }
 0x17c   :  { %v1090_v15 = vadd.f32 %v1089_v9, %v3319_v50 }
 0x17e   :  { %v1178_v61 = vpop.f32.mrf.mxu2  ;;  %v1369_v28 = vpop.f32.mrf.mxu0 }
 0x17f   :  { %v1179_v14 = vadd.f32 %v1178_v61, %v1080_v54  ;;  %v3749_v26 = vadd.f32 %v1369_v28, %v1271_v51  ;;  %v1282_v23 = vpop.f32.mrf.mxu3  ;;  %v1092_v60 = vpop.f32.mrf.mxu1  ;;  %v2796_v28 = vld [vmem:[%s4015_s3 + $0x68] sm:$0xff] }
 0x180   :  { %1808 = vmatpush.bf16.msra.mxu2 %v2796_v28  ;;  %v2804_v28 = vld [vmem:[%s4015_s3 + $0xa8] sm:$0xff] }
 0x181   :  { %v1278_v52 = vadd.f32 %v1277_v3, %v1179_v14  ;;  %v1429_v12 = vmax.f32 %v3574_v22, %v3749_v26  ;;  %2477 = vmatmul.msk.bf16.gmra.mxu0 %vm874_vm0, %v2277_v48  ;;  %1821 = vmatpush.bf16.msra.mxu3 %v2804_v28 }
 0x183   :  { %1220 = vmatmul.bf16.gmra.mxu2 %v2309_v2 }
 0x186   :  { %v1181_v34 = vpop.f32.mrf.mxu2  ;;  %v1371_v20 = vpop.f32.mrf.mxu0 }
 0x187   :  { %v1182_v55 = vadd.f32 %v1181_v34, %v1083_v40  ;;  %v3757_v10 = vadd.f32 %v1371_v20, %v1273_v5  ;;  %v1285_v51 = vpop.f32.mrf.mxu3  ;;  %v1094_v29 = vpop.f32.mrf.mxu1 }
 0x189   :  { %v1281_v3 = vadd.f32 %v1280_v27, %v1182_v55  ;;  %v1430_v56 = vmax.f32 %v3603_v62, %v3757_v10  ;;  %v2788_v55 = vld [vmem:[%s4015_s3 + $0x28] sm:$0xff] }
 0x18a   :  { %1795 = vmatpush.bf16.msra.mxu1 %v2788_v55 }
 0x18e   :  { %v1183_v0 = vpop.f32.mrf.mxu2  ;;  %v1374_v61 = vpop.f32.mrf.mxu0 }
 0x18f   :  { %v1184_v54 = vadd.f32 %v1183_v0, %v1085_v17  ;;  %v3768_v48 = vadd.f32 %v1374_v61, %v1276_v1  ;;  %v1287_v27 = vpop.f32.mrf.mxu3  ;;  %v1097_v0 = vpop.f32.mrf.mxu1 }
 0x191   :  { %v1283_v14 = vadd.f32 %v1282_v23, %v1184_v54  ;;  %v1431_v2 = vmax.f32 %v3609_v31, %v3768_v48  ;;  %2478 = vmatmul.msk.bf16.gmra.mxu0 %vm874_vm0, %v2297_v44  ;;  %v2814_v31 = vld [vmem:[%s4015_s3 + $0xf8] sm:$0xff] }
 0x192   :  { %v2818_v48 = vld [vmem:[%s4015_s3 + $0x118] sm:$0xff] }
 0x196   :  { %v1186_v6 = vpop.f32.mrf.mxu2  ;;  %v1376_v5 = vpop.f32.mrf.mxu0 }
 0x197   :  { %v1187_v40 = vadd.f32 %v1186_v6, %v1088_v30  ;;  %v3777_v1 = vadd.f32 %v1376_v5, %v1278_v52  ;;  %v1290_v34 = vpop.f32.mrf.mxu3  ;;  %v1093_v30 = vadd.f32 %v1092_v60, %v3326_v59  ;;  %v1098_v59 = vadd.f32 %v1097_v0, %v3363_v19 }
 0x199   :  { %v1286_v23 = vadd.f32 %v1285_v51, %v1187_v40  ;;  %v1432_v20 = vmax.f32 %v3641_v24, %v3777_v1  ;;  %v2317_v51 = vor.u32 %v2746_v38, %v2316_v32  ;;  %v1095_v32 = vadd.f32 %v1094_v29, %v3356_v8  ;;  %v2795_v8 = vld [vmem:[%s4015_s3 + $0x60] sm:$0xff]  ;;  %v2817_v24 = vld [vmem:[%s4015_s3 + $0x110] sm:$0xff]  ;;  %v2812_v1 = vld [vmem:[%s4015_s3 + $0xe8] sm:$0xff] }
 0x19a   :  { %v2787_v29 = vld [vmem:[%s4015_s3 + $0x20] sm:$0xff]  ;;  %1809 = vmatpush.bf16.msra.mxu2 %v2795_v8 }
 0x19b   :  { %1796 = vmatpush.bf16.msra.mxu1 %v2787_v29 }
 0x19e   :  { %v1188_v52 = vpop.f32.mrf.mxu2  ;;  %v1379_v17 = vpop.f32.mrf.mxu0 }
 0x19f   :  { %v1189_v18 = vadd.f32 %v1188_v52, %v1090_v15  ;;  %v3791_v44 = vadd.f32 %v1379_v17, %v1281_v3  ;;  %v1292_v54 = vpop.f32.mrf.mxu3  ;;  %v1099_v3 = vpop.f32.mrf.mxu1 }
 0x1a1   :  { %v1288_v61 = vadd.f32 %v1287_v27, %v1189_v18  ;;  %2479 = vmatmul.msk.bf16.gmra.mxu0 %vm874_vm0, %v2317_v51 }
 0x1a6   :  { %v1191_v6 = vpop.f32.mrf.mxu2  ;;  %v1381_v9 = vpop.f32.mrf.mxu0 }
 0x1a7   :  { %v1192_v50 = vadd.f32 %v1191_v6, %v1093_v30  ;;  %v3798_v40 = vadd.f32 %v1381_v9, %v1283_v14  ;;  %v1295_v5 = vpop.f32.mrf.mxu3  ;;  %v1102_v17 = vpop.f32.mrf.mxu1 }
 0x1a9   :  { %v1291_v55 = vadd.f32 %v1290_v34, %v1192_v50 }
 0x1ae   :  { %v1193_v27 = vpop.f32.mrf.mxu2  ;;  %v1384_v15 = vpop.f32.mrf.mxu0 }
 0x1af   :  { %v1194_v38 = vadd.f32 %v1193_v27, %v1095_v32  ;;  %v3801_v52 = vadd.f32 %v1384_v15, %v1286_v23  ;;  %v1297_v18 = vpop.f32.mrf.mxu3  ;;  %v1100_v23 = vadd.f32 %v1099_v3, %v3393_v37  ;;  %v1104_v19 = vpop.f32.mrf.mxu1  ;;  %v1103_v27 = vadd.f32 %v1102_v17, %v3400_v49 }
 0x1b1   :  { %v1293_v51 = vadd.f32 %v1292_v54, %v1194_v38 }
 0x1b6   :  { %v1196_v60 = vpop.f32.mrf.mxu2  ;;  %v1386_v30 = vpop.f32.mrf.mxu0 }
 0x1b7   :  { %v1197_v28 = vadd.f32 %v1196_v60, %v1098_v59  ;;  %v3804_v14 = vadd.f32 %v1386_v30, %v1288_v61  ;;  %v1300_v6 = vpop.f32.mrf.mxu3  ;;  %v1107_v60 = vpop.f32.mrf.mxu1 }
 0x1b9   :  { %v1296_v34 = vadd.f32 %v1295_v5, %v1197_v28  ;;  %v2803_v5 = vld [vmem:[%s4015_s3 + $0xa0] sm:$0xff] }
 0x1ba   :  { %1822 = vmatpush.bf16.msra.mxu3 %v2803_v5 }
 0x1be   :  { %v1198_v0 = vpop.f32.mrf.mxu2  ;;  %v1389_v50 = vpop.f32.mrf.mxu0 }
 0x1bf   :  { %v1199_v54 = vadd.f32 %v1198_v0, %v1100_v23  ;;  %v3813_v61 = vadd.f32 %v1389_v50, %v1291_v55  ;;  %v1302_v32 = vpop.f32.mrf.mxu3  ;;  %v1105_v55 = vadd.f32 %v1104_v19, %v3428_v4  ;;  %v1109_v0 = vpop.f32.mrf.mxu1  ;;  %v2794_v4 = vld [vmem:[%s4015_s3 + $0x58] sm:$0xff] }
 0x1c0   :  { %1810 = vmatpush.bf16.msra.mxu2 %v2794_v4 }
 0x1c1   :  { %v1298_v9 = vadd.f32 %v1297_v18, %v1199_v54 }
 0x1c6   :  { %v1201_v38 = vpop.f32.mrf.mxu2  ;;  %v1391_v59 = vpop.f32.mrf.mxu0 }
 0x1c7   :  { %v1202_v15 = vadd.f32 %v1201_v38, %v1103_v27  ;;  %v3819_v37 = vadd.f32 %v1391_v59, %v1293_v51  ;;  %v1305_v28 = vpop.f32.mrf.mxu3  ;;  %v1112_v5 = vpop.f32.mrf.mxu1  ;;  %v1110_v51 = vadd.f32 %v1109_v0, %v3286_v36 }
 0x1c9   :  { %v1301_v3 = vadd.f32 %v1300_v6, %v1202_v15 }
 0x1ce   :  { %v1203_v30 = vpop.f32.mrf.mxu2  ;;  %v1394_v8 = vpop.f32.mrf.mxu0 }
 0x1cf   :  { %v1204_v18 = vadd.f32 %v1203_v30, %v1105_v55  ;;  %v3822_v29 = vadd.f32 %v1394_v8, %v1296_v34  ;;  %v1307_v50 = vpop.f32.mrf.mxu3  ;;  %v1114_v15 = vpop.f32.mrf.mxu1  ;;  %v1108_v55 = vadd.f32 %v1107_v60, %v3256_v21 }
 0x1d1   :  { %v1303_v23 = vadd.f32 %v1302_v32, %v1204_v18 }
 0x1d6   :  { %v1206_v54 = vpop.f32.mrf.mxu2  ;;  %v1396_v49 = vpop.f32.mrf.mxu0 }
 0x1d7   :  { %v3824_v17 = vadd.f32 %v1396_v49, %v1298_v9  ;;  %v1310_v34 = vpop.f32.mrf.mxu3  ;;  %v2786_v9 = vld [vmem:[%s4015_s3 + $0x18] sm:$0xff]  ;;  %v1207_v18 = vadd.f32 %v1206_v54, %v1108_v55  ;;  %v1115_v49 = vadd.f32 %v1114_v15, %v3323_v57  ;;  %v1117_v54 = vpop.f32.mrf.mxu1  ;;  %v4020_v57 = vmax.f32 %v3507_v7, %v3677_v53 }
 0x1d8   :  { %1797 = vmatpush.bf16.msra.mxu1 %v2786_v9  ;;  %v1113_v9 = vadd.f32 %v1112_v5, %v3293_v41 }
 0x1de   :  { %v1208_v27 = vpop.f32.mrf.mxu2  ;;  %v1399_v19 = vpop.f32.mrf.mxu0 }
 0x1df   :  { %v1209_v6 = vadd.f32 %v1208_v27, %v1110_v51  ;;  %v3830_v38 = vadd.f32 %v1399_v19, %v1301_v3  ;;  %v3840_v3 = vld [vmem:[%s4014_s2] ss:$0 sm:$0xff]  ;;  %v1312_v0 = vpop.f32.mrf.mxu3  ;;  %v1306_v51 = vadd.f32 %v1305_v28, %v1207_v18  ;;  %v4021_v18 = vmax.f32 %v3537_v35, %v3688_v11  ;;  %v2785_v35 = vld [vmem:[%s4015_s3 + $0x10] sm:$0xff] }
 0x1e0   :  { %1798 = vmatpush.bf16.msra.mxu1 %v2785_v35 }
 0x1e1   :  { %v1308_v32 = vadd.f32 %v1307_v50, %v1209_v6 }
 0x1e6   :  { %v1211_v59 = vpop.f32.mrf.mxu2  ;;  %v1401_v36 = vpop.f32.mrf.mxu0 }
 0x1e7   :  { %v1402_v30 = vadd.f32 %v1401_v36, %v1303_v23  ;;  %v1119_v36 = vpop.f32.mrf.mxu1  ;;  %v1212_v55 = vadd.f32 %v1211_v59, %v1113_v9  ;;  %v1118_v59 = vadd.f32 %v1117_v54, %v3330_v63 }
 0x1e9   :  { %v1433_v8 = vmax.f32 %v3791_v44, %v1402_v30  ;;  %v2802_v44 = vld [vmem:[%s4015_s3 + $0x98] sm:$0xff] }
 0x1ea   :  { %1823 = vmatpush.bf16.msra.mxu3 %v2802_v44 }
 0x1eb   :  { %v1442_v50 = vmax.f32 %v1424_v46, %v1433_v8  ;;  %v1315_v46 = vpop.f32.mrf.mxu3 }
 0x1ed   :  { %v3847_v27 = vadd.f32 %v3840_v3, %v1442_v50 }
 0x1ee   :  { %v1213_v21 = vpop.f32.mrf.mxu2  ;;  %v1404_v23 = vpop.f32.mrf.mxu0 }
 0x1ef   :  { %v1214_v60 = vadd.f32 %v1213_v21, %v1115_v49  ;;  %v1405_v4 = vadd.f32 %v1404_v23, %v1306_v51 }
 0x1f1   :  { %v1313_v6 = vadd.f32 %v1312_v0, %v1214_v60  ;;  %v1434_v45 = vmax.f32 %v3798_v40, %v1405_v4  ;;  %v1120_v40 = vadd.f32 %v1119_v36, %v3360_v16  ;;  %v1311_v0 = vadd.f32 %v1310_v34, %v1212_v55  ;;  %v2793_v16 = vld [vmem:[%s4015_s3 + $0x50] sm:$0xff]  ;;  %v2799_v36 = vld [vmem:[%s4015_s3 + $0x80] sm:$0xff] }
 0x1f2   :  { %1811 = vmatpush.bf16.msra.mxu2 %v2793_v16 }
 0x1f3   :  { %v1443_v42 = vmax.f32 %v4020_v57, %v1434_v45  ;;  %v1317_v50 = vpop.f32.mrf.mxu3  ;;  %v1122_v57 = vpop.f32.mrf.mxu1 }
 0x1f4   :  { %v1123_v26 = vadd.f32 %v1122_v57, %v3367_v25 }
 0x1f5   :  { %v1456_v60 = vadd.f32 %v3840_v3, %v1443_v42 }
 0x1f6   :  { %v1216_v28 = vpop.f32.mrf.mxu2  ;;  %v1406_v19 = vpop.f32.mrf.mxu0 }
 0x1f7   :  { %v1407_v15 = vadd.f32 %v1406_v19, %v1308_v32  ;;  %v1217_v44 = vadd.f32 %v1216_v28, %v1118_v59  ;;  %v1465_v54 = vmax.f32 %v1456_v60, 0.0  ;;  %v2783_v19 = vld [vmem:[%s4015_s3] sm:$0xff]  ;;  %v2808_v59 = vld [vmem:[%s4015_s3 + $0xc8] sm:$0xff] }
 0x1f9   :  { %v1435_v30 = vmax.f32 %v3801_v52, %v1407_v15  ;;  %v1316_v23 = vadd.f32 %v1315_v46, %v1217_v44  ;;  %v2791_v46 = vld [vmem:[%s4015_s3 + $0x40] sm:$0xff] }
 0x1fa   :  { %v2807_v44 = vld [vmem:[%s4015_s3 + $0xc0] sm:$0xff] }
 0x1fb   :  { %v1444_v8 = vmax.f32 %v4021_v18, %v1435_v30  ;;  %v1320_v55 = vpop.f32.mrf.mxu3  ;;  %v1124_v25 = vpop.f32.mrf.mxu1 }
 0x1fd   :  { %v3863_v7 = vadd.f32 %v3840_v3, %v1444_v8 }
 0x1fe   :  { %v1218_v53 = vpop.f32.mrf.mxu2  ;;  %v1409_v51 = vpop.f32.mrf.mxu0 }
 0x1ff   :  { %v1219_v49 = vadd.f32 %v1218_v53, %v1120_v40  ;;  %v1410_v41 = vadd.f32 %v1409_v51, %v1311_v0 }
 0x201   :  { %v1318_v5 = vadd.f32 %v1317_v50, %v1219_v49  ;;  %v1436_v32 = vmax.f32 %v3804_v14, %v1410_v41  ;;  %v1125_v49 = vadd.f32 %v1124_v25, %v3397_v47 }
 0x203   :  { %v1445_v52 = vmax.f32 %v1427_v33, %v1436_v32  ;;  %v4022_v33 = vmax.f32 %v3568_v13, %v3726_v39  ;;  %v2792_v13 = vld [vmem:[%s4015_s3 + $0x48] sm:$0xff] }
 0x204   :  { %v2784_v39 = vld [vmem:[%s4015_s3 + $0x8] sm:$0xff]  ;;  %1812 = vmatpush.bf16.msra.mxu2 %v2792_v13 }
 0x205   :  { %v1458_v11 = vadd.f32 %v3840_v3, %v1445_v52  ;;  %1799 = vmatpush.bf16.msra.mxu1 %v2784_v39 }
 0x206   :  { %v1411_v34 = vpop.f32.mrf.mxu0  ;;  %v1221_v28 = vpop.f32.mrf.mxu2 }
 0x207   :  { %v1412_v14 = vadd.f32 %v1411_v34, %v1313_v6  ;;  %v1467_v21 = vmax.f32 %v1458_v11, 0.0  ;;  %v1222_v30 = vadd.f32 %v1221_v28, %v1123_v26  ;;  %v2810_v11 = vld [vmem:[%s4015_s3 + $0xd8] sm:$0xff]  ;;  %v2809_v34 = vld [vmem:[%s4015_s3 + $0xd0] sm:$0xff]  ;;  %v2823_v28 = vld [vmem:[%s4017_s5 + $0x20] sm:$0xff] }
 0x208   :  { %1813 = vmatpush.bf16.msra.mxu2 %v2791_v46  ;;  %v2824_v46 = vld [vmem:[%s4017_s5 + $0x28] sm:$0xff]  ;;  %v2819_v26 = vld [vmem:[%s4017_s5] sm:$0xff] }
 0x209   :  { %v1437_v58 = vmax.f32 %v3813_v61, %v1412_v14  ;;  %1478 = vrot.lane.b32.xlu0 %v1467_v21, %s2882_s16  ;;  %v2801_v61 = vld [vmem:[%s4015_s3 + $0x90] sm:$0xff]  ;;  %1800 = vmatpush.bf16.msra.mxu1 %v2783_v19  ;;  %v1321_v40 = vadd.f32 %v1320_v55, %v1222_v30  ;;  %v1466_v14 = vmax.f32 %v3863_v7, 0.0  ;;  %v2822_v19 = vld [vmem:[%s4017_s5 + $0x18] sm:$0xff]  ;;  %v2854_v30 = vld [vmem:[%s4016_s4] ss:$0 sm:$0xff]  ;;  %s1947_s4 = sshll.u32 %s2883_s21, 4  ;;  %s1948_s4 = int_to_ptr.vmem [resolvable:$true] %s1947_s4 }
 0x20a   :  { %1824 = vmatpush.bf16.msra.mxu3 %v2801_v61 }
 0x20b   :  { %v1446_v43 = vmax.f32 %v4022_v33, %v1437_v58 }
 0x20c   :  { %1849 = vmatpush.bf16.msrb.mxu2 %v2818_v48 }
 0x20d   :  { %v3884_v4 = vadd.f32 %v3840_v3, %v1446_v43  ;;  %1832 = vmatpush.bf16.msrb.mxu1 %v2814_v31  ;;  %v1464_v43 = vmax.f32 %v3847_v27, 0.0 }
 0x20e   :  { %v1414_v45 = vpop.f32.mrf.mxu0  ;;  %v1223_v53 = vpop.f32.mrf.mxu2 }
 0x20f   :  { %v1415_v63 = vadd.f32 %v1414_v45, %v1316_v23  ;;  %v1224_v41 = vadd.f32 %v1223_v53, %v1125_v49  ;;  %v1468_v7 = vmax.f32 %v3884_v4, 0.0  ;;  %v2825_v4 = vld [vmem:[%s4017_s5 + $0x30] sm:$0xff] }
 0x210   :  { %1850 = vmatpush.bf16.msrb.mxu2 %v2817_v24 }
 0x211   :  { %v1438_v6 = vmax.f32 %v3819_v37, %v1415_v63  ;;  %1474 = vrot.lane.b32.xlu0 %v1465_v54, %s2882_s16  ;;  %v2800_v37 = vld [vmem:[%s4015_s3 + $0x88] sm:$0xff] }
 0x212   :  { %1825 = vmatpush.bf16.msra.mxu3 %v2800_v37  ;;  %v2826_v37 = vld [vmem:[%s4017_s5 + $0x38] sm:$0xff] }
 0x213   :  { %v1447_v42 = vmax.f32 %v1429_v12, %v1438_v6 }
 0x215   :  { %v1460_v9 = vadd.f32 %v3840_v3, %v1447_v42 }
 0x216   :  { %v1416_v22 = vpop.f32.mrf.mxu0  ;;  %1826 = vmatpush.bf16.msra.mxu3 %v2799_v36 }
 0x217   :  { %v1417_v12 = vadd.f32 %v1416_v22, %v1318_v5  ;;  %v1469_v15 = vmax.f32 %v1460_v9, 0.0  ;;  %v1322_v5 = vpop.f32.mrf.mxu3  ;;  %v2821_v9 = vld [vmem:[%s4017_s5 + $0x10] sm:$0xff]  ;;  %v2820_v22 = vld [vmem:[%s4017_s5 + $0x8] sm:$0xff] }
 0x218   :  { %v1323_v10 = vadd.f32 %v1322_v5, %v1224_v41 }
 0x219   :  { %v1439_v18 = vmax.f32 %v3822_v29, %v1417_v12  ;;  %1482 = vrot.lane.b32.xlu1 %v1469_v15, %s2882_s16 }
 0x21a   :  { %1928 = vmatpush.bf16.msrb.mxu3 %v2826_v37 }
 0x21b   :  { %v1448_v8 = vmax.f32 %v1430_v56, %v1439_v18 }
 0x21d   :  { %v3920_v0 = vadd.f32 %v3840_v3, %v1448_v8 }
 0x21e   :  { %v1419_v50 = vpop.f32.mrf.mxu0  ;;  %1929 = vmatpush.bf16.msrb.mxu3 %v2825_v4 }
 0x21f   :  { %v1420_v51 = vadd.f32 %v1419_v50, %v1321_v40  ;;  %v1470_v39 = vmax.f32 %v3920_v0, 0.0 }
 0x221   :  { %v1440_v29 = vmax.f32 %v3824_v17, %v1420_v51 }
 0x222   :  { %1930 = vmatpush.bf16.msrb.mxu3 %v2824_v46 }
 0x223   :  { %v1449_v62 = vmax.f32 %v1431_v2, %v1440_v29  ;;  %v2813_v2 = vld [vmem:[%s4015_s3 + $0xf0] sm:$0xff] }
 0x224   :  { %1833 = vmatpush.bf16.msrb.mxu1 %v2813_v2 }
 0x225   :  { %v1462_v56 = vadd.f32 %v3840_v3, %v1449_v62 }
 0x226   :  { %v1421_v32 = vpop.f32.mrf.mxu0  ;;  %1931 = vmatpush.bf16.msrb.mxu3 %v2823_v28 }
 0x227   :  { %v1422_v52 = vadd.f32 %v1421_v32, %v1323_v10  ;;  %v1471_v16 = vmax.f32 %v1462_v56, 0.0  ;;  %v2855_v10 = vld [vmem:[%s4018_s6] ss:$0 sm:$0xff] }
 0x228   :  { %1834 = vmatpush.bf16.msrb.mxu1 %v2812_v1 }
 0x229   :  { %v1441_v35 = vmax.f32 %v3830_v38, %v1422_v52  ;;  %1486 = vrot.lane.b32.xlu1 %v1471_v16, %s2882_s16  ;;  %v2811_v38 = vld [vmem:[%s4015_s3 + $0xe0] sm:$0xff] }
 0x22a   :  { %1932 = vmatpush.bf16.msrb.mxu3 %v2822_v19 }
 0x22b   :  { %v1450_v47 = vmax.f32 %v1432_v20, %v1441_v35  ;;  %v2816_v20 = vld [vmem:[%s4015_s3 + $0x108] sm:$0xff] }
 0x22c   :  { %1851 = vmatpush.bf16.msrb.mxu2 %v2816_v20  ;;  %1835 = vmatpush.bf16.msrb.mxu1 %v2811_v38 }
 0x22d   :  { %v1463_v17 = vadd.f32 %v3840_v3, %v1450_v47  ;;  %v2815_v3 = vld [vmem:[%s4015_s3 + $0x100] sm:$0xff] }
 0x22e   :  { %1933 = vmatpush.bf16.msrb.mxu3 %v2821_v9 }
 0x22f   :  { %v1472_v63 = vmax.f32 %v1463_v17, 0.0 }
 0x230   :  { %1852 = vmatpush.bf16.msrb.mxu2 %v2815_v3  ;;  %1836 = vmatpush.bf16.msrb.mxu1 %v2810_v11 }
 0x231   :  { %v1497_v61 = vpack.c.bf16 %v1472_v63, %v1472_v63 }
 0x232   :  { %1934 = vmatpush.bf16.msrb.mxu3 %v2820_v22 }
 0x234   :  { %1837 = vmatpush.bf16.msrb.mxu1 %v2809_v34 }
 0x236   :  { %1935 = vmatpush.bf16.msrb.mxu3 %v2819_v26 }
 0x238   :  { %1838 = vmatpush.bf16.msrb.mxu1 %v2808_v59 }
 0x23c   :  { %1839 = vmatpush.bf16.msrb.mxu1 %v2807_v44 }
 0x27b   :  { %v1479_v21 = vpop.permute.xlu0 %1478 }
 0x27c   :  { %v1490_v58 = vsel %vm874_vm0, %v1466_v14, %v1479_v21 }
 0x27d   :  { %v1494_v33 = vpack.c.bf16 %v1490_v58, %v1490_v58 }
 0x27f   :  { %1814 = vmatmul.bf16.vlgmr.msra.gmra.mxu2 %v1494_v33 }
 0x283   :  { %v1475_v60 = vpop.permute.xlu0 %1474 }
 0x284   :  { %v1489_v23 = vsel %vm874_vm0, %v1464_v43, %v1475_v60 }
 0x285   :  { %v1493_v45 = vpack.c.bf16 %v1489_v23, %v1489_v23 }
 0x287   :  { %1801 = vmatmul.bf16.vlgmr.msra.gmra.mxu1 %v1493_v45 }
 0x28b   :  { %v1483_v54 = vpop.permute.xlu1 %1482 }
 0x28c   :  { %v1491_v6 = vsel %vm874_vm0, %v1468_v7, %v1483_v54 }
 0x28d   :  { %v1495_v13 = vpack.c.bf16 %v1491_v6, %v1491_v6 }
 0x28f   :  { %1827 = vmatmul.bf16.vlgmr.msra.gmra.mxu3 %v1495_v13  ;;  %2624 = vmatmul.msk.bf16.vlgmr.msrb.gmra.mxu2 %vm874_vm0, %v1497_v61 }
 0x29b   :  { %v1487_v57 = vpop.permute.xlu1 %1486 }
 0x29c   :  { %v1492_v27 = vsel %vm874_vm0, %v1470_v39, %v1487_v57 }
 0x29d   :  { %v1496_v42 = vpack.c.bf16 %v1492_v27, %v1492_v27 }
 0x29f   :  { %1840 = vmatmul.bf16.vlgmr.msrb.gmra.mxu1 %v1496_v42 }
 0x302   :  { %v1815_v12 = vpop.f32.mrf.mxu2 }
 0x304   :  { %v1802_v15 = vpop.f32.mrf.mxu1 }
 0x305   :  { %v1803_v25 = vadd.f32 %v2854_v30, %v1802_v15 }
 0x307   :  { %v1816_v40 = vadd.f32 %v1815_v12, %v1803_v25 }
 0x30a   :  { %v1817_v36 = vpop.f32.mrf.mxu2 }
 0x30c   :  { %v1804_v55 = vpop.f32.mrf.mxu1 }
 0x312   :  { %v1828_v18 = vpop.f32.mrf.mxu3  ;;  %v1854_v8 = vpop.f32.mrf.mxu2 }
 0x313   :  { %v1829_v50 = vadd.f32 %v1828_v18, %v1816_v40 }
 0x31a   :  { %v1830_v0 = vpop.f32.mrf.mxu3  ;;  %v1856_v53 = vpop.f32.mrf.mxu2 }
 0x31c   :  { %v1841_v49 = vpop.f32.mrf.mxu1 }
 0x31d   :  { %v1842_v51 = vadd.f32 %v1841_v49, %v1829_v50 }
 0x31f   :  { %v1855_v41 = vadd.f32 %v1854_v8, %v1842_v51 }
 0x321   :  { %v1858_v29 = vmax.f32 %v1855_v41, 0.0 }
 0x323   :  { %v1859_v5 = vpack.c.bf16 %v1858_v29, %v1858_v29 }
 0x324   :  { %v1843_v62 = vpop.f32.mrf.mxu1 }
 0x325   :  { %1936 = vmatmul.bf16.vlgmr.msrb.gmra.mxu3 %v1859_v5 }
 0x3a8   :  { %v1937_v56 = vpop.f32.mrf.mxu3 }
 0x3a9   :  { %v1938_v32 = vadd.f32 %v2855_v10, %v1937_v56 }
 0x3ab   :  { %1941 = vst [vmem:[#allocation2] sm:$0xff] %v1938_v32 }
 0x3ac   :  { %1952 = dma.vmem_to_hbm [thread:$0]  %s1948_s4, 128, %s1950_s0, [#allocation3]  }
 0x3b0   :  { %v1939_v52 = vpop.f32.mrf.mxu3 }
 0x3b1   :  { %2880 = dma.done.wait [#allocation3], 128  }
 0x3b2   :  { %2881 = vsyncadd [#allocation3], 4294967168 }
 0x3b3   :  { %1957 = vsyncpa [#allocation3], 1 }

</bundles_post_ra>
